<compile_context>
chip_gen: v5e
topology: v5e:2x2
jax: 0.10.0
libtpu: 0.0.40
codegen_flags: <defaults>
</compile_context>

<pallas_src>
import functools

import numpy as np
import jax
import jax.numpy as jnp
from jax.experimental import pallas as pl
from jax.experimental.pallas import tpu as pltpu


def _ru(x, m):
    return (x + m - 1) // m * m


_VMEM = pl.BlockSpec(memory_space=pltpu.MemorySpace.VMEM)


# --------------------------------------------------------------------------------------
# Shared fused epilogue:
#   mode "bn"     : y = (acc - mean) * rsqrt(var + eps) * gamma + beta (batch stats over rows)
#   mode "affine" : y = acc * scale + shift                            (scale = 1 -> conv bias)
# then optional residual add and ReLU.  Centered (two-pass) variance; padded rows masked.
# --------------------------------------------------------------------------------------
def _epilogue(acc, s, t, *, mode, relu, m_actual, eps, res=None):
    tm = acc.shape[0]
    if mode == "bn":
        inv_m = 1.0 / float(m_actual)
        mean = jnp.sum(acc, axis=0, keepdims=True) * inv_m
        diff = acc - mean
        if tm > m_actual:
            rows = jax.lax.broadcasted_iota(jnp.int32, acc.shape, 0)
            diff = jnp.where(rows < m_actual, diff, 0.0)
        var = jnp.sum(diff * diff, axis=0, keepdims=True) * inv_m
        y = diff * jax.lax.rsqrt(var + eps) * s + t
    else:
        y = acc * s + t
    if res is not None:
        y = y + res
    if relu:
        y = jnp.maximum(y, 0.0)
    return y


# --------------------------------------------------------------------------------------
# Fused matmul kernel:  Y = epilogue(A @ W)    A:(Mp,Kp) bf16, W:(Kp,N) bf16, out bf16.
# Single-K layers write the epilogue result directly (no init/accumulate RMW);
# multi-K layers accumulate into an f32 VMEM scratch.
# --------------------------------------------------------------------------------------
def _fused_mm_kernel(a_ref, w_ref, s_ref, t_ref, *rest,
                     mode, relu, has_res, multi_k, m, eps):
    rest = list(rest)
    acc_ref = rest.pop() if multi_k else None
    o_ref = rest.pop()
    r_ref = rest.pop() if has_res else None
    res = None if r_ref is None else r_ref[...].astype(jnp.float32)

    if not multi_k:
        acc = jnp.dot(a_ref[...], w_ref[...], preferred_element_type=jnp.float32)
        o_ref[...] = _epilogue(acc, s_ref[...], t_ref[...], mode=mode, relu=relu,
                               m_actual=m, eps=eps, res=res).astype(o_ref.dtype)
    else:
        k = pl.program_id(2)

        @pl.when(k == 0)
        def _():
            acc_ref[...] = jnp.zeros_like(acc_ref)

        acc_ref[...] += jnp.dot(a_ref[...], w_ref[...], preferred_element_type=jnp.float32)

        @pl.when(k == pl.num_programs(2) - 1)
        def _():
            o_ref[...] = _epilogue(acc_ref[...], s_ref[...], t_ref[...], mode=mode, relu=relu,
                                   m_actual=m, eps=eps, res=res).astype(o_ref.dtype)


def fused_matmul(a, w, scale, shift, *, mode, relu, m_actual, residual=None, eps=1e-5):
    """epilogue(A @ W); A:(M,K), W:(Kw>=K, N) pre-cast bf16 -> (M,N) bf16."""
    M, K = a.shape
    Kw, N = w.shape
    Mp = _ru(M, 16)                         # bf16 sublane packing
    tm = Mp
    if max(K, Kw) <= 4608:                  # single K step (most layers)
        tk = _ru(max(K, Kw), 16)
        Kp = tk
    else:                                   # only hit by the im2col fallback of psp_conv
        tk = 2048
        Kp = _ru(max(K, Kw), tk)
    if N >= 512 and N % 256 == 0:
        tn = 256                            # >= 2 parallel N tiles on wide layers
    elif N % 128 == 0:
        tn = 128
    else:
        tn = N
    k_steps = Kp // tk
    multi_k = k_steps > 1

    a_p = a.astype(jnp.bfloat16)            # no-op when activations are already bf16
    if Mp > M or Kp > K:
        a_p = jnp.pad(a_p, ((0, Mp - M), (0, Kp - K)))
    w_p = w.astype(jnp.bfloat16)            # no-op: weights pre-cast at build time
    if Kp > Kw:
        w_p = jnp.pad(w_p, ((0, Kp - Kw), (0, 0)))
    s_p = scale.reshape(1, N).astype(jnp.float32)
    t_p = shift.reshape(1, N).astype(jnp.float32)

    in_specs = [
        pl.BlockSpec((tm, tk), lambda i, j, k: (i, k)),
        pl.BlockSpec((tk, tn), lambda i, j, k: (k, j)),
        pl.BlockSpec((1, tn), lambda i, j, k: (0, j)),
        pl.BlockSpec((1, tn), lambda i, j, k: (0, j)),
    ]
    args = [a_p, w_p, s_p, t_p]
    has_res = residual is not None
    if has_res:
        r_p = residual.astype(jnp.bfloat16)
        if Mp > M:
            r_p = jnp.pad(r_p, ((0, Mp - M), (0, 0)))
        in_specs.append(pl.BlockSpec((tm, tn), lambda i, j, k: (i, j)))
        args.append(r_p)

    out = pl.pallas_call(
        functools.partial(_fused_mm_kernel, mode=mode, relu=relu, has_res=has_res,
                          multi_k=multi_k, m=m_actual, eps=eps),
        out_shape=jax.ShapeDtypeStruct((Mp, N), jnp.bfloat16),
        grid_spec=pltpu.PrefetchScalarGridSpec(
            num_scalar_prefetch=0,
            grid=(1, N // tn, k_steps),
            in_specs=in_specs,
            out_specs=pl.BlockSpec((tm, tn), lambda i, j, k: (i, j)),
            scratch_shapes=[pltpu.VMEM((tm, tn), jnp.float32)] if multi_k else [],
        ),
        compiler_params=pltpu.CompilerParams(
            dimension_semantics=("parallel", "parallel", "arbitrary")),
    )(*args)
    return out[:M]


# --------------------------------------------------------------------------------------
# Fused 3x3 stride-1 convolution: im2col happens INSIDE the kernel.
# x_pad:(Hp,Wp,C) resident NHWC block (channel-blocked), w:(9, C, OC), 9 taps unrolled.
# --------------------------------------------------------------------------------------
def _conv3_kernel(x_ref, w_ref, s_ref, t_ref, o_ref, *maybe_acc,
                  mode, relu, oh, ow, dil, kh, kw, c_steps, eps):
    acc_ref = maybe_acc[0] if maybe_acc else None
    m = oh * ow
    xv = x_ref[...].astype(jnp.float32)               # f32 for layout-clean slicing/reshape
    tap_sum = None
    for i in range(kh):
        for j in range(kw):
            a = xv[i * dil:i * dil + oh, j * dil:j * dil + ow, :]
            a2 = a.reshape(m, a.shape[-1]).astype(jnp.bfloat16)
            d = jnp.dot(a2, w_ref[i * kw + j], preferred_element_type=jnp.float32)
            tap_sum = d if tap_sum is None else tap_sum + d

    if c_steps == 1:
        o_ref[...] = _epilogue(tap_sum, s_ref[...], t_ref[...], mode=mode, relu=relu,
                               m_actual=m, eps=eps).astype(o_ref.dtype)
    else:
        kc = pl.program_id(1)

        @pl.when(kc == 0)
        def _():
            acc_ref[...] = jnp.zeros_like(acc_ref)

        acc_ref[...] += tap_sum

        @pl.when(kc == c_steps - 1)
        def _():
            o_ref[...] = _epilogue(acc_ref[...], s_ref[...], t_ref[...], mode=mode, relu=relu,
                                   m_actual=m, eps=eps).astype(o_ref.dtype)


def conv3x3_fused(x_nhwc, p, *, relu, eps=1e-5):
    N, H, W, C = x_nhwc.shape
    kh, kw = p["kh"], p["kw"]
    dil, pad = p["dilation"], p["padding"]
    w3 = p["w3"]                                        # (kh*kw, C, OC) bf16
    OC = w3.shape[2]
    Hp, Wp = H + 2 * pad, W + 2 * pad
    oh = Hp - dil * (kh - 1)
    ow = Wp - dil * (kw - 1)
    M = oh * ow
    if M % 16 != 0 or ow % 8 != 0:
        raise ValueError("geometry unsupported by fused 3x3 path")
    tkc = C if (C <= 1024 or C % 1024 != 0) else 1024
    c_steps = C // tkc
    if OC >= 512 and OC % 256 == 0:
        tn = 256
    elif OC % 128 == 0:
        tn = 128
    else:
        tn = OC
    scale, shift, mode = _scale_shift(p, OC)
    s_p = scale.reshape(1, OC).astype(jnp.float32)
    t_p = shift.reshape(1, OC).astype(jnp.float32)

    call = pl.pallas_call(
        functools.partial(_conv3_kernel, mode=mode, relu=relu, oh=oh, ow=ow,
                          dil=dil, kh=kh, kw=kw, c_steps=c_steps, eps=eps),
        out_shape=jax.ShapeDtypeStruct((M, OC), jnp.bfloat16),
        grid_spec=pltpu.PrefetchScalarGridSpec(
            num_scalar_prefetch=0,
            grid=(OC // tn, c_steps),
            in_specs=[
                pl.BlockSpec((Hp, Wp, tkc), lambda j, k: (0, 0, k)),
                pl.BlockSpec((kh * kw, tkc, tn), lambda j, k: (0, k, j)),
                pl.BlockSpec((1, tn), lambda j, k: (0, j)),
                pl.BlockSpec((1, tn), lambda j, k: (0, j)),
            ],
            out_specs=pl.BlockSpec((M, tn), lambda j, k: (0, j)),
            scratch_shapes=[pltpu.VMEM((M, tn), jnp.float32)] if c_steps > 1 else [],
        ),
        compiler_params=pltpu.CompilerParams(
            dimension_semantics=("parallel", "arbitrary")),
    )

    outs = []
    for n in range(N):
        xp = x_nhwc[n]
        if pad:
            xp = jnp.pad(xp, ((pad, pad), (pad, pad), (0, 0)))
        outs.append(call(xp, w3, s_p, t_p))
    return jnp.stack(outs, 0).reshape(N, oh, ow, OC)


# --------------------------------------------------------------------------------------
# Tiny single-block matmul (no grid) for the resampling operators; bf16 output.
# --------------------------------------------------------------------------------------
def _small_mm_kernel(a_ref, b_ref, o_ref):
    o_ref[...] = jnp.dot(a_ref[...], b_ref[...],
                         preferred_element_type=jnp.float32).astype(o_ref.dtype)


def small_matmul(a, b):
    M, K = a.shape
    N = b.shape[1]
    Mp, Kp = _ru(M, 8), _ru(K, 8)
    a_p = a.astype(jnp.float32)
    b_p = b.astype(jnp.float32)
    if Mp > M or Kp > K:
        a_p = jnp.pad(a_p, ((0, Mp - M), (0, Kp - K)))
    if Kp > K:
        b_p = jnp.pad(b_p, ((0, Kp - K), (0, 0)))
    out = pl.pallas_call(
        _small_mm_kernel,
        out_shape=jax.ShapeDtypeStruct((Mp, N), jnp.bfloat16),
        in_specs=[_VMEM, _VMEM],
        out_specs=_VMEM,
    )(a_p, b_p)
    return out[:M]


# --------------------------------------------------------------------------------------
# Resampling operators (adaptive avg-pool / bilinear align_corners=True) as small matmuls
# --------------------------------------------------------------------------------------
def adaptive_pool_matrix(in_size, out_size):
    m = np.zeros((out_size, in_size), np.float32)
    for i in range(out_size):
        s = (i * in_size) // out_size
        e = -(-((i + 1) * in_size) // out_size)
        m[i, s:e] = 1.0 / (e - s)
    return m


def bilinear_matrix(in_size, out_size):
    m = np.zeros((out_size, in_size), np.float32)
    if in_size == 1:
        m[:, 0] = 1.0
    else:
        for i in range(out_size):
            src = 0.0 if out_size == 1 else i * (in_size - 1) / (out_size - 1)
            i0 = min(int(np.floor(src)), in_size - 1)
            i1 = min(i0 + 1, in_size - 1)
            f = src - i0
            m[i, i0] += 1.0 - f
            m[i, i1] += f
    return m


def pool2d_op(H, W, oh, ow):
    return np.kron(adaptive_pool_matrix(H, oh), adaptive_pool_matrix(W, ow))


def bilinear2d_op(H, W, oh, ow):
    return np.kron(bilinear_matrix(H, oh), bilinear_matrix(W, ow))


def resample(x_nhwc, op, oh, ow):
    N, H, W, C = x_nhwc.shape
    m = jnp.asarray(op, jnp.float32)
    outs = [small_matmul(m, x_nhwc[n].reshape(H * W, C)) for n in range(N)]
    return jnp.stack(outs, 0).reshape(N, oh, ow, C)


# --------------------------------------------------------------------------------------
# Convolution dispatch (NHWC) + fused BN/bias + residual + ReLU
# --------------------------------------------------------------------------------------
def _scale_shift(p, OC):
    if p["gamma"] is not None:
        return p["gamma"], p["beta"], "bn"
    return jnp.ones((OC,), jnp.float32), p["bias"], "affine"


def _im2col_nhwc(x, kh, kw, stride, padding, dilation):
    N, H, W, C = x.shape
    if padding:
        x = jnp.pad(x, ((0, 0), (padding, padding), (padding, padding), (0, 0)))
    Hp, Wp = H + 2 * padding, W + 2 * padding
    oh = (Hp - dilation * (kh - 1) - 1) // stride + 1
    ow = (Wp - dilation * (kw - 1) - 1) // stride + 1
    patches = []
    for i in range(kh):
        for j in range(kw):
            r0, c0 = i * dilation, j * dilation
            patches.append(
                jax.lax.slice(
                    x,
                    (0, r0, c0, 0),
                    (N, r0 + (oh - 1) * stride + 1, c0 + (ow - 1) * stride + 1, C),
                    (1, stride, stride, 1),
                )
            )
    cols = jnp.stack(patches, axis=3)                    # (N, oh, ow, kh*kw, C)
    return cols.reshape(N * oh * ow, kh * kw * C), oh, ow


def conv2d_fused(x, p, *, relu, residual=None):
    N, H, W, C = x.shape
    kh, kw = p["kh"], p["kw"]
    if p["w3"] is not None and residual is None:
        try:
            return conv3x3_fused(x, p, relu=relu)
        except Exception:
            pass                                         # fall back to im2col matmul
    if p["wmat"] is not None:
        wmat = p["wmat"]
    else:
        w3 = p["w3"]
        wmat = w3.reshape(w3.shape[0] * w3.shape[1], w3.shape[2])
    OC = wmat.shape[1]
    if kh == 1 and kw == 1 and p["stride"] == 1 and p["padding"] == 0:
        cols, oh, ow = x.reshape(N * H * W, C), H, W     # 1x1 conv: free reshape
    else:
        cols, oh, ow = _im2col_nhwc(x, kh, kw, p["stride"], p["padding"], p["dilation"])
    M = N * oh * ow
    res = None if residual is None else residual.reshape(M, OC)
    scale, shift, mode = _scale_shift(p, OC)
    y = fused_matmul(cols, wmat, scale, shift, mode=mode, relu=relu,
                     m_actual=M, residual=res)
    return y.reshape(N, oh, ow, OC)


def maxpool_3x3_s2_p1(x):
    """nn.MaxPool2d(kernel_size=3, stride=2, padding=1) on NHWC (jnp.maximum tree)."""
    N, H, W, C = x.shape
    oh = (H - 1) // 2 + 1
    ow = (W - 1) // 2 + 1
    xp = jnp.pad(x, ((0, 0), (1, 1), (1, 1), (0, 0)), constant_values=-np.inf)
    out = None
    for i in range(3):
        for j in range(3):
            s = jax.lax.slice(
                xp, (0, i, j, 0),
                (N, i + (oh - 1) * 2 + 1, j + (ow - 1) * 2 + 1, C),
                (1, 2, 2, 1))
            out = s if out is None else jnp.maximum(out, s)
    return out


# --------------------------------------------------------------------------------------
# Deterministic synthetic parameters (weights stored pre-cast to bf16, pre-padded)
# --------------------------------------------------------------------------------------
class _Keys:
    def __init__(self, seed):
        self._k = jax.random.PRNGKey(seed)

    def next(self):
        self._k, k = jax.random.split(self._k)
        return k


def _conv_params(kg, ic, oc, k, *, stride=1, padding=0, dilation=1, bn=True,
                 pad_oc_to=None, pad_ic_to=None):
    oc_p = pad_oc_to or oc
    ic_p = pad_ic_to or ic
    fan_in = ic * k * k
    w = jax.random.normal(kg.next(), (k * k, ic, oc), jnp.float32) * np.sqrt(2.0 / fan_in)
    if oc_p > oc or ic_p > ic:
        w = jnp.pad(w, ((0, 0), (0, ic_p - ic), (0, oc_p - oc)))
    p = dict(kh=k, kw=k, stride=stride, padding=padding, dilation=dilation,
             gamma=None, beta=None, bias=None, wmat=None, w3=None)
    if bn:
        g = 1.0 + 0.1 * jax.random.normal(kg.next(), (oc,), jnp.float32)
        b = 0.1 * jax.random.normal(kg.next(), (oc,), jnp.float32)
        if oc_p > oc:
            g = jnp.pad(g, (0, oc_p - oc))
            b = jnp.pad(b, (0, oc_p - oc))
        p["gamma"], p["beta"] = g, b
    else:
        b = 0.01 * jax.random.normal(kg.next(), (oc,), jnp.float32)
        if oc_p > oc:
            b = jnp.pad(b, (0, oc_p - oc))
        p["bias"] = b
    wb = w.astype(jnp.bfloat16)
    if k == 3 and stride == 1:
        p["w3"] = wb                                      # fused in-kernel-im2col path
    else:
        K = k * k * ic_p
        Kp = _ru(K, 16)
        flat = wb.reshape(K, oc_p)
        if Kp > K:
            flat = jnp.pad(flat, ((0, Kp - K), (0, 0)))
        p["wmat"] = flat                                  # im2col matmul path, pre-padded
    return p


def _make_unit(kg, ic, mid, oc, stride, dilation):
    u = dict(
        c1=_conv_params(kg, ic, mid, 1, bn=True),
        c2=_conv_params(kg, mid, mid, 3, stride=stride, padding=dilation,
                        dilation=dilation, bn=True),
        c3=_conv_params(kg, mid, oc, 1, bn=True),
        ds=None,
        stride=stride,
    )
    if stride != 1 or ic != oc:
        u["ds"] = _conv_params(kg, ic, oc, 1, bn=True)
    return u


def _run_unit(x, u):
    idn = x
    if u["ds"] is not None:
        if u["stride"] != 1:   # ResNet-D shortcut: avg-pool (stride s) then 1x1 conv
            N, H, W, C = idn.shape
            oh, ow = H // u["stride"], W // u["stride"]
            idn = resample(idn, pool2d_op(H, W, oh, ow), oh, ow)
        idn = conv2d_fused(idn, u["ds"], relu=False)
    y = conv2d_fused(x, u["c1"], relu=True)
    y = conv2d_fused(y, u["c2"], relu=True)
    # conv3 + BN + residual add + ReLU fused in one kernel epilogue
    return conv2d_fused(y, u["c3"], relu=True, residual=idn)


def make_pspnet_params(n_class, seed=0):
    kg = _Keys(seed)
    p = {"n_class": n_class}
    # Resnet_Layer0_4Band(4, 128): 7x7 s2 p3 conv + BN + ReLU
    p["layer0"] = _conv_params(kg, 4, 128, 7, stride=2, padding=3, bn=True)

    def stage(ic, mid, oc, n, stride, dilation):
        units, cin = [], ic
        for i in range(n):
            units.append(_make_unit(kg, cin, mid, oc, stride if i == 0 else 1, dilation))
            cin = oc
        return units

    p["stage1"] = stage(128, 64, 256, 3, 1, 1)
    p["stage2"] = stage(256, 128, 512, 4, 2, 1)
    p["stage3"] = stage(512, 256, 1024, 6, 1, 2)   # dilated -> output stride stays 8
    p["stage4"] = stage(1024, 512, 2048, 3, 1, 4)

    blocks = []
    for size in (1, 2, 3, 6):
        blk = _conv_params(kg, 2048, 512, 1, bn=(size != 1))   # size-1 branch uses conv bias
        blk["size"] = size
        blocks.append(blk)
    p["psp_blocks"] = blocks
    p["psp_conv"] = _conv_params(kg, 4096, 512, 3, padding=1, bn=True)
    # decoder tail padded to 128 lanes (zero weights/params); sliced after final upsample
    p["conv_last2"] = _conv_params(kg, 512, 64, 3, padding=1, bn=True, pad_oc_to=128)
    p["conv_last3"] = _conv_params(kg, 64, n_class, 3, padding=1, bn=False,
                                   pad_oc_to=128, pad_ic_to=128)
    return p


# --------------------------------------------------------------------------------------
# Forward pass (NHWC / bf16 internally, NCHW f32 at the boundary)
# --------------------------------------------------------------------------------------
def pspnet_forward(p, x_nchw):
    n_class = p["n_class"]
    x = jnp.transpose(x_nchw, (0, 2, 3, 1)).astype(jnp.bfloat16)   # -> NHWC, bf16
    y = conv2d_fused(x, p["layer0"], relu=True)                    # layer0
    y = maxpool_3x3_s2_p1(y)                                       # SEInitBlock[3]
    for stage in ("stage1", "stage2", "stage3", "stage4"):         # layer1..layer4
        for u in p[stage]:
            y = _run_unit(y, u)

    # PSPModule (consolidated): one pooled matmul, 4 fused 1x1 convs, one block-diag upsample.
    N, H, W, C = y.shape
    sizes = (1, 2, 3, 6)
    bw = 512
    pool_op = np.vstack([pool2d_op(H, W, s, s) for s in sizes])    # (sum s^2, H*W)
    up_op = np.hstack([bilinear2d_op(s, s, H, W) for s in sizes])  # (H*W, sum s^2)
    offs = np.cumsum([0] + [s * s for s in sizes])
    ups = []
    for n in range(N):
        pooled = small_matmul(jnp.asarray(pool_op), y[n].reshape(H * W, C))   # (50, 2048)
        zs = []
        for bi, (blk, s) in enumerate(zip(p["psp_blocks"], sizes)):
            seg = pooled[int(offs[bi]):int(offs[bi + 1])]                     # (s*s, 2048)
            scale, shift, mode = _scale_shift(blk, bw)
            z = fused_matmul(seg, blk["wmat"], scale, shift, mode=mode, relu=True,
                             m_actual=s * s)                                  # (s*s, 512)
            zs.append(jnp.pad(z, ((0, 0), (bi * bw, (len(sizes) - 1 - bi) * bw))))
        zbd = jnp.concatenate(zs, axis=0)                                     # (50, 2048)
        ups.append(small_matmul(jnp.asarray(up_op), zbd))                     # (H*W, 2048)
    up_all = jnp.stack(ups, 0).reshape(N, H, W, len(sizes) * bw)
    y = jnp.concatenate([up_all, y], axis=-1)                                 # (N,H,W,4096)

    # PSPDecoder.conv (dropout is declared but never applied in the reference forward)
    y = conv2d_fused(y, p["psp_conv"], relu=True)
    y = conv2d_fused(y, p["conv_last2"], relu=True)                # conv_last2 (padded to 128)
    y = conv2d_fused(y, p["conv_last3"], relu=False)               # conv_last3 (padded to 128)

    # final x8 bilinear upsample, align_corners=True, then drop channel padding
    N, H, W, Cc = y.shape
    y = resample(y, bilinear2d_op(H, W, H * 8, W * 8), H * 8, W * 8)
    y = y[..., :n_class].astype(jnp.float32)
    return jnp.transpose(y, (0, 3, 1, 2))                          # -> NCHW


if __name__ == "__main__":
    n_class = 3
    x = jax.random.normal(jax.random.PRNGKey(0), (1, 4, 64, 64), jnp.float32)
    params = make_pspnet_params(n_class, seed=0)
    out = pspnet_forward(params, x)
    out = jax.block_until_ready(out)
    assert out.shape == (1, n_class, 64, 64), out.shape
    assert bool(jnp.all(jnp.isfinite(out)))
    print("KERNEL_OK")
</pallas_src>

<mosaic_0001>
module attributes {stable_mosaic.version = 11 : i64} {
  func.func @_fused_mm_kernel(%arg0: i32, %arg1: i32, %arg2: i32, %arg3: memref<1024x208xbf16, #tpu.memory_space<vmem>>, %arg4: memref<208x128xbf16, #tpu.memory_space<vmem>>, %arg5: memref<1x128xf32, #tpu.memory_space<vmem>>, %arg6: memref<1x128xf32, #tpu.memory_space<vmem>>, %arg7: memref<1024x128xbf16, #tpu.memory_space<vmem>>) attributes {dimension_semantics = [#tpu.dimension_semantics<parallel>, #tpu.dimension_semantics<parallel>, #tpu.dimension_semantics<arbitrary>], iteration_bounds = array<i64: 1, 1, 1>, scalar_prefetch = 0 : i64, scratch_operands = 0 : i64, tpu.core_type = #tpu.core_type<tc>, window_params = [{transform_indices = @transform_0, window_bounds = array<i64: 1024, 208>}, {transform_indices = @transform_1, window_bounds = array<i64: 208, 128>}, {transform_indices = @transform_2, window_bounds = array<i64: 1, 128>}, {transform_indices = @transform_3, window_bounds = array<i64: 1, 128>}, {transform_indices = @transform_4, window_bounds = array<i64: 1024, 128>}]} {
    %c0 = arith.constant 0 : index
    %c0_0 = arith.constant 0 : index
    %0 = vector.load %arg3[%c0, %c0_0] : memref<1024x208xbf16, #tpu.memory_space<vmem>>, vector<1024x208xbf16>
    %c0_1 = arith.constant 0 : index
    %c0_2 = arith.constant 0 : index
    %1 = vector.load %arg4[%c0_1, %c0_2] : memref<208x128xbf16, #tpu.memory_space<vmem>>, vector<208x128xbf16>
    %cst = arith.constant dense<0.000000e+00> : vector<1024x128xf32>
    %2 = tpu.matmul %0, %1, %cst {dimension_numbers = #tpu.dot_dimension_numbers<[1], [0], [0], [1], [0, 0, 1, 1], [], []>} : vector<1024x208xbf16>, vector<208x128xbf16>, vector<1024x128xf32> -> vector<1024x128xf32>
    %c0_3 = arith.constant 0 : index
    %c0_4 = arith.constant 0 : index
    %3 = vector.load %arg5[%c0_3, %c0_4] : memref<1x128xf32, #tpu.memory_space<vmem>>, vector<1x128xf32>
    %c0_5 = arith.constant 0 : index
    %c0_6 = arith.constant 0 : index
    %4 = vector.load %arg6[%c0_5, %c0_6] : memref<1x128xf32, #tpu.memory_space<vmem>>, vector<1x128xf32>
    %cst_7 = arith.constant dense<0.000000e+00> : vector<128xf32>
    %5 = vector.multi_reduction <add>, %2, %cst_7 [0] : vector<1024x128xf32> to vector<128xf32>
    %6 = vector.shape_cast %5 : vector<128xf32> to vector<1x128xf32>
    %cst_8 = arith.constant 9.765625E-4 : f32
    %7 = vector.broadcast %cst_8 : f32 to vector<1x128xf32>
    %8 = arith.mulf %6, %7 : vector<1x128xf32>
    %9 = vector.broadcast %8 : vector<1x128xf32> to vector<1024x128xf32>
    %10 = arith.subf %2, %9 : vector<1024x128xf32>
    %11 = arith.mulf %10, %10 : vector<1024x128xf32>
    %cst_9 = arith.constant dense<0.000000e+00> : vector<128xf32>
    %12 = vector.multi_reduction <add>, %11, %cst_9 [0] : vector<1024x128xf32> to vector<128xf32>
    %13 = vector.shape_cast %12 : vector<128xf32> to vector<1x128xf32>
    %cst_10 = arith.constant 9.765625E-4 : f32
    %14 = vector.broadcast %cst_10 : f32 to vector<1x128xf32>
    %15 = arith.mulf %13, %14 : vector<1x128xf32>
    %cst_11 = arith.constant 9.99999974E-6 : f32
    %16 = vector.broadcast %cst_11 : f32 to vector<1x128xf32>
    %17 = arith.addf %15, %16 : vector<1x128xf32>
    %18 = math.rsqrt %17 : vector<1x128xf32>
    %19 = vector.broadcast %18 : vector<1x128xf32> to vector<1024x128xf32>
    %20 = arith.mulf %10, %19 : vector<1024x128xf32>
    %21 = vector.broadcast %3 : vector<1x128xf32> to vector<1024x128xf32>
    %22 = arith.mulf %20, %21 : vector<1024x128xf32>
    %23 = vector.broadcast %4 : vector<1x128xf32> to vector<1024x128xf32>
    %24 = arith.addf %22, %23 : vector<1024x128xf32>
    %cst_12 = arith.constant 0.000000e+00 : f32
    %25 = vector.broadcast %cst_12 : f32 to vector<1024x128xf32>
    %26 = arith.maximumf %24, %25 : vector<1024x128xf32>
    %27 = arith.truncf %26 : vector<1024x128xf32> to vector<1024x128xbf16>
    %c0_13 = arith.constant 0 : index
    %c0_14 = arith.constant 0 : index
    %28 = vector.load %arg7[%c0_13, %c0_14] : memref<1024x128xbf16, #tpu.memory_space<vmem>>, vector<1024x128xbf16>
    tpu.vector_store %arg7[%c0_13, %c0_14], %27 {strides = array<i32>} : memref<1024x128xbf16, #tpu.memory_space<vmem>>, vector<1024x128xbf16>,
    return
  }
  func.func @transform_0(%arg0: i32, %arg1: i32, %arg2: i32) -> (i32, i32) {
    %c0_i32 = arith.constant 0 : i32
    return %arg0, %arg2 : i32, i32
  }
  func.func @transform_1(%arg0: i32, %arg1: i32, %arg2: i32) -> (i32, i32) {
    %c0_i32 = arith.constant 0 : i32
    return %arg2, %arg1 : i32, i32
  }
  func.func @transform_2(%arg0: i32, %arg1: i32, %arg2: i32) -> (i32, i32) {
    %c0_i32 = arith.constant 0 : i32
    %c0_i32_0 = arith.constant 0 : i32
    return %c0_i32, %arg1 : i32, i32
  }
  func.func @transform_3(%arg0: i32, %arg1: i32, %arg2: i32) -> (i32, i32) {
    %c0_i32 = arith.constant 0 : i32
    %c0_i32_0 = arith.constant 0 : i32
    return %c0_i32, %arg1 : i32, i32
  }
  func.func @transform_4(%arg0: i32, %arg1: i32, %arg2: i32) -> (i32, i32) {
    %c0_i32 = arith.constant 0 : i32
    return %arg0, %arg1 : i32, i32
  }
}

</mosaic_0001>

<bundles_post_ra>
// kernel: tpu_custom_call.1
= control target key start
LH: loop header
LB: loop body
LE: loop exit
PB: predicated region body
PF: predicated region fallthrough
CT: control target
= control target key end

     0   :  { %s8177_s0 = inlined_call_operand.vmem [shape: bf16[1024,208], index: 0, kind: input, shape index: {}]   ;;  %s8178_s1 = inlined_call_operand.vmem [shape: bf16[208,128], index: 1, kind: input, shape index: {}]   ;;  %s8179_s2 = inlined_call_operand.vmem [shape: f32[1,128], index: 2, kind: input, shape index: {}]   ;;  %s8180_s3 = inlined_call_operand.vmem [shape: f32[1,128], index: 3, kind: input, shape index: {}]   ;;  %s8181_s4 = inlined_call_operand.hbm [shape: bf16[1024,128], index: 4, kind: output, shape index: {}]  }
   0x1   :  { %v3770_v0 = vld [vmem:[%s8178_s1 + $0x38] sm:$0xff]  ;;  %v3775_v1 = vld [vmem:[%s8178_s1 + $0x60] sm:$0xff]  ;;  %v3769_v2 = vld [vmem:[%s8178_s1 + $0x30] sm:$0xff] }
   0x2   :  { %1020 = vmatpush.bf16.msra.mxu0 %v3770_v0  ;;  %1352 = vmatpush.bf16.msra.mxu1 %v3775_v1  ;;  %v3774_v3 = vld [vmem:[%s8178_s1 + $0x58] sm:$0xff]  ;;  %v3768_v4 = vld [vmem:[%s8178_s1 + $0x28] sm:$0xff]  ;;  %v3773_v5 = vld [vmem:[%s8178_s1 + $0x50] sm:$0xff] }
   0x3   :  { %4159 = vmatpush.bf16.msra.mxu2 %v3770_v0  ;;  %4167 = vmatpush.bf16.msra.mxu3 %v3775_v1 }
   0x6   :  { %1021 = vmatpush.bf16.msra.mxu0 %v3769_v2  ;;  %1353 = vmatpush.bf16.msra.mxu1 %v3774_v3 }
   0x7   :  { %4160 = vmatpush.bf16.msra.mxu2 %v3769_v2  ;;  %4168 = vmatpush.bf16.msra.mxu3 %v3774_v3 }
   0x8   :  { %9 = vsyncpa [#allocation3], 0  ;;  %v3767_v6 = vld [vmem:[%s8178_s1 + $0x20] sm:$0xff]  ;;  %v3772_v7 = vld [vmem:[%s8178_s1 + $0x48] sm:$0xff]  ;;  %vm827_vm0 = vcmask 654336   ;;  %s2995_s21 = sshll.u32 %s8181_s4, 4  ;;  %s2996_s21 = int_to_ptr.hbm [resolvable:$true] %s2995_s21 }
   0x9   :  { %v3766_v8 = vld [vmem:[%s8178_s1 + $0x18] sm:$0xff]  ;;  %v3771_v9 = vld [vmem:[%s8178_s1 + $0x40] sm:$0xff]  ;;  %v3011_v11 = vld [vmem:[%s8177_s0 + $0x8] sm:$0xf0]  ;;  %s4207_s22 = smov 64   ;;  %s4208_s23 = smov 4  }
   0xa   :  { %1022 = vmatpush.bf16.msra.mxu0 %v3768_v4  ;;  %1354 = vmatpush.bf16.msra.mxu1 %v3773_v5  ;;  %v3635_v10 = vld [vmem:[%s8177_s0 + $0x4] sm:$0xf]  ;;  %v3765_v13 = vld [vmem:[%s8178_s1 + $0x10] sm:$0xff]  ;;  %v3764_v14 = vld [vmem:[%s8178_s1 + $0x8] sm:$0xff] }
   0xb   :  { %4161 = vmatpush.bf16.msra.mxu2 %v3768_v4  ;;  %4169 = vmatpush.bf16.msra.mxu3 %v3773_v5  ;;  %v3014_v12 = vor.u32 %v3635_v10, %v3011_v11  ;;  %v3763_v15 = vld [vmem:[%s8178_s1] sm:$0xff]  ;;  %v3636_v17 = vld [vmem:[%s8177_s0 + $0x4] sm:$0xf0]  ;;  %v3637_v19 = vld [vmem:[%s8177_s0 + $0x14] sm:$0xf] }
   0xc   :  { %v3009_v16 = vld [vmem:[%s8177_s0] sm:$0xf]  ;;  %v3019_v20 = vld [vmem:[%s8177_s0 + $0x18] sm:$0xf0]  ;;  %v3017_v22 = vld [vmem:[%s8177_s0 + $0x10] sm:$0xf] }
   0xd   :  { %v3010_v18 = vor.u32 %v3636_v17, %v3009_v16  ;;  %v3022_v21 = vor.u32 %v3637_v19, %v3019_v20  ;;  %v3638_v23 = vld [vmem:[%s8177_s0 + $0x14] sm:$0xf0]  ;;  %v3639_v25 = vld [vmem:[%s8177_s0 + $0x24] sm:$0xf]  ;;  %v3027_v26 = vld [vmem:[%s8177_s0 + $0x28] sm:$0xf0] }
   0xe   :  { %1023 = vmatpush.bf16.msra.mxu0 %v3767_v6  ;;  %1355 = vmatpush.bf16.msra.mxu1 %v3772_v7  ;;  %v3018_v24 = vor.u32 %v3638_v23, %v3017_v22  ;;  %v3030_v27 = vor.u32 %v3639_v25, %v3027_v26  ;;  %v3025_v28 = vld [vmem:[%s8177_s0 + $0x20] sm:$0xf]  ;;  %v3640_v29 = vld [vmem:[%s8177_s0 + $0x24] sm:$0xf0]  ;;  %v3641_v31 = vld [vmem:[%s8177_s0 + $0x34] sm:$0xf] }
   0xf   :  { %4162 = vmatpush.bf16.msra.mxu2 %v3767_v6  ;;  %4170 = vmatpush.bf16.msra.mxu3 %v3772_v7  ;;  %v3026_v30 = vor.u32 %v3640_v29, %v3025_v28  ;;  %v3035_v32 = vld [vmem:[%s8177_s0 + $0x38] sm:$0xf0]  ;;  %v3033_v34 = vld [vmem:[%s8177_s0 + $0x30] sm:$0xf]  ;;  %v3642_v35 = vld [vmem:[%s8177_s0 + $0x34] sm:$0xf0] }
  0x10   :  { %v3038_v33 = vor.u32 %v3641_v31, %v3035_v32  ;;  %v3034_v36 = vor.u32 %v3642_v35, %v3033_v34  ;;  %v3643_v37 = vld [vmem:[%s8177_s0 + $0x44] sm:$0xf]  ;;  %v3043_v38 = vld [vmem:[%s8177_s0 + $0x48] sm:$0xf0]  ;;  %v3041_v40 = vld [vmem:[%s8177_s0 + $0x40] sm:$0xf] }
  0x11   :  { %v3046_v39 = vor.u32 %v3643_v37, %v3043_v38  ;;  %v3644_v41 = vld [vmem:[%s8177_s0 + $0x44] sm:$0xf0]  ;;  %v3645_v43 = vld [vmem:[%s8177_s0 + $0x54] sm:$0xf]  ;;  %v3051_v44 = vld [vmem:[%s8177_s0 + $0x58] sm:$0xf0] }
  0x12   :  { %1024 = vmatpush.bf16.msra.mxu0 %v3766_v8  ;;  %1356 = vmatpush.bf16.msra.mxu1 %v3771_v9  ;;  %v3042_v42 = vor.u32 %v3644_v41, %v3041_v40  ;;  %v3054_v45 = vor.u32 %v3645_v43, %v3051_v44  ;;  %v3049_v46 = vld [vmem:[%s8177_s0 + $0x50] sm:$0xf]  ;;  %v3646_v47 = vld [vmem:[%s8177_s0 + $0x54] sm:$0xf0]  ;;  %v3647_v49 = vld [vmem:[%s8177_s0 + $0x64] sm:$0xf] }
  0x13   :  { %4163 = vmatpush.bf16.msra.mxu2 %v3766_v8  ;;  %4171 = vmatpush.bf16.msra.mxu3 %v3771_v9  ;;  %v3050_v48 = vor.u32 %v3646_v47, %v3049_v46  ;;  %v3059_v50 = vld [vmem:[%s8177_s0 + $0x68] sm:$0xf0]  ;;  %v3265_v51 = vld [vmem:[%s8177_s0 + $0x200] sm:$0xf]  ;;  %v3700_v52 = vld [vmem:[%s8177_s0 + $0x204] sm:$0xf0] }
  0x14   :  { %v3062_v53 = vor.u32 %v3647_v49, %v3059_v50  ;;  %v3266_v54 = vor.u32 %v3700_v52, %v3265_v51  ;;  %v3057_v55 = vld [vmem:[%s8177_s0 + $0x60] sm:$0xf]  ;;  %v3648_v56 = vld [vmem:[%s8177_s0 + $0x64] sm:$0xf0]  ;;  %v3649_v58 = vld [vmem:[%s8177_s0 + $0x74] sm:$0xf] }
  0x15   :  { %3571 = vmatmul.msk.bf16.vlgmr.msra.gmra.mxu1 %vm827_vm0, %v3014_v12  ;;  %v3058_v57 = vor.u32 %v3648_v56, %v3057_v55  ;;  %v3067_v59 = vld [vmem:[%s8177_s0 + $0x78] sm:$0xf0]  ;;  %v3273_v60 = vld [vmem:[%s8177_s0 + $0x210] sm:$0xf]  ;;  %v3702_v61 = vld [vmem:[%s8177_s0 + $0x214] sm:$0xf0] }
  0x16   :  { %1025 = vmatpush.bf16.msra.mxu0 %v3765_v13  ;;  %v3701_v62 = vld [vmem:[%s8177_s0 + $0x214] sm:$0xf]  ;;  %v3070_v63 = vor.u32 %v3649_v58, %v3067_v59  ;;  %v3274_v0 = vor.u32 %v3702_v61, %v3273_v60  ;;  %v3275_v1 = vld [vmem:[%s8177_s0 + $0x218] sm:$0xf0]  ;;  %v3065_v3 = vld [vmem:[%s8177_s0 + $0x70] sm:$0xf] }
  0x17   :  { %4164 = vmatpush.bf16.msra.mxu2 %v3765_v13  ;;  %v3278_v2 = vor.u32 %v3701_v62, %v3275_v1  ;;  %v3650_v4 = vld [vmem:[%s8177_s0 + $0x74] sm:$0xf0]  ;;  %v3651_v6 = vld [vmem:[%s8177_s0 + $0x84] sm:$0xf]  ;;  %v3075_v7 = vld [vmem:[%s8177_s0 + $0x88] sm:$0xf0] }
  0x18   :  { %v3066_v5 = vor.u32 %v3650_v4, %v3065_v3  ;;  %v3281_v8 = vld [vmem:[%s8177_s0 + $0x220] sm:$0xf]  ;;  %v3704_v9 = vld [vmem:[%s8177_s0 + $0x224] sm:$0xf0]  ;;  %v3703_v10 = vld [vmem:[%s8177_s0 + $0x224] sm:$0xf]  ;;  %v3078_v11 = vor.u32 %v3651_v6, %v3075_v7 }
  0x19   :  { %3604 = vmatmul.msk.bf16.vlgmr.msra.gmra.mxu3 %vm827_vm0, %v3278_v2  ;;  %v3282_v12 = vor.u32 %v3704_v9, %v3281_v8  ;;  %v3283_v13 = vld [vmem:[%s8177_s0 + $0x228] sm:$0xf0]  ;;  %v3073_v17 = vld [vmem:[%s8177_s0 + $0x80] sm:$0xf]  ;;  %v3083_v22 = vld [vmem:[%s8177_s0 + $0x98] sm:$0xf0] }
  0x1a   :  { %1026 = vmatpush.bf16.msra.mxu0 %v3764_v14  ;;  %v3706_v25 = vld [vmem:[%s8177_s0 + $0x234] sm:$0xf0]  ;;  %v3705_v26 = vld [vmem:[%s8177_s0 + $0x234] sm:$0xf]  ;;  %v3291_v29 = vld [vmem:[%s8177_s0 + $0x238] sm:$0xf0] }
  0x1b   :  { %4165 = vmatpush.bf16.msra.mxu2 %v3764_v14  ;;  %v3294_v31 = vor.u32 %v3705_v26, %v3291_v29  ;;  %v3081_v35 = vld [vmem:[%s8177_s0 + $0x90] sm:$0xf]  ;;  %v3091_v40 = vld [vmem:[%s8177_s0 + $0xa8] sm:$0xf0]  ;;  %v3708_v43 = vld [vmem:[%s8177_s0 + $0x244] sm:$0xf0] }
  0x1c   :  { %v3707_v44 = vld [vmem:[%s8177_s0 + $0x244] sm:$0xf]  ;;  %v3299_v47 = vld [vmem:[%s8177_s0 + $0x248] sm:$0xf0]  ;;  %v3099_v58 = vld [vmem:[%s8177_s0 + $0xb8] sm:$0xf0] }
  0x1d   :  { %v3302_v49 = vor.u32 %v3707_v44, %v3299_v47  ;;  %v3305_v60 = vld [vmem:[%s8177_s0 + $0x250] sm:$0xf]  ;;  %v3710_v61 = vld [vmem:[%s8177_s0 + $0x254] sm:$0xf0]  ;;  %v3709_v62 = vld [vmem:[%s8177_s0 + $0x254] sm:$0xf] }
  0x1e   :  { %1027 = vmatpush.bf16.msra.mxu0 %v3763_v15  ;;  %v3307_v1 = vld [vmem:[%s8177_s0 + $0x258] sm:$0xf0]  ;;  %v3097_v7 = vld [vmem:[%s8177_s0 + $0xb0] sm:$0xf]  ;;  %v3658_v8 = vld [vmem:[%s8177_s0 + $0xb4] sm:$0xf0] }
  0x1f   :  { %4166 = vmatpush.bf16.msra.mxu2 %v3763_v15  ;;  %v3286_v15 = vor.u32 %v3703_v10, %v3283_v13  ;;  %v3310_v3 = vor.u32 %v3709_v62, %v3307_v1  ;;  %v3098_v9 = vor.u32 %v3658_v8, %v3097_v7  ;;  %v3105_v26 = vld [vmem:[%s8177_s0 + $0xc0] sm:$0xf]  ;;  %v3662_v47 = vld [vmem:[%s8177_s0 + $0xd4] sm:$0xf0]  ;;  %v3665_v8 = vld [vmem:[%s8177_s0 + $0xf4] sm:$0xf] }
  0x21   :  { %1028 = vmatmul.bf16.vlgmr.msra.gmra.mxu0 %v3010_v18  ;;  %v3652_v18 = vld [vmem:[%s8177_s0 + $0x84] sm:$0xf0] }
  0x22   :  { %1188 = vmatmul.bf16.vlgmr.msra.gmra.mxu2 %v3266_v54  ;;  %v3074_v19 = vor.u32 %v3652_v18, %v3073_v17  ;;  %v3656_v54 = vld [vmem:[%s8177_s0 + $0xa4] sm:$0xf0] }
  0x25   :  { %3572 = vmatmul.msk.bf16.gmra.mxu1 %vm827_vm0, %v3022_v21  ;;  %v3653_v21 = vld [vmem:[%s8177_s0 + $0x94] sm:$0xf] }
  0x29   :  { %3605 = vmatmul.msk.bf16.gmra.mxu3 %vm827_vm0, %v3286_v15  ;;  %v3712_v15 = vld [vmem:[%s8177_s0 + $0x264] sm:$0xf0] }
  0x31   :  { %1033 = vmatmul.bf16.gmra.mxu0 %v3018_v24  ;;  %v3289_v24 = vld [vmem:[%s8177_s0 + $0x230] sm:$0xf] }
  0x32   :  { %1193 = vmatmul.bf16.gmra.mxu2 %v3274_v0  ;;  %v3290_v28 = vor.u32 %v3706_v25, %v3289_v24  ;;  %v3306_v0 = vor.u32 %v3710_v61, %v3305_v60  ;;  %v3331_v60 = vld [vmem:[%s8177_s0 + $0x288] sm:$0xf0] }
  0x35   :  { %3573 = vmatmul.msk.bf16.gmra.mxu1 %vm827_vm0, %v3030_v27  ;;  %v3086_v27 = vor.u32 %v3653_v21, %v3083_v22 }
  0x39   :  { %3606 = vmatmul.msk.bf16.gmra.mxu3 %vm827_vm0, %v3294_v31  ;;  %v3115_v31 = vld [vmem:[%s8177_s0 + $0xd8] sm:$0xf0] }
  0x41   :  { %1038 = vmatmul.bf16.gmra.mxu0 %v3026_v30 }
  0x42   :  { %1198 = vmatmul.bf16.gmra.mxu2 %v3282_v12  ;;  %v3107_v12 = vld [vmem:[%s8177_s0 + $0xc8] sm:$0xf0] }
  0x45   :  { %3574 = vmatmul.msk.bf16.gmra.mxu1 %vm827_vm0, %v3038_v33 }
  0x49   :  { %3607 = vmatmul.msk.bf16.gmra.mxu3 %vm827_vm0, %v3302_v49 }
  0x51   :  { %1043 = vmatmul.bf16.gmra.mxu0 %v3034_v36  ;;  %v3654_v36 = vld [vmem:[%s8177_s0 + $0x94] sm:$0xf0] }
  0x52   :  { %1203 = vmatmul.bf16.gmra.mxu2 %v3290_v28  ;;  %v3082_v37 = vor.u32 %v3654_v36, %v3081_v35  ;;  %v3714_v35 = vld [vmem:[%s8177_s0 + $0x274] sm:$0xf0]  ;;  %v3713_v36 = vld [vmem:[%s8177_s0 + $0x274] sm:$0xf] }
  0x55   :  { %3575 = vmatmul.msk.bf16.gmra.mxu1 %vm827_vm0, %v3046_v39  ;;  %v3655_v39 = vld [vmem:[%s8177_s0 + $0xa4] sm:$0xf] }
  0x59   :  { %3608 = vmatmul.msk.bf16.gmra.mxu3 %vm827_vm0, %v3310_v3  ;;  %v3121_v3 = vld [vmem:[%s8177_s0 + $0xe0] sm:$0xf] }
  0x61   :  { %1048 = vmatmul.bf16.gmra.mxu0 %v3042_v42  ;;  %v3297_v42 = vld [vmem:[%s8177_s0 + $0x240] sm:$0xf] }
  0x62   :  { %v3298_v46 = vor.u32 %v3708_v43, %v3297_v42 }
  0x64   :  { %1208 = vmatmul.bf16.gmra.mxu2 %v3298_v46  ;;  %v3113_v46 = vld [vmem:[%s8177_s0 + $0xd0] sm:$0xf] }
  0x65   :  { %3576 = vmatmul.msk.bf16.gmra.mxu1 %vm827_vm0, %v3054_v45  ;;  %v3094_v45 = vor.u32 %v3655_v39, %v3091_v40  ;;  %v3323_v39 = vld [vmem:[%s8177_s0 + $0x278] sm:$0xf0] }
  0x66   :  { %v3326_v42 = vor.u32 %v3713_v36, %v3323_v39  ;;  %v3139_v36 = vld [vmem:[%s8177_s0 + $0x108] sm:$0xf0] }
  0x71   :  { %1053 = vmatmul.bf16.gmra.mxu0 %v3050_v48 }
  0x74   :  { %1213 = vmatmul.bf16.gmra.mxu2 %v3306_v0 }
  0x75   :  { %3577 = vmatmul.msk.bf16.gmra.mxu1 %vm827_vm0, %v3062_v53  ;;  %v3089_v53 = vld [vmem:[%s8177_s0 + $0xa0] sm:$0xf] }
  0x76   :  { %v3090_v55 = vor.u32 %v3656_v54, %v3089_v53  ;;  %v3329_v54 = vld [vmem:[%s8177_s0 + $0x280] sm:$0xf] }
  0x81   :  { %1058 = vmatmul.bf16.gmra.mxu0 %v3058_v57  ;;  %v3657_v57 = vld [vmem:[%s8177_s0 + $0xb4] sm:$0xf] }
  0x85   :  { %3578 = vmatmul.msk.bf16.gmra.mxu1 %vm827_vm0, %v3070_v63  ;;  %v3102_v63 = vor.u32 %v3657_v57, %v3099_v58 }
  0x91   :  { %1063 = vmatmul.bf16.gmra.mxu0 %v3066_v5 }
  0x92   :  { %v1358_v14 = vpop.f32.mrf.mxu1 }
  0x95   :  { %3579 = vmatmul.msk.bf16.gmra.mxu1 %vm827_vm0, %v3078_v11  ;;  %v3659_v11 = vld [vmem:[%s8177_s0 + $0xc4] sm:$0xf] }
  0x96   :  { %v3110_v17 = vor.u32 %v3659_v11, %v3107_v12  ;;  %v3337_v12 = vld [vmem:[%s8177_s0 + $0x290] sm:$0xf] }
  0x9a   :  { %v1360_v16 = vpop.f32.mrf.mxu1 }
  0x9e   :  { %v1029_v20 = vpop.f32.mrf.mxu0 }
  0x9f   :  { %v4428_v23 = vadd.f32 %v1358_v14, %v1029_v20  ;;  %v3313_v14 = vld [vmem:[%s8177_s0 + $0x260] sm:$0xf] }
  0xa0   :  { %v3314_v18 = vor.u32 %v3712_v15, %v3313_v14  ;;  %v3718_v14 = vld [vmem:[%s8177_s0 + $0x294] sm:$0xf0]  ;;  %v3717_v15 = vld [vmem:[%s8177_s0 + $0x294] sm:$0xf] }
  0xa1   :  { %8421 = vst [vmem:[#allocation5_spill] sm:$0xff] %v4428_v23  ;;  %1068 = vmatmul.bf16.gmra.mxu0 %v3074_v19  ;;  %v3315_v19 = vld [vmem:[%s8177_s0 + $0x268] sm:$0xf0] }
  0xa2   :  { %v1363_v30 = vpop.f32.mrf.mxu1  ;;  %1218 = vmatmul.bf16.gmra.mxu2 %v3314_v18  ;;  %v3339_v18 = vld [vmem:[%s8177_s0 + $0x298] sm:$0xf0] }
  0xa5   :  { %3580 = vmatmul.msk.bf16.gmra.mxu1 %vm827_vm0, %v3086_v27  ;;  %v3660_v27 = vld [vmem:[%s8177_s0 + $0xc4] sm:$0xf0]  ;;  %v4594_v0 = vpop.f32.mrf.mxu2 }
  0xa6   :  { %v1031_v32 = vpop.f32.mrf.mxu0  ;;  %v3106_v28 = vor.u32 %v3660_v27, %v3105_v26  ;;  %8428 = vst [vmem:[#allocation12_spill] sm:$0xff] %v4594_v0  ;;  %v1523_v26 = vpop.f32.mrf.mxu3 }
  0xa7   :  { %v4444_v33 = vadd.f32 %v1360_v16, %v1031_v32  ;;  %v3711_v16 = vld [vmem:[%s8177_s0 + $0x264] sm:$0xf] }
  0xa8   :  { %v3318_v21 = vor.u32 %v3711_v16, %v3315_v19 }
  0xa9   :  { %8422 = vst [vmem:[#allocation6_spill] sm:$0xff] %v4444_v33 }
  0xaa   :  { %v1365_v34 = vpop.f32.mrf.mxu1  ;;  %3609 = vmatmul.msk.bf16.gmra.mxu3 %vm827_vm0, %v3318_v21 }
  0xae   :  { %v1034_v38 = vpop.f32.mrf.mxu0  ;;  %v1525_v39 = vpop.f32.mrf.mxu3 }
  0xaf   :  { %v4458_v41 = vadd.f32 %v1363_v30, %v1034_v38  ;;  %v3661_v30 = vld [vmem:[%s8177_s0 + $0xd4] sm:$0xf] }
  0xb1   :  { %8423 = vst [vmem:[#allocation7_spill] sm:$0xff] %v4458_v41  ;;  %1073 = vmatmul.bf16.gmra.mxu0 %v3082_v37  ;;  %v3118_v37 = vor.u32 %v3661_v30, %v3115_v31  ;;  %v3666_v30 = vld [vmem:[%s8177_s0 + $0xf4] sm:$0xf0] }
  0xb2   :  { %v1368_v48 = vpop.f32.mrf.mxu1 }
  0xb5   :  { %3581 = vmatmul.msk.bf16.gmra.mxu1 %vm827_vm0, %v3094_v45 }
  0xb6   :  { %v1036_v50 = vpop.f32.mrf.mxu0 }
  0xb7   :  { %v4474_v51 = vadd.f32 %v1365_v34, %v1036_v50  ;;  %v3321_v34 = vld [vmem:[%s8177_s0 + $0x270] sm:$0xf]  ;;  %v3663_v50 = vld [vmem:[%s8177_s0 + $0xe4] sm:$0xf] }
  0xb8   :  { %v3322_v38 = vor.u32 %v3714_v35, %v3321_v34  ;;  %v3667_v35 = vld [vmem:[%s8177_s0 + $0x104] sm:$0xf] }
  0xb9   :  { %8424 = vst [vmem:[#allocation8_spill] sm:$0xff] %v4474_v51 }
  0xba   :  { %v1370_v52 = vpop.f32.mrf.mxu1  ;;  %1223 = vmatmul.bf16.gmra.mxu2 %v3322_v38  ;;  %3610 = vmatmul.msk.bf16.gmra.mxu3 %vm827_vm0, %v3326_v42  ;;  %v3345_v42 = vld [vmem:[%s8177_s0 + $0x2a0] sm:$0xf] }
  0xbe   :  { %v1039_v56 = vpop.f32.mrf.mxu0 }
  0xbf   :  { %v4488_v59 = vadd.f32 %v1368_v48, %v1039_v56  ;;  %v3114_v48 = vor.u32 %v3662_v47, %v3113_v46  ;;  %v3715_v56 = vld [vmem:[%s8177_s0 + $0x284] sm:$0xf]  ;;  %v3142_v46 = vor.u32 %v3667_v35, %v3139_v36 }
  0xc0   :  { %v3334_v62 = vor.u32 %v3715_v56, %v3331_v60  ;;  %v1528_v56 = vpop.f32.mrf.mxu3  ;;  %v3137_v60 = vld [vmem:[%s8177_s0 + $0x100] sm:$0xf]  ;;  %v3671_v36 = vld [vmem:[%s8177_s0 + $0x124] sm:$0xf] }
  0xc1   :  { %1078 = vmatmul.bf16.gmra.mxu0 %v3090_v55  ;;  %v3716_v55 = vld [vmem:[%s8177_s0 + $0x284] sm:$0xf0] }
  0xc2   :  { %v1373_v2 = vpop.f32.mrf.mxu1  ;;  %v3330_v58 = vor.u32 %v3716_v55, %v3329_v54 }
  0xc5   :  { %3582 = vmatmul.msk.bf16.gmra.mxu1 %vm827_vm0, %v3102_v63 }
  0xc6   :  { %v1041_v4 = vpop.f32.mrf.mxu0 }
  0xc7   :  { %v4504_v5 = vadd.f32 %v1370_v52, %v1041_v4  ;;  %v3123_v52 = vld [vmem:[%s8177_s0 + $0xe8] sm:$0xf0]  ;;  %v3664_v4 = vld [vmem:[%s8177_s0 + $0xe4] sm:$0xf0] }
  0xc8   :  { %v3126_v57 = vor.u32 %v3663_v50, %v3123_v52 }
  0xc9   :  { %8425 = vst [vmem:[#allocation9_spill] sm:$0xff] %v4504_v5 }
  0xca   :  { %v1375_v6 = vpop.f32.mrf.mxu1  ;;  %1228 = vmatmul.bf16.gmra.mxu2 %v3330_v58  ;;  %3611 = vmatmul.msk.bf16.gmra.mxu3 %vm827_vm0, %v3334_v62 }
  0xce   :  { %v1044_v10 = vpop.f32.mrf.mxu0 }
  0xcf   :  { %v4518_v13 = vadd.f32 %v1373_v2, %v1044_v10  ;;  %v4610_v10 = vpop.f32.mrf.mxu2 }
  0xd0   :  { %8430 = vst [vmem:[#allocation14_spill] sm:$0xff] %v4610_v10 }
  0xd1   :  { %1083 = vmatmul.bf16.gmra.mxu0 %v3098_v9  ;;  %v3131_v9 = vld [vmem:[%s8177_s0 + $0xf8] sm:$0xf0] }
  0xd2   :  { %v1378_v20 = vpop.f32.mrf.mxu1  ;;  %v3134_v16 = vor.u32 %v3665_v8, %v3131_v9  ;;  %v3353_v9 = vld [vmem:[%s8177_s0 + $0x2b0] sm:$0xf] }
  0xd5   :  { %3583 = vmatmul.msk.bf16.gmra.mxu1 %vm827_vm0, %v3110_v17  ;;  %v3338_v17 = vor.u32 %v3718_v14, %v3337_v12  ;;  %v3722_v12 = vld [vmem:[%s8177_s0 + $0x2b4] sm:$0xf0]  ;;  %v3721_v14 = vld [vmem:[%s8177_s0 + $0x2b4] sm:$0xf] }
  0xd6   :  { %v1046_v22 = vpop.f32.mrf.mxu0 }
  0xd7   :  { %v4534_v24 = vadd.f32 %v1375_v6, %v1046_v22  ;;  %v3122_v6 = vor.u32 %v3664_v4, %v3121_v3  ;;  %v1194_v22 = vpop.f32.mrf.mxu2  ;;  %v3147_v3 = vld [vmem:[%s8177_s0 + $0x118] sm:$0xf0] }
  0xd8   :  { %v4630_v27 = vadd.f32 %v1523_v26, %v1194_v22 }
  0xda   :  { %v1380_v25 = vpop.f32.mrf.mxu1  ;;  %1233 = vmatmul.bf16.gmra.mxu2 %v3338_v17  ;;  %8431 = vst [vmem:[#allocation15_spill] sm:$0xff] %v4630_v27  ;;  %v3355_v17 = vld [vmem:[%s8177_s0 + $0x2b8] sm:$0xf0] }
  0xde   :  { %v1049_v29 = vpop.f32.mrf.mxu0 }
  0xdf   :  { %v4548_v32 = vadd.f32 %v1378_v20, %v1049_v29  ;;  %v3342_v20 = vor.u32 %v3717_v15, %v3339_v18  ;;  %v3129_v29 = vld [vmem:[%s8177_s0 + $0xf0] sm:$0xf] }
  0xe0   :  { %v3130_v31 = vor.u32 %v3666_v30, %v3129_v29  ;;  %v3145_v30 = vld [vmem:[%s8177_s0 + $0x110] sm:$0xf] }
  0xe1   :  { %1088 = vmatmul.bf16.gmra.mxu0 %v3106_v28  ;;  %3612 = vmatmul.msk.bf16.gmra.mxu3 %vm827_vm0, %v3342_v20 }
  0xe2   :  { %v1383_v40 = vpop.f32.mrf.mxu1 }
  0xe5   :  { %3584 = vmatmul.msk.bf16.gmra.mxu1 %vm827_vm0, %v3118_v37  ;;  %v1196_v37 = vpop.f32.mrf.mxu2 }
  0xe6   :  { %v1051_v43 = vpop.f32.mrf.mxu0 }
  0xe7   :  { %v4564_v44 = vadd.f32 %v1380_v25, %v1051_v43  ;;  %v3720_v43 = vld [vmem:[%s8177_s0 + $0x2a4] sm:$0xf0] }
  0xe8   :  { %v3346_v47 = vor.u32 %v3720_v43, %v3345_v42 }
  0xe9   :  { %8426 = vst [vmem:[#allocation10_spill] sm:$0xff] %v4564_v44 }
  0xea   :  { %v1385_v45 = vpop.f32.mrf.mxu1  ;;  %1238 = vmatmul.bf16.gmra.mxu2 %v3346_v47  ;;  %v3724_v47 = vld [vmem:[%s8177_s0 + $0x2c4] sm:$0xf0] }
  0xed   :  { %v1199_v54 = vpop.f32.mrf.mxu2 }
  0xee   :  { %v1054_v49 = vpop.f32.mrf.mxu0 }
  0xef   :  { %v4578_v53 = vadd.f32 %v1383_v40, %v1054_v49  ;;  %v4646_v40 = vadd.f32 %v1525_v39, %v1196_v37  ;;  %v3155_v37 = vld [vmem:[%s8177_s0 + $0x128] sm:$0xf0] }
  0xf1   :  { %8427 = vst [vmem:[#allocation11_spill] sm:$0xff] %v4578_v53  ;;  %1093 = vmatmul.bf16.gmra.mxu0 %v3114_v48  ;;  %v3347_v48 = vld [vmem:[%s8177_s0 + $0x2a8] sm:$0xf0] }
  0xf2   :  { %v1388_v61 = vpop.f32.mrf.mxu1  ;;  %8432 = vst [vmem:[#allocation16_spill] sm:$0xff] %v4646_v40 }
  0xf5   :  { %3585 = vmatmul.msk.bf16.gmra.mxu1 %vm827_vm0, %v3126_v57  ;;  %v4664_v57 = vadd.f32 %v1528_v56, %v1199_v54  ;;  %v1201_v4 = vpop.f32.mrf.mxu2 }
  0xf6   :  { %v1056_v63 = vpop.f32.mrf.mxu0 }
  0xf7   :  { %v4596_v1 = vadd.f32 %v1385_v45, %v1056_v63  ;;  %v3719_v45 = vld [vmem:[%s8177_s0 + $0x2a4] sm:$0xf]  ;;  %8433 = vst [vmem:[#allocation17_spill] sm:$0xff] %v4664_v57 }
  0xf8   :  { %v3350_v50 = vor.u32 %v3719_v45, %v3347_v48  ;;  %v3723_v48 = vld [vmem:[%s8177_s0 + $0x2c4] sm:$0xf] }
  0xf9   :  { %8429 = vst [vmem:[#allocation13_spill] sm:$0xff] %v4596_v1 }
  0xfa   :  { %v1390_v2 = vpop.f32.mrf.mxu1  ;;  %3613 = vmatmul.msk.bf16.gmra.mxu3 %vm827_vm0, %v3350_v50 }
  0xfe   :  { %v1059_v7 = vpop.f32.mrf.mxu0 }
  0xff   :  { %v4612_v11 = vadd.f32 %v1388_v61, %v1059_v7  ;;  %v3668_v61 = vld [vmem:[%s8177_s0 + $0x104] sm:$0xf0]  ;;  %v1530_v7 = vpop.f32.mrf.mxu3 }
 0x100   :  { %v3138_v62 = vor.u32 %v3668_v61, %v3137_v60  ;;  %v4680_v8 = vadd.f32 %v1530_v7, %v1201_v4  ;;  %v3672_v4 = vld [vmem:[%s8177_s0 + $0x124] sm:$0xf0] }
 0x101   :  { %1098 = vmatmul.bf16.gmra.mxu0 %v3122_v6 }
 0x102   :  { %v1393_v19 = vpop.f32.mrf.mxu1  ;;  %8434 = vst [vmem:[#allocation18_spill] sm:$0xff] %v4680_v8 }
 0x105   :  { %3586 = vmatmul.msk.bf16.gmra.mxu1 %vm827_vm0, %v3134_v16  ;;  %v3354_v16 = vor.u32 %v3722_v12, %v3353_v9  ;;  %v3673_v12 = vld [vmem:[%s8177_s0 + $0x134] sm:$0xf] }
 0x106   :  { %v1061_v21 = vpop.f32.mrf.mxu0 }
 0x107   :  { %v4628_v25 = vadd.f32 %v1390_v2, %v1061_v21  ;;  %v3669_v2 = vld [vmem:[%s8177_s0 + $0x114] sm:$0xf]  ;;  %1243 = vmatmul.bf16.gmra.mxu2 %v3354_v16  ;;  %v1204_v21 = vpop.f32.mrf.mxu2  ;;  %v1533_v26 = vpop.f32.mrf.mxu3 }
 0x108   :  { %v3150_v15 = vor.u32 %v3669_v2, %v3147_v3  ;;  %v3153_v3 = vld [vmem:[%s8177_s0 + $0x120] sm:$0xf] }
 0x109   :  { %v3154_v7 = vor.u32 %v3672_v4, %v3153_v3  ;;  %v3728_v3 = vld [vmem:[%s8177_s0 + $0x2e4] sm:$0xf0]  ;;  %v3727_v4 = vld [vmem:[%s8177_s0 + $0x2e4] sm:$0xf] }
 0x10a   :  { %v1395_v28 = vpop.f32.mrf.mxu1 }
 0x10e   :  { %v1064_v34 = vpop.f32.mrf.mxu0 }
 0x10f   :  { %v4644_v38 = vadd.f32 %v1393_v19, %v1064_v34  ;;  %v3358_v19 = vor.u32 %v3721_v14, %v3355_v17  ;;  %v1206_v39 = vpop.f32.mrf.mxu2  ;;  %v1535_v43 = vpop.f32.mrf.mxu3  ;;  %v3163_v14 = vld [vmem:[%s8177_s0 + $0x138] sm:$0xf0] }
 0x110   :  { %v4714_v45 = vadd.f32 %v1535_v43, %v1206_v39 }
 0x111   :  { %1103 = vmatmul.bf16.gmra.mxu0 %v3130_v31  ;;  %3614 = vmatmul.msk.bf16.gmra.mxu3 %vm827_vm0, %v3358_v19  ;;  %v3670_v31 = vld [vmem:[%s8177_s0 + $0x114] sm:$0xf0]  ;;  %v3369_v19 = vld [vmem:[%s8177_s0 + $0x2d0] sm:$0xf] }
 0x112   :  { %v1398_v49 = vpop.f32.mrf.mxu1  ;;  %v3146_v34 = vor.u32 %v3670_v31, %v3145_v30  ;;  %8438 = vst [vmem:[#allocation22_spill] sm:$0xff] %v4714_v45  ;;  %v3371_v30 = vld [vmem:[%s8177_s0 + $0x2d8] sm:$0xf0] }
 0x115   :  { %3587 = vmatmul.msk.bf16.gmra.mxu1 %vm827_vm0, %v3142_v46  ;;  %v3361_v46 = vld [vmem:[%s8177_s0 + $0x2c0] sm:$0xf] }
 0x116   :  { %v1066_v52 = vpop.f32.mrf.mxu0  ;;  %v3362_v50 = vor.u32 %v3724_v47, %v3361_v46  ;;  %v3161_v47 = vld [vmem:[%s8177_s0 + $0x130] sm:$0xf] }
 0x117   :  { %v4662_v55 = vadd.f32 %v1395_v28, %v1066_v52  ;;  %v4698_v28 = vadd.f32 %v1533_v26, %v1204_v21  ;;  %v3363_v52 = vld [vmem:[%s8177_s0 + $0x2c8] sm:$0xf0]  ;;  %v1209_v60 = vpop.f32.mrf.mxu2  ;;  %v3725_v21 = vld [vmem:[%s8177_s0 + $0x2d4] sm:$0xf]  ;;  %v3166_v26 = vor.u32 %v3673_v12, %v3163_v14 }
 0x118   :  { %v3366_v56 = vor.u32 %v3723_v48, %v3363_v52  ;;  %1248 = vmatmul.bf16.gmra.mxu2 %v3362_v50  ;;  %v3674_v48 = vld [vmem:[%s8177_s0 + $0x134] sm:$0xf0]  ;;  %v3675_v52 = vld [vmem:[%s8177_s0 + $0x144] sm:$0xf]  ;;  %v3379_v12 = vld [vmem:[%s8177_s0 + $0x2e8] sm:$0xf0] }
 0x119   :  { %8436 = vst [vmem:[#allocation20_spill] sm:$0xff] %v4698_v28 }
 0x11a   :  { %v1400_v58 = vpop.f32.mrf.mxu1 }
 0x11e   :  { %v1069_v63 = vpop.f32.mrf.mxu0 }
 0x11f   :  { %v4678_v6 = vadd.f32 %v1398_v49, %v1069_v63  ;;  %v3158_v49 = vor.u32 %v3671_v36, %v3155_v37 }
 0x121   :  { %1108 = vmatmul.bf16.gmra.mxu0 %v3138_v62  ;;  %3615 = vmatmul.msk.bf16.gmra.mxu3 %vm827_vm0, %v3366_v56  ;;  %v1538_v62 = vpop.f32.mrf.mxu3 }
 0x122   :  { %v1403_v18 = vpop.f32.mrf.mxu1  ;;  %v4732_v63 = vadd.f32 %v1538_v62, %v1209_v60 }
 0x124   :  { %8440 = vst [vmem:[#allocation24_spill] sm:$0xff] %v4732_v63 }
 0x125   :  { %3588 = vmatmul.msk.bf16.gmra.mxu1 %vm827_vm0, %v3150_v15  ;;  %v1211_v15 = vpop.f32.mrf.mxu2 }
 0x126   :  { %v1071_v20 = vpop.f32.mrf.mxu0 }
 0x127   :  { %v4696_v22 = vadd.f32 %v1400_v58, %v1071_v20  ;;  %v3726_v20 = vld [vmem:[%s8177_s0 + $0x2d4] sm:$0xf0] }
 0x129   :  { %8435 = vst [vmem:[#allocation19_spill] sm:$0xff] %v4696_v22  ;;  %v1540_v17 = vpop.f32.mrf.mxu3 }
 0x12a   :  { %v1405_v29 = vpop.f32.mrf.mxu1 }
 0x12d   :  { %v1214_v36 = vpop.f32.mrf.mxu2 }
 0x12e   :  { %v1074_v35 = vpop.f32.mrf.mxu0 }
 0x12f   :  { %v4712_v42 = vadd.f32 %v1403_v18, %v1074_v35  ;;  %v4748_v18 = vadd.f32 %v1540_v17, %v1211_v15  ;;  %v3382_v15 = vor.u32 %v3727_v4, %v3379_v12 }
 0x131   :  { %8437 = vst [vmem:[#allocation21_spill] sm:$0xff] %v4712_v42  ;;  %1113 = vmatmul.bf16.gmra.mxu0 %v3146_v34  ;;  %v3374_v34 = vor.u32 %v3725_v21, %v3371_v30  ;;  %v1543_v39 = vpop.f32.mrf.mxu3  ;;  %v3169_v30 = vld [vmem:[%s8177_s0 + $0x140] sm:$0xf] }
 0x132   :  { %v1408_v54 = vpop.f32.mrf.mxu1  ;;  %8441 = vst [vmem:[#allocation25_spill] sm:$0xff] %v4748_v18  ;;  %v4766_v43 = vadd.f32 %v1543_v39, %v1214_v36  ;;  %v3677_v36 = vld [vmem:[%s8177_s0 + $0x154] sm:$0xf]  ;;  %v3179_v39 = vld [vmem:[%s8177_s0 + $0x158] sm:$0xf0] }
 0x133   :  { %3616 = vmatmul.msk.bf16.gmra.mxu3 %vm827_vm0, %v3374_v34 }
 0x134   :  { %8443 = vst [vmem:[#allocation27_spill] sm:$0xff] %v4766_v43 }
 0x135   :  { %3589 = vmatmul.msk.bf16.gmra.mxu1 %vm827_vm0, %v3158_v49  ;;  %v3162_v49 = vor.u32 %v3674_v48, %v3161_v47  ;;  %v1216_v56 = vpop.f32.mrf.mxu2 }
 0x136   :  { %v1076_v58 = vpop.f32.mrf.mxu0 }
 0x137   :  { %v4730_v61 = vadd.f32 %v1405_v29, %v1076_v58  ;;  %v3370_v29 = vor.u32 %v3726_v20, %v3369_v19 }
 0x139   :  { %8439 = vst [vmem:[#allocation23_spill] sm:$0xff] %v4730_v61  ;;  %1253 = vmatmul.bf16.gmra.mxu2 %v3370_v29  ;;  %v1545_v60 = vpop.f32.mrf.mxu3 }
 0x13a   :  { %v1410_v2 = vpop.f32.mrf.mxu1  ;;  %v4782_v62 = vadd.f32 %v1545_v60, %v1216_v56  ;;  %v3182_v56 = vor.u32 %v3677_v36, %v3179_v39 }
 0x13c   :  { %8444 = vst [vmem:[#allocation28_spill] sm:$0xff] %v4782_v62 }
 0x13d   :  { %v1219_v19 = vpop.f32.mrf.mxu2 }
 0x13e   :  { %v1079_v9 = vpop.f32.mrf.mxu0 }
 0x13f   :  { %v4746_v16 = vadd.f32 %v1408_v54, %v1079_v9  ;;  %v3171_v54 = vld [vmem:[%s8177_s0 + $0x148] sm:$0xf0] }
 0x141   :  { %1118 = vmatmul.bf16.gmra.mxu0 %v3154_v7  ;;  %v3174_v7 = vor.u32 %v3675_v52, %v3171_v54  ;;  %v1548_v21 = vpop.f32.mrf.mxu3  ;;  %v3730_v52 = vld [vmem:[%s8177_s0 + $0x2f4] sm:$0xf0]  ;;  %v3729_v54 = vld [vmem:[%s8177_s0 + $0x2f4] sm:$0xf] }
 0x142   :  { %v1413_v31 = vpop.f32.mrf.mxu1 }
 0x143   :  { %3617 = vmatmul.msk.bf16.gmra.mxu3 %vm827_vm0, %v3382_v15 }
 0x145   :  { %3590 = vmatmul.msk.bf16.gmra.mxu1 %vm827_vm0, %v3166_v26  ;;  %v4800_v26 = vadd.f32 %v1548_v21, %v1219_v19  ;;  %v3177_v19 = vld [vmem:[%s8177_s0 + $0x150] sm:$0xf]  ;;  %v3678_v21 = vld [vmem:[%s8177_s0 + $0x154] sm:$0xf0] }
 0x146   :  { %v1081_v35 = vpop.f32.mrf.mxu0 }
 0x147   :  { %v4764_v37 = vadd.f32 %v1410_v2, %v1081_v35  ;;  %v3377_v2 = vld [vmem:[%s8177_s0 + $0x2e0] sm:$0xf]  ;;  %8446 = vst [vmem:[#allocation30_spill] sm:$0xff] %v4800_v26 }
 0x148   :  { %v3378_v9 = vor.u32 %v3728_v3, %v3377_v2  ;;  %v3387_v2 = vld [vmem:[%s8177_s0 + $0x2f8] sm:$0xf0] }
 0x149   :  { %8442 = vst [vmem:[#allocation26_spill] sm:$0xff] %v4764_v37  ;;  %v1550_v48 = vpop.f32.mrf.mxu3  ;;  %v3390_v4 = vor.u32 %v3729_v54, %v3387_v2 }
 0x14a   :  { %v1415_v46 = vpop.f32.mrf.mxu1  ;;  %1258 = vmatmul.bf16.gmra.mxu2 %v3378_v9 }
 0x14e   :  { %v1084_v50 = vpop.f32.mrf.mxu0 }
 0x14f   :  { %v4780_v58 = vadd.f32 %v1413_v31, %v1084_v50  ;;  %v3676_v31 = vld [vmem:[%s8177_s0 + $0x144] sm:$0xf0]  ;;  %v3385_v50 = vld [vmem:[%s8177_s0 + $0x2f0] sm:$0xf] }
 0x150   :  { %v3170_v34 = vor.u32 %v3676_v31, %v3169_v30  ;;  %v3386_v60 = vor.u32 %v3730_v52, %v3385_v50  ;;  %v3178_v30 = vor.u32 %v3678_v21, %v3177_v19  ;;  %v3732_v50 = vld [vmem:[%s8177_s0 + $0x304] sm:$0xf0]  ;;  %v3731_v52 = vld [vmem:[%s8177_s0 + $0x304] sm:$0xf] }
 0x151   :  { %1123 = vmatmul.bf16.gmra.mxu0 %v3162_v49 }
 0x152   :  { %v1418_v14 = vpop.f32.mrf.mxu1 }
 0x153   :  { %3618 = vmatmul.msk.bf16.gmra.mxu3 %vm827_vm0, %v3390_v4 }
 0x155   :  { %3591 = vmatmul.msk.bf16.gmra.mxu1 %vm827_vm0, %v3174_v7 }
 0x156   :  { %v1086_v17 = vpop.f32.mrf.mxu0 }
 0x157   :  { %v4798_v20 = vadd.f32 %v1415_v46, %v1086_v17  ;;  %v1221_v46 = vpop.f32.mrf.mxu2 }
 0x158   :  { %v4816_v49 = vadd.f32 %v1550_v48, %v1221_v46  ;;  %v3393_v48 = vld [vmem:[%s8177_s0 + $0x300] sm:$0xf] }
 0x159   :  { %8445 = vst [vmem:[#allocation29_spill] sm:$0xff] %v4798_v20 }
 0x15a   :  { %v1420_v29 = vpop.f32.mrf.mxu1  ;;  %8448 = vst [vmem:[#allocation32_spill] sm:$0xff] %v4816_v49  ;;  %1263 = vmatmul.bf16.gmra.mxu2 %v3386_v60  ;;  %v3395_v60 = vld [vmem:[%s8177_s0 + $0x308] sm:$0xf0] }
 0x15e   :  { %v1089_v35 = vpop.f32.mrf.mxu0 }
 0x15f   :  { %v4814_v47 = vadd.f32 %v1418_v14, %v1089_v35  ;;  %v1224_v9 = vpop.f32.mrf.mxu2  ;;  %v1553_v14 = vpop.f32.mrf.mxu3 }
 0x160   :  { %v4834_v15 = vadd.f32 %v1553_v14, %v1224_v9 }
 0x161   :  { %8447 = vst [vmem:[#allocation31_spill] sm:$0xff] %v4814_v47  ;;  %1128 = vmatmul.bf16.gmra.mxu0 %v3170_v34  ;;  %v3679_v34 = vld [vmem:[%s8177_s0 + $0x164] sm:$0xf] }
 0x162   :  { %v1423_v3 = vpop.f32.mrf.mxu1  ;;  %8450 = vst [vmem:[#allocation34_spill] sm:$0xff] %v4834_v15 }
 0x165   :  { %3592 = vmatmul.msk.bf16.gmra.mxu1 %vm827_vm0, %v3182_v56  ;;  %v3394_v56 = vor.u32 %v3732_v50, %v3393_v48 }
 0x166   :  { %v1091_v7 = vpop.f32.mrf.mxu0 }
 0x167   :  { %v4832_v12 = vadd.f32 %v1420_v29, %v1091_v7  ;;  %v3187_v29 = vld [vmem:[%s8177_s0 + $0x168] sm:$0xf0]  ;;  %v1226_v35 = vpop.f32.mrf.mxu2  ;;  %v1555_v39 = vpop.f32.mrf.mxu3 }
 0x168   :  { %v4850_v46 = vadd.f32 %v1555_v39, %v1226_v35  ;;  %v3190_v54 = vor.u32 %v3679_v34, %v3187_v29  ;;  %v3681_v35 = vld [vmem:[%s8177_s0 + $0x174] sm:$0xf] }
 0x169   :  { %8449 = vst [vmem:[#allocation33_spill] sm:$0xff] %v4832_v12 }
 0x16a   :  { %v1425_v17 = vpop.f32.mrf.mxu1  ;;  %8452 = vst [vmem:[#allocation36_spill] sm:$0xff] %v4850_v46  ;;  %1268 = vmatmul.bf16.gmra.mxu2 %v3394_v56  ;;  %v3734_v56 = vld [vmem:[%s8177_s0 + $0x314] sm:$0xf0] }
 0x16e   :  { %v1094_v31 = vpop.f32.mrf.mxu0 }
 0x16f   :  { %v4848_v36 = vadd.f32 %v1423_v3, %v1094_v31  ;;  %v3398_v3 = vor.u32 %v3731_v52, %v3395_v60  ;;  %v1229_v7 = vpop.f32.mrf.mxu2  ;;  %v1558_v14 = vpop.f32.mrf.mxu3  ;;  %v3680_v31 = vld [vmem:[%s8177_s0 + $0x164] sm:$0xf0]  ;;  %v3733_v60 = vld [vmem:[%s8177_s0 + $0x314] sm:$0xf] }
 0x170   :  { %v4868_v19 = vadd.f32 %v1558_v14, %v1229_v7 }
 0x171   :  { %8451 = vst [vmem:[#allocation35_spill] sm:$0xff] %v4848_v36  ;;  %1133 = vmatmul.bf16.gmra.mxu0 %v3178_v30  ;;  %3619 = vmatmul.msk.bf16.gmra.mxu3 %vm827_vm0, %v3398_v3  ;;  %v3185_v30 = vld [vmem:[%s8177_s0 + $0x160] sm:$0xf] }
 0x172   :  { %v1428_v2 = vpop.f32.mrf.mxu1  ;;  %8454 = vst [vmem:[#allocation38_spill] sm:$0xff] %v4868_v19  ;;  %v3186_v34 = vor.u32 %v3680_v31, %v3185_v30 }
 0x175   :  { %3593 = vmatmul.msk.bf16.gmra.mxu1 %vm827_vm0, %v3190_v54  ;;  %v3401_v54 = vld [vmem:[%s8177_s0 + $0x310] sm:$0xf] }
 0x176   :  { %v1096_v4 = vpop.f32.mrf.mxu0 }
 0x177   :  { %v4866_v9 = vadd.f32 %v1425_v17, %v1096_v4  ;;  %v3195_v17 = vld [vmem:[%s8177_s0 + $0x178] sm:$0xf0]  ;;  %v1231_v39 = vpop.f32.mrf.mxu2  ;;  %v1560_v50 = vpop.f32.mrf.mxu3  ;;  %v3402_v4 = vor.u32 %v3734_v56, %v3401_v54 }
 0x178   :  { %v4884_v52 = vadd.f32 %v1560_v50, %v1231_v39  ;;  %v3198_v3 = vor.u32 %v3681_v35, %v3195_v17  ;;  %v3193_v35 = vld [vmem:[%s8177_s0 + $0x170] sm:$0xf]  ;;  %v3682_v17 = vld [vmem:[%s8177_s0 + $0x174] sm:$0xf0] }
 0x179   :  { %8453 = vst [vmem:[#allocation37_spill] sm:$0xff] %v4866_v9  ;;  %v3194_v54 = vor.u32 %v3682_v17, %v3193_v35 }
 0x17a   :  { %v1430_v21 = vpop.f32.mrf.mxu1  ;;  %8455 = vst [vmem:[#allocation39_spill] sm:$0xff] %v4884_v52  ;;  %1273 = vmatmul.bf16.gmra.mxu2 %v3402_v4 }
 0x17e   :  { %v1099_v29 = vpop.f32.mrf.mxu0 }
 0x17f   :  { %v4882_v48 = vadd.f32 %v1428_v2, %v1099_v29  ;;  %v3403_v2 = vld [vmem:[%s8177_s0 + $0x318] sm:$0xf0]  ;;  %v1234_v31 = vpop.f32.mrf.mxu2  ;;  %v1563_v39 = vpop.f32.mrf.mxu3 }
 0x180   :  { %v3406_v14 = vor.u32 %v3733_v60, %v3403_v2  ;;  %v4902_v50 = vadd.f32 %v1563_v39, %v1234_v31  ;;  %v3683_v60 = vld [vmem:[%s8177_s0 + $0x184] sm:$0xf]  ;;  %v3736_v31 = vld [vmem:[%s8177_s0 + $0x324] sm:$0xf0] }
 0x181   :  { %1138 = vmatmul.bf16.gmra.mxu0 %v3186_v34  ;;  %v3735_v39 = vld [vmem:[%s8177_s0 + $0x324] sm:$0xf] }
 0x182   :  { %v1433_v7 = vpop.f32.mrf.mxu1  ;;  %3620 = vmatmul.msk.bf16.gmra.mxu3 %vm827_vm0, %v3406_v14  ;;  %8457 = vst [vmem:[#allocation41_spill] sm:$0xff] %v4902_v50 }
 0x185   :  { %3594 = vmatmul.msk.bf16.gmra.mxu1 %vm827_vm0, %v3198_v3 }
 0x186   :  { %v1101_v30 = vpop.f32.mrf.mxu0 }
 0x187   :  { %v4900_v29 = vadd.f32 %v1430_v21, %v1101_v30  ;;  %v3203_v21 = vld [vmem:[%s8177_s0 + $0x188] sm:$0xf0]  ;;  %v1236_v3 = vpop.f32.mrf.mxu2  ;;  %v1565_v2 = vpop.f32.mrf.mxu3  ;;  %v3409_v30 = vld [vmem:[%s8177_s0 + $0x320] sm:$0xf] }
 0x188   :  { %v4918_v14 = vadd.f32 %v1565_v2, %v1236_v3  ;;  %v3206_v35 = vor.u32 %v3683_v60, %v3203_v21  ;;  %v3410_v17 = vor.u32 %v3736_v31, %v3409_v30  ;;  %v3201_v60 = vld [vmem:[%s8177_s0 + $0x180] sm:$0xf]  ;;  %v3684_v21 = vld [vmem:[%s8177_s0 + $0x184] sm:$0xf0] }
 0x189   :  { %8456 = vst [vmem:[#allocation40_spill] sm:$0xff] %v4900_v29  ;;  %v3202_v30 = vor.u32 %v3684_v21, %v3201_v60 }
 0x18a   :  { %v1435_v34 = vpop.f32.mrf.mxu1  ;;  %8459 = vst [vmem:[#allocation43_spill] sm:$0xff] %v4918_v14  ;;  %1278 = vmatmul.bf16.gmra.mxu2 %v3410_v17 }
 0x18e   :  { %v1104_v56 = vpop.f32.mrf.mxu0 }
 0x18f   :  { %v4916_v4 = vadd.f32 %v1433_v7, %v1104_v56  ;;  %v3411_v7 = vld [vmem:[%s8177_s0 + $0x328] sm:$0xf0]  ;;  %v1239_v14 = vpop.f32.mrf.mxu2  ;;  %v1568_v52 = vpop.f32.mrf.mxu3 }
 0x190   :  { %v3414_v3 = vor.u32 %v3735_v39, %v3411_v7  ;;  %v4936_v19 = vadd.f32 %v1568_v52, %v1239_v14  ;;  %v3685_v39 = vld [vmem:[%s8177_s0 + $0x194] sm:$0xf]  ;;  %v3211_v52 = vld [vmem:[%s8177_s0 + $0x198] sm:$0xf0]  ;;  %v3417_v7 = vld [vmem:[%s8177_s0 + $0x330] sm:$0xf] }
 0x191   :  { %8458 = vst [vmem:[#allocation42_spill] sm:$0xff] %v4916_v4  ;;  %1143 = vmatmul.bf16.gmra.mxu0 %v3194_v54  ;;  %v3214_v60 = vor.u32 %v3685_v39, %v3211_v52  ;;  %v3209_v39 = vld [vmem:[%s8177_s0 + $0x190] sm:$0xf]  ;;  %v3686_v52 = vld [vmem:[%s8177_s0 + $0x194] sm:$0xf0] }
 0x192   :  { %v1438_v56 = vpop.f32.mrf.mxu1  ;;  %3621 = vmatmul.msk.bf16.gmra.mxu3 %vm827_vm0, %v3414_v3  ;;  %8461 = vst [vmem:[#allocation45_spill] sm:$0xff] %v4936_v19  ;;  %v3738_v3 = vld [vmem:[%s8177_s0 + $0x334] sm:$0xf0] }
 0x193   :  { %v3418_v21 = vor.u32 %v3738_v3, %v3417_v7  ;;  %v3210_v7 = vor.u32 %v3686_v52, %v3209_v39 }
 0x195   :  { %3595 = vmatmul.msk.bf16.gmra.mxu1 %vm827_vm0, %v3206_v35 }
 0x196   :  { %v1106_v2 = vpop.f32.mrf.mxu0 }
 0x197   :  { %v4934_v50 = vadd.f32 %v1435_v34, %v1106_v2  ;;  %v1241_v34 = vpop.f32.mrf.mxu2  ;;  %v1570_v35 = vpop.f32.mrf.mxu3  ;;  %v3737_v2 = vld [vmem:[%s8177_s0 + $0x334] sm:$0xf] }
 0x198   :  { %v4952_v17 = vadd.f32 %v1570_v35, %v1241_v34 }
 0x199   :  { %8460 = vst [vmem:[#allocation44_spill] sm:$0xff] %v4934_v50 }
 0x19a   :  { %v1440_v54 = vpop.f32.mrf.mxu1  ;;  %8463 = vst [vmem:[#allocation47_spill] sm:$0xff] %v4952_v17  ;;  %1283 = vmatmul.bf16.gmra.mxu2 %v3418_v21 }
 0x19e   :  { %v1109_v31 = vpop.f32.mrf.mxu0 }
 0x19f   :  { %v4950_v14 = vadd.f32 %v1438_v56, %v1109_v31  ;;  %v3419_v56 = vld [vmem:[%s8177_s0 + $0x338] sm:$0xf0]  ;;  %v1244_v17 = vpop.f32.mrf.mxu2  ;;  %v1573_v46 = vpop.f32.mrf.mxu3 }
 0x1a0   :  { %v3422_v34 = vor.u32 %v3737_v2, %v3419_v56  ;;  %v4970_v15 = vadd.f32 %v1573_v46, %v1244_v17  ;;  %v3687_v2 = vld [vmem:[%s8177_s0 + $0x1a4] sm:$0xf]  ;;  %v3219_v46 = vld [vmem:[%s8177_s0 + $0x1a8] sm:$0xf0]  ;;  %v3425_v56 = vld [vmem:[%s8177_s0 + $0x340] sm:$0xf] }
 0x1a1   :  { %8462 = vst [vmem:[#allocation46_spill] sm:$0xff] %v4950_v14  ;;  %1148 = vmatmul.bf16.gmra.mxu0 %v3202_v30  ;;  %v3222_v39 = vor.u32 %v3687_v2, %v3219_v46  ;;  %v3217_v2 = vld [vmem:[%s8177_s0 + $0x1a0] sm:$0xf]  ;;  %v3688_v46 = vld [vmem:[%s8177_s0 + $0x1a4] sm:$0xf0] }
 0x1a2   :  { %v1443_v31 = vpop.f32.mrf.mxu1  ;;  %3622 = vmatmul.msk.bf16.gmra.mxu3 %vm827_vm0, %v3422_v34  ;;  %8465 = vst [vmem:[#allocation49_spill] sm:$0xff] %v4970_v15  ;;  %v3740_v34 = vld [vmem:[%s8177_s0 + $0x344] sm:$0xf0] }
 0x1a3   :  { %v3426_v52 = vor.u32 %v3740_v34, %v3425_v56  ;;  %v3218_v56 = vor.u32 %v3688_v46, %v3217_v2 }
 0x1a5   :  { %3596 = vmatmul.msk.bf16.gmra.mxu1 %vm827_vm0, %v3214_v60 }
 0x1a6   :  { %v1111_v35 = vpop.f32.mrf.mxu0 }
 0x1a7   :  { %v4968_v19 = vadd.f32 %v1440_v54, %v1111_v35  ;;  %v1246_v54 = vpop.f32.mrf.mxu2  ;;  %v1575_v60 = vpop.f32.mrf.mxu3  ;;  %v3739_v35 = vld [vmem:[%s8177_s0 + $0x344] sm:$0xf] }
 0x1a8   :  { %v4986_v21 = vadd.f32 %v1575_v60, %v1246_v54 }
 0x1a9   :  { %8464 = vst [vmem:[#allocation48_spill] sm:$0xff] %v4968_v19 }
 0x1aa   :  { %v1445_v30 = vpop.f32.mrf.mxu1  ;;  %8467 = vst [vmem:[#allocation51_spill] sm:$0xff] %v4986_v21  ;;  %1288 = vmatmul.bf16.gmra.mxu2 %v3426_v52 }
 0x1ae   :  { %v1114_v3 = vpop.f32.mrf.mxu0 }
 0x1af   :  { %v4984_v17 = vadd.f32 %v1443_v31, %v1114_v3  ;;  %v3427_v31 = vld [vmem:[%s8177_s0 + $0x348] sm:$0xf0]  ;;  %v1249_v21 = vpop.f32.mrf.mxu2  ;;  %v1578_v49 = vpop.f32.mrf.mxu3 }
 0x1b0   :  { %v3430_v54 = vor.u32 %v3739_v35, %v3427_v31  ;;  %v5004_v26 = vadd.f32 %v1578_v49, %v1249_v21  ;;  %v3689_v35 = vld [vmem:[%s8177_s0 + $0x1b4] sm:$0xf]  ;;  %v3227_v49 = vld [vmem:[%s8177_s0 + $0x1b8] sm:$0xf0]  ;;  %v3433_v31 = vld [vmem:[%s8177_s0 + $0x350] sm:$0xf] }
 0x1b1   :  { %8466 = vst [vmem:[#allocation50_spill] sm:$0xff] %v4984_v17  ;;  %1153 = vmatmul.bf16.gmra.mxu0 %v3210_v7  ;;  %v3230_v2 = vor.u32 %v3689_v35, %v3227_v49  ;;  %v3225_v35 = vld [vmem:[%s8177_s0 + $0x1b0] sm:$0xf]  ;;  %v3690_v49 = vld [vmem:[%s8177_s0 + $0x1b4] sm:$0xf0] }
 0x1b2   :  { %v1448_v3 = vpop.f32.mrf.mxu1  ;;  %3623 = vmatmul.msk.bf16.gmra.mxu3 %vm827_vm0, %v3430_v54  ;;  %8469 = vst [vmem:[#allocation53_spill] sm:$0xff] %v5004_v26  ;;  %v3742_v54 = vld [vmem:[%s8177_s0 + $0x354] sm:$0xf0] }
 0x1b3   :  { %v3434_v46 = vor.u32 %v3742_v54, %v3433_v31  ;;  %v3226_v31 = vor.u32 %v3690_v49, %v3225_v35 }
 0x1b5   :  { %3597 = vmatmul.msk.bf16.gmra.mxu1 %vm827_vm0, %v3222_v39 }
 0x1b6   :  { %v1116_v60 = vpop.f32.mrf.mxu0 }
 0x1b7   :  { %v5002_v15 = vadd.f32 %v1445_v30, %v1116_v60  ;;  %v1251_v30 = vpop.f32.mrf.mxu2  ;;  %v1580_v39 = vpop.f32.mrf.mxu3  ;;  %v3741_v60 = vld [vmem:[%s8177_s0 + $0x354] sm:$0xf] }
 0x1b8   :  { %v5020_v52 = vadd.f32 %v1580_v39, %v1251_v30 }
 0x1b9   :  { %8468 = vst [vmem:[#allocation52_spill] sm:$0xff] %v5002_v15 }
 0x1ba   :  { %v1450_v7 = vpop.f32.mrf.mxu1  ;;  %8470 = vst [vmem:[#allocation54_spill] sm:$0xff] %v5020_v52  ;;  %1293 = vmatmul.bf16.gmra.mxu2 %v3434_v46 }
 0x1be   :  { %v1119_v34 = vpop.f32.mrf.mxu0 }
 0x1bf   :  { %v5018_v21 = vadd.f32 %v1448_v3, %v1119_v34  ;;  %v3435_v3 = vld [vmem:[%s8177_s0 + $0x358] sm:$0xf0]  ;;  %v1254_v52 = vpop.f32.mrf.mxu2  ;;  %v1583_v62 = vpop.f32.mrf.mxu3 }
 0x1c0   :  { %v3438_v30 = vor.u32 %v3741_v60, %v3435_v3  ;;  %v5038_v43 = vadd.f32 %v1583_v62, %v1254_v52  ;;  %v3691_v60 = vld [vmem:[%s8177_s0 + $0x1c4] sm:$0xf]  ;;  %v3235_v62 = vld [vmem:[%s8177_s0 + $0x1c8] sm:$0xf0]  ;;  %v3441_v3 = vld [vmem:[%s8177_s0 + $0x360] sm:$0xf] }
 0x1c1   :  { %1158 = vmatmul.bf16.gmra.mxu0 %v3218_v56  ;;  %v3238_v35 = vor.u32 %v3691_v60, %v3235_v62  ;;  %v3233_v60 = vld [vmem:[%s8177_s0 + $0x1c0] sm:$0xf]  ;;  %v3692_v62 = vld [vmem:[%s8177_s0 + $0x1c4] sm:$0xf0] }
 0x1c2   :  { %v1453_v34 = vpop.f32.mrf.mxu1  ;;  %3624 = vmatmul.msk.bf16.gmra.mxu3 %vm827_vm0, %v3438_v30  ;;  %8472 = vst [vmem:[#allocation56_spill] sm:$0xff] %v5038_v43  ;;  %v3744_v30 = vld [vmem:[%s8177_s0 + $0x364] sm:$0xf0] }
 0x1c3   :  { %v3442_v49 = vor.u32 %v3744_v30, %v3441_v3  ;;  %v3234_v3 = vor.u32 %v3692_v62, %v3233_v60 }
 0x1c5   :  { %3598 = vmatmul.msk.bf16.gmra.mxu1 %vm827_vm0, %v3230_v2 }
 0x1c6   :  { %v1121_v39 = vpop.f32.mrf.mxu0 }
 0x1c7   :  { %v5036_v26 = vadd.f32 %v1450_v7, %v1121_v39  ;;  %v1256_v7 = vpop.f32.mrf.mxu2  ;;  %v1585_v2 = vpop.f32.mrf.mxu3  ;;  %v3743_v39 = vld [vmem:[%s8177_s0 + $0x364] sm:$0xf] }
 0x1c8   :  { %v5054_v46 = vadd.f32 %v1585_v2, %v1256_v7 }
 0x1c9   :  { %8471 = vst [vmem:[#allocation55_spill] sm:$0xff] %v5036_v26 }
 0x1ca   :  { %v1455_v56 = vpop.f32.mrf.mxu1  ;;  %8474 = vst [vmem:[#allocation58_spill] sm:$0xff] %v5054_v46  ;;  %1298 = vmatmul.bf16.gmra.mxu2 %v3442_v49 }
 0x1ce   :  { %v1124_v54 = vpop.f32.mrf.mxu0 }
 0x1cf   :  { %v5052_v52 = vadd.f32 %v1453_v34, %v1124_v54  ;;  %v3443_v34 = vld [vmem:[%s8177_s0 + $0x368] sm:$0xf0]  ;;  %v1259_v46 = vpop.f32.mrf.mxu2  ;;  %v1588_v18 = vpop.f32.mrf.mxu3 }
 0x1d0   :  { %v3446_v7 = vor.u32 %v3743_v39, %v3443_v34  ;;  %v5072_v63 = vadd.f32 %v1588_v18, %v1259_v46  ;;  %v3693_v39 = vld [vmem:[%s8177_s0 + $0x1d4] sm:$0xf]  ;;  %v3243_v18 = vld [vmem:[%s8177_s0 + $0x1d8] sm:$0xf0]  ;;  %v3449_v34 = vld [vmem:[%s8177_s0 + $0x370] sm:$0xf] }
 0x1d1   :  { %8473 = vst [vmem:[#allocation57_spill] sm:$0xff] %v5052_v52  ;;  %1163 = vmatmul.bf16.gmra.mxu0 %v3226_v31  ;;  %v3246_v60 = vor.u32 %v3693_v39, %v3243_v18  ;;  %v3241_v39 = vld [vmem:[%s8177_s0 + $0x1d0] sm:$0xf]  ;;  %v3694_v18 = vld [vmem:[%s8177_s0 + $0x1d4] sm:$0xf0] }
 0x1d2   :  { %v1458_v54 = vpop.f32.mrf.mxu1  ;;  %3625 = vmatmul.msk.bf16.gmra.mxu3 %vm827_vm0, %v3446_v7  ;;  %8475 = vst [vmem:[#allocation59_spill] sm:$0xff] %v5072_v63  ;;  %v3746_v7 = vld [vmem:[%s8177_s0 + $0x374] sm:$0xf0] }
 0x1d3   :  { %v3450_v62 = vor.u32 %v3746_v7, %v3449_v34  ;;  %v3242_v34 = vor.u32 %v3694_v18, %v3241_v39 }
 0x1d5   :  { %3599 = vmatmul.msk.bf16.gmra.mxu1 %vm827_vm0, %v3238_v35 }
 0x1d6   :  { %v1126_v2 = vpop.f32.mrf.mxu0 }
 0x1d7   :  { %v5070_v43 = vadd.f32 %v1455_v56, %v1126_v2  ;;  %v1261_v56 = vpop.f32.mrf.mxu2  ;;  %v1590_v35 = vpop.f32.mrf.mxu3  ;;  %v3745_v2 = vld [vmem:[%s8177_s0 + $0x374] sm:$0xf] }
 0x1d8   :  { %v5088_v49 = vadd.f32 %v1590_v35, %v1261_v56 }
 0x1da   :  { %v1460_v31 = vpop.f32.mrf.mxu1  ;;  %8477 = vst [vmem:[#allocation61_spill] sm:$0xff] %v5088_v49  ;;  %1303 = vmatmul.bf16.gmra.mxu2 %v3450_v62 }
 0x1de   :  { %v1129_v30 = vpop.f32.mrf.mxu0 }
 0x1df   :  { %v5086_v46 = vadd.f32 %v1458_v54, %v1129_v30  ;;  %v3451_v54 = vld [vmem:[%s8177_s0 + $0x378] sm:$0xf0]  ;;  %v1264_v49 = vpop.f32.mrf.mxu2  ;;  %v1593_v45 = vpop.f32.mrf.mxu3 }
 0x1e0   :  { %v3454_v56 = vor.u32 %v3745_v2, %v3451_v54  ;;  %v5106_v28 = vadd.f32 %v1593_v45, %v1264_v49  ;;  %v3695_v2 = vld [vmem:[%s8177_s0 + $0x1e4] sm:$0xf]  ;;  %v3251_v45 = vld [vmem:[%s8177_s0 + $0x1e8] sm:$0xf0]  ;;  %v3457_v54 = vld [vmem:[%s8177_s0 + $0x380] sm:$0xf] }
 0x1e1   :  { %8476 = vst [vmem:[#allocation60_spill] sm:$0xff] %v5086_v46  ;;  %1168 = vmatmul.bf16.gmra.mxu0 %v3234_v3  ;;  %v3254_v39 = vor.u32 %v3695_v2, %v3251_v45  ;;  %v3249_v2 = vld [vmem:[%s8177_s0 + $0x1e0] sm:$0xf]  ;;  %v3696_v45 = vld [vmem:[%s8177_s0 + $0x1e4] sm:$0xf0] }
 0x1e2   :  { %v1463_v30 = vpop.f32.mrf.mxu1  ;;  %3626 = vmatmul.msk.bf16.gmra.mxu3 %vm827_vm0, %v3454_v56  ;;  %8479 = vst [vmem:[#allocation63_spill] sm:$0xff] %v5106_v28  ;;  %v3748_v56 = vld [vmem:[%s8177_s0 + $0x384] sm:$0xf0] }
 0x1e3   :  { %v3458_v18 = vor.u32 %v3748_v56, %v3457_v54  ;;  %v3250_v54 = vor.u32 %v3696_v45, %v3249_v2 }
 0x1e5   :  { %3600 = vmatmul.msk.bf16.gmra.mxu1 %vm827_vm0, %v3246_v60 }
 0x1e6   :  { %v1131_v35 = vpop.f32.mrf.mxu0 }
 0x1e7   :  { %v5104_v63 = vadd.f32 %v1460_v31, %v1131_v35  ;;  %v1266_v31 = vpop.f32.mrf.mxu2  ;;  %v1595_v60 = vpop.f32.mrf.mxu3  ;;  %v3747_v35 = vld [vmem:[%s8177_s0 + $0x384] sm:$0xf] }
 0x1e8   :  { %v5122_v62 = vadd.f32 %v1595_v60, %v1266_v31 }
 0x1e9   :  { %8478 = vst [vmem:[#allocation62_spill] sm:$0xff] %v5104_v63 }
 0x1ea   :  { %v1465_v3 = vpop.f32.mrf.mxu1  ;;  %8480 = vst [vmem:[#allocation64_spill] sm:$0xff] %v5122_v62  ;;  %1308 = vmatmul.bf16.gmra.mxu2 %v3458_v18 }
 0x1ee   :  { %v1134_v7 = vpop.f32.mrf.mxu0 }
 0x1ef   :  { %v5120_v49 = vadd.f32 %v1463_v30, %v1134_v7  ;;  %v3459_v30 = vld [vmem:[%s8177_s0 + $0x388] sm:$0xf0]  ;;  %v1269_v62 = vpop.f32.mrf.mxu2 }
 0x1f0   :  { %v3462_v31 = vor.u32 %v3747_v35, %v3459_v30  ;;  %v3697_v35 = vld [vmem:[%s8177_s0 + $0x1f4] sm:$0xf]  ;;  %v3465_v30 = vld [vmem:[%s8177_s0 + $0x390] sm:$0xf] }
 0x1f1   :  { %1173 = vmatmul.bf16.gmra.mxu0 %v3242_v34 }
 0x1f2   :  { %v1468_v7 = vpop.f32.mrf.mxu1  ;;  %3627 = vmatmul.msk.bf16.gmra.mxu3 %vm827_vm0, %v3462_v31  ;;  %v3750_v31 = vld [vmem:[%s8177_s0 + $0x394] sm:$0xf0] }
 0x1f3   :  { %v3466_v45 = vor.u32 %v3750_v31, %v3465_v30 }
 0x1f4   :  { %v1598_v8 = vpop.f32.mrf.mxu3 }
 0x1f5   :  { %3601 = vmatmul.msk.bf16.gmra.mxu1 %vm827_vm0, %v3254_v39  ;;  %v5140_v57 = vadd.f32 %v1598_v8, %v1269_v62  ;;  %v3259_v8 = vld [vmem:[%s8177_s0 + $0x1f8] sm:$0xf0] }
 0x1f6   :  { %v1136_v60 = vpop.f32.mrf.mxu0  ;;  %v3262_v2 = vor.u32 %v3697_v35, %v3259_v8  ;;  %v3257_v35 = vld [vmem:[%s8177_s0 + $0x1f0] sm:$0xf]  ;;  %v3698_v8 = vld [vmem:[%s8177_s0 + $0x1f4] sm:$0xf0] }
 0x1f7   :  { %v5138_v28 = vadd.f32 %v1465_v3, %v1136_v60  ;;  %8482 = vst [vmem:[#allocation66_spill] sm:$0xff] %v5140_v57  ;;  %v1271_v3 = vpop.f32.mrf.mxu2  ;;  %v3749_v60 = vld [vmem:[%s8177_s0 + $0x394] sm:$0xf]  ;;  %v3258_v30 = vor.u32 %v3698_v8, %v3257_v35 }
 0x1f9   :  { %8481 = vst [vmem:[#allocation65_spill] sm:$0xff] %v5138_v28 }
 0x1fa   :  { %v1470_v34 = vpop.f32.mrf.mxu1  ;;  %1313 = vmatmul.bf16.gmra.mxu2 %v3466_v45 }
 0x1fc   :  { %v1600_v39 = vpop.f32.mrf.mxu3 }
 0x1fd   :  { %v5156_v18 = vadd.f32 %v1600_v39, %v1271_v3 }
 0x1fe   :  { %v1139_v56 = vpop.f32.mrf.mxu0 }
 0x1ff   :  { %v5154_v62 = vadd.f32 %v1468_v7, %v1139_v56  ;;  %8484 = vst [vmem:[#allocation68_spill] sm:$0xff] %v5156_v18  ;;  %v3467_v7 = vld [vmem:[%s8177_s0 + $0x398] sm:$0xf0]  ;;  %v1274_v18 = vpop.f32.mrf.mxu2 }
 0x200   :  { %v3470_v3 = vor.u32 %v3749_v60, %v3467_v7  ;;  %v3699_v60 = vld [vmem:[%s8177_s0 + $0x204] sm:$0xf]  ;;  %v3473_v7 = vld [vmem:[%s8177_s0 + $0x3a0] sm:$0xf] }
 0x201   :  { %8483 = vst [vmem:[#allocation67_spill] sm:$0xff] %v5154_v62  ;;  %1178 = vmatmul.bf16.gmra.mxu0 %v3250_v54 }
 0x202   :  { %v1473_v56 = vpop.f32.mrf.mxu1  ;;  %3628 = vmatmul.msk.bf16.gmra.mxu3 %vm827_vm0, %v3470_v3  ;;  %v3752_v3 = vld [vmem:[%s8177_s0 + $0x3a4] sm:$0xf0] }
 0x203   :  { %v3474_v8 = vor.u32 %v3752_v3, %v3473_v7 }
 0x205   :  { %3602 = vmatmul.msk.bf16.gmra.mxu1 %vm827_vm0, %v3262_v2  ;;  %v1603_v40 = vpop.f32.mrf.mxu3 }
 0x206   :  { %v1141_v39 = vpop.f32.mrf.mxu0  ;;  %v5174_v27 = vadd.f32 %v1603_v40, %v1274_v18  ;;  %v3267_v40 = vld [vmem:[%s8177_s0 + $0x208] sm:$0xf0] }
 0x207   :  { %v5172_v57 = vadd.f32 %v1470_v34, %v1141_v39  ;;  %v1276_v34 = vpop.f32.mrf.mxu2  ;;  %v3751_v39 = vld [vmem:[%s8177_s0 + $0x3a4] sm:$0xf]  ;;  %v3270_v35 = vor.u32 %v3699_v60, %v3267_v40  ;;  %v1680_v60 = vadd.f32 %v4444_v33, %v4428_v23 }
 0x208   :  { %8486 = vst [vmem:[#allocation70_spill] sm:$0xff] %v5174_v27 }
 0x209   :  { %8485 = vst [vmem:[#allocation69_spill] sm:$0xff] %v5172_v57  ;;  %v1681_v3 = vadd.f32 %v1680_v60, %v4458_v41 }
 0x20a   :  { %v1475_v54 = vpop.f32.mrf.mxu1  ;;  %1318 = vmatmul.bf16.gmra.mxu2 %v3474_v8 }
 0x20d   :  { %v1605_v2 = vpop.f32.mrf.mxu3 }
 0x20e   :  { %v1144_v31 = vpop.f32.mrf.mxu0  ;;  %v5190_v45 = vadd.f32 %v1605_v2, %v1276_v34 }
 0x20f   :  { %v5188_v18 = vadd.f32 %v1473_v56, %v1144_v31  ;;  %v3475_v56 = vld [vmem:[%s8177_s0 + $0x3a8] sm:$0xf0] }
 0x210   :  { %8487 = vst [vmem:[#allocation71_spill] sm:$0xff] %v5190_v45  ;;  %v3478_v34 = vor.u32 %v3751_v39, %v3475_v56  ;;  %v1279_v45 = vpop.f32.mrf.mxu2 }
 0x211   :  { %1183 = vmatmul.bf16.gmra.mxu0 %v3258_v30 }
 0x212   :  { %v1478_v31 = vpop.f32.mrf.mxu1  ;;  %3629 = vmatmul.msk.bf16.gmra.mxu3 %vm827_vm0, %v3478_v34 }
 0x215   :  { %3603 = vmatmul.msk.bf16.gmra.mxu1 %vm827_vm0, %v3270_v35  ;;  %v1608_v10 = vpop.f32.mrf.mxu3  ;;  %v1682_v35 = vadd.f32 %v1681_v3, %v4474_v51 }
 0x216   :  { %v1146_v2 = vpop.f32.mrf.mxu0  ;;  %v5208_v0 = vadd.f32 %v1608_v10, %v1279_v45  ;;  %v3754_v10 = vld [vmem:[%s8177_s0 + $0x3b4] sm:$0xf0]  ;;  %v3753_v45 = vld [vmem:[%s8177_s0 + $0x3b4] sm:$0xf] }
 0x217   :  { %v5206_v27 = vadd.f32 %v1475_v54, %v1146_v2  ;;  %v3481_v54 = vld [vmem:[%s8177_s0 + $0x3b0] sm:$0xf] }
 0x218   :  { %v1281_v7 = vpop.f32.mrf.mxu2  ;;  %v3482_v34 = vor.u32 %v3754_v10, %v3481_v54 }
 0x21a   :  { %v1480_v30 = vpop.f32.mrf.mxu1  ;;  %1323 = vmatmul.bf16.gmra.mxu2 %v3482_v34 }
 0x21d   :  { %v1610_v8 = vpop.f32.mrf.mxu3 }
 0x21e   :  { %v1149_v40 = vpop.f32.mrf.mxu0  ;;  %v5215_v56 = vadd.f32 %v1610_v8, %v1281_v7 }
 0x21f   :  { %v5213_v39 = vadd.f32 %v1478_v31, %v1149_v40  ;;  %v3483_v31 = vld [vmem:[%s8177_s0 + $0x3b8] sm:$0xf0]  ;;  %v1683_v40 = vadd.f32 %v1682_v35, %v4488_v59 }
 0x220   :  { %8488 = vst [vmem:[#allocation72_spill] sm:$0xff] %v5215_v56  ;;  %v3486_v60 = vor.u32 %v3753_v45, %v3483_v31  ;;  %v1284_v41 = vpop.f32.mrf.mxu2 }
 0x221   :  { %v1684_v7 = vadd.f32 %v1683_v40, %v4504_v5 }
 0x222   :  { %v1483_v2 = vpop.f32.mrf.mxu1  ;;  %3630 = vmatmul.msk.bf16.gmra.mxu3 %vm827_vm0, %v3486_v60 }
 0x223   :  { %v1685_v33 = vadd.f32 %v1684_v7, %v4518_v13 }
 0x225   :  { %v1613_v3 = vpop.f32.mrf.mxu3  ;;  %v1686_v54 = vadd.f32 %v1685_v33, %v4534_v24  ;;  %v3489_v33 = vld [vmem:[%s8177_s0 + $0x3c0] sm:$0xf] }
 0x226   :  { %v1151_v8 = vpop.f32.mrf.mxu0  ;;  %v5237_v10 = vadd.f32 %v1613_v3, %v1284_v41  ;;  %v3756_v41 = vld [vmem:[%s8177_s0 + $0x3c4] sm:$0xf0] }
 0x227   :  { %v5234_v23 = vadd.f32 %v1480_v30, %v1151_v8  ;;  %v1687_v45 = vadd.f32 %v1686_v54, %v4548_v32  ;;  %v3755_v30 = vld [vmem:[%s8177_s0 + $0x3c4] sm:$0xf]  ;;  %v3490_v3 = vor.u32 %v3756_v41, %v3489_v33 }
 0x228   :  { %8489 = vst [vmem:[#allocation73_spill] sm:$0xff] %v5237_v10  ;;  %v1286_v31 = vpop.f32.mrf.mxu2 }
 0x229   :  { %v1688_v35 = vadd.f32 %v1687_v45, %v4564_v44 }
 0x22a   :  { %v1485_v51 = vpop.f32.mrf.mxu1  ;;  %1328 = vmatmul.bf16.gmra.mxu2 %v3490_v3 }
 0x22b   :  { %v1689_v60 = vadd.f32 %v1688_v35, %v4578_v53 }
 0x22d   :  { %v1615_v5 = vpop.f32.mrf.mxu3  ;;  %v1690_v8 = vadd.f32 %v1689_v60, %v4596_v1 }
 0x22e   :  { %v1154_v34 = vpop.f32.mrf.mxu0  ;;  %v5244_v7 = vadd.f32 %v1615_v5, %v1286_v31  ;;  %v3491_v5 = vld [vmem:[%s8177_s0 + $0x3c8] sm:$0xf0] }
 0x22f   :  { %v5242_v40 = vadd.f32 %v1483_v2, %v1154_v34  ;;  %v3494_v54 = vor.u32 %v3755_v30, %v3491_v5  ;;  %v1691_v45 = vadd.f32 %v1690_v8, %v4612_v11 }
 0x230   :  { %v1289_v31 = vpop.f32.mrf.mxu2 }
 0x231   :  { %v1692_v35 = vadd.f32 %v1691_v45, %v4628_v25 }
 0x232   :  { %v1488_v2 = vpop.f32.mrf.mxu1  ;;  %3631 = vmatmul.msk.bf16.gmra.mxu3 %vm827_vm0, %v3494_v54 }
 0x233   :  { %v1693_v53 = vadd.f32 %v1692_v35, %v4644_v38 }
 0x235   :  { %v1618_v60 = vpop.f32.mrf.mxu3  ;;  %v1694_v33 = vadd.f32 %v1693_v53, %v4662_v55  ;;  %v3497_v53 = vld [vmem:[%s8177_s0 + $0x3d0] sm:$0xf] }
 0x236   :  { %v1156_v34 = vpop.f32.mrf.mxu0  ;;  %v5266_v41 = vadd.f32 %v1618_v60, %v1289_v31  ;;  %v3757_v31 = vld [vmem:[%s8177_s0 + $0x3d4] sm:$0xf] }
 0x237   :  { %v5263_v44 = vadd.f32 %v1485_v51, %v1156_v34  ;;  %v1695_v30 = vadd.f32 %v1694_v33, %v4678_v6  ;;  %v3758_v34 = vld [vmem:[%s8177_s0 + $0x3d4] sm:$0xf0] }
 0x238   :  { %8490 = vst [vmem:[#allocation74_spill] sm:$0xff] %v5266_v41  ;;  %v1291_v5 = vpop.f32.mrf.mxu2  ;;  %v3498_v33 = vor.u32 %v3758_v34, %v3497_v53 }
 0x239   :  { %v1696_v8 = vadd.f32 %v1695_v30, %v4696_v22 }
 0x23a   :  { %v5268_v1 = vpop.f32.mrf.mxu1  ;;  %1333 = vmatmul.bf16.gmra.mxu2 %v3498_v33 }
 0x23b   :  { %v1697_v54 = vadd.f32 %v1696_v8, %v4712_v42 }
 0x23d   :  { %v1620_v35 = vpop.f32.mrf.mxu3  ;;  %v1698_v60 = vadd.f32 %v1697_v54, %v4730_v61 }
 0x23e   :  { %v1159_v3 = vpop.f32.mrf.mxu0  ;;  %v5275_v51 = vadd.f32 %v1620_v35, %v1291_v5 }
 0x23f   :  { %v5273_v45 = vadd.f32 %v1488_v2, %v1159_v3  ;;  %v3499_v2 = vld [vmem:[%s8177_s0 + $0x3d8] sm:$0xf0]  ;;  %v1699_v3 = vadd.f32 %v1698_v60, %v4746_v16 }
 0x240   :  { %8492 = vst [vmem:[#allocation76_spill] sm:$0xff] %v5275_v51  ;;  %v3502_v8 = vor.u32 %v3757_v31, %v3499_v2  ;;  %v1294_v42 = vpop.f32.mrf.mxu2 }
 0x241   :  { %8491 = vst [vmem:[#allocation75_spill] sm:$0xff] %v5273_v45  ;;  %v1700_v5 = vadd.f32 %v1699_v3, %v4764_v37 }
 0x242   :  { %v5290_v30 = vpop.f32.mrf.mxu1  ;;  %3632 = vmatmul.msk.bf16.gmra.mxu3 %vm827_vm0, %v3502_v8 }
 0x243   :  { %v1701_v54 = vadd.f32 %v1700_v5, %v4780_v58  ;;  %v3505_v5 = vld [vmem:[%s8177_s0 + $0x3e0] sm:$0xf] }
 0x245   :  { %v1623_v53 = vpop.f32.mrf.mxu3  ;;  %v1702_v34 = vadd.f32 %v1701_v54, %v4798_v20  ;;  %v3759_v54 = vld [vmem:[%s8177_s0 + $0x3e4] sm:$0xf] }
 0x246   :  { %v5295_v35 = vpop.f32.mrf.mxu0  ;;  %v5299_v61 = vadd.f32 %v1623_v53, %v1294_v42  ;;  %v3760_v42 = vld [vmem:[%s8177_s0 + $0x3e4] sm:$0xf0] }
 0x247   :  { %v1703_v31 = vadd.f32 %v1702_v34, %v4814_v47  ;;  %v3506_v34 = vor.u32 %v3760_v42, %v3505_v5 }
 0x248   :  { %8493 = vst [vmem:[#allocation77_spill] sm:$0xff] %v5299_v61  ;;  %v1296_v2 = vpop.f32.mrf.mxu2 }
 0x249   :  { %v1704_v60 = vadd.f32 %v1703_v31, %v4832_v12  ;;  %v3507_v31 = vld [vmem:[%s8177_s0 + $0x3e8] sm:$0xf0] }
 0x24a   :  { %v5301_v22 = vpop.f32.mrf.mxu1  ;;  %1338 = vmatmul.bf16.gmra.mxu2 %v3506_v34 }
 0x24b   :  { %v1705_v8 = vadd.f32 %v1704_v60, %v4848_v36 }
 0x24d   :  { %v1625_v3 = vpop.f32.mrf.mxu3  ;;  %v1706_v53 = vadd.f32 %v1705_v8, %v4866_v9 }
 0x24e   :  { %v5305_v33 = vpop.f32.mrf.mxu0  ;;  %v5308_v37 = vadd.f32 %v1625_v3, %v1296_v2  ;;  %v3510_v2 = vor.u32 %v3759_v54, %v3507_v31 }
 0x24f   :  { %v1707_v3 = vadd.f32 %v1706_v53, %v4882_v48 }
 0x250   :  { %8494 = vst [vmem:[#allocation78_spill] sm:$0xff] %v5308_v37  ;;  %v1299_v47 = vpop.f32.mrf.mxu2 }
 0x251   :  { %v1708_v36 = vadd.f32 %v1707_v3, %v4900_v29 }
 0x252   :  { %v5323_v60 = vpop.f32.mrf.mxu1  ;;  %3633 = vmatmul.msk.bf16.gmra.mxu3 %vm827_vm0, %v3510_v2 }
 0x253   :  { %v1709_v8 = vadd.f32 %v1708_v36, %v4916_v4  ;;  %v3513_v36 = vld [vmem:[%s8177_s0 + $0x3f0] sm:$0xf] }
 0x255   :  { %v1628_v5 = vpop.f32.mrf.mxu3  ;;  %v1710_v42 = vadd.f32 %v1709_v8, %v4934_v50  ;;  %v3761_v8 = vld [vmem:[%s8177_s0 + $0x3f4] sm:$0xf] }
 0x256   :  { %v5328_v12 = vpop.f32.mrf.mxu0  ;;  %v5332_v9 = vadd.f32 %v1628_v5, %v1299_v47  ;;  %v3762_v47 = vld [vmem:[%s8177_s0 + $0x3f4] sm:$0xf0] }
 0x257   :  { %v1711_v54 = vadd.f32 %v1710_v42, %v4950_v14  ;;  %v3514_v42 = vor.u32 %v3762_v47, %v3513_v36 }
 0x258   :  { %8495 = vst [vmem:[#allocation79_spill] sm:$0xff] %v5332_v9  ;;  %v1301_v31 = vpop.f32.mrf.mxu2 }
 0x259   :  { %v1712_v53 = vadd.f32 %v1711_v54, %v4968_v19  ;;  %v3515_v54 = vld [vmem:[%s8177_s0 + $0x3f8] sm:$0xf0] }
 0x25a   :  { %v5334_v20 = vpop.f32.mrf.mxu1  ;;  %1343 = vmatmul.bf16.gmra.mxu2 %v3514_v42 }
 0x25b   :  { %v1713_v2 = vadd.f32 %v1712_v53, %v4984_v17 }
 0x25d   :  { %v1630_v3 = vpop.f32.mrf.mxu3  ;;  %v1714_v5 = vadd.f32 %v1713_v2, %v5002_v15 }
 0x25e   :  { %v1169_v34 = vpop.f32.mrf.mxu0  ;;  %v5339_v29 = vadd.f32 %v1630_v3, %v1301_v31  ;;  %v3518_v31 = vor.u32 %v3761_v8, %v3515_v54 }
 0x25f   :  { %v1715_v3 = vadd.f32 %v1714_v5, %v5018_v21 }
 0x260   :  { %8496 = vst [vmem:[#allocation80_spill] sm:$0xff] %v5339_v29  ;;  %v1304_v14 = vpop.f32.mrf.mxu2 }
 0x261   :  { %v1716_v17 = vadd.f32 %v1715_v3, %v5036_v26 }
 0x262   :  { %v1503_v53 = vpop.f32.mrf.mxu1  ;;  %3634 = vmatmul.msk.bf16.gmra.mxu3 %vm827_vm0, %v3518_v31 }
 0x263   :  { %v1717_v50 = vadd.f32 %v1716_v17, %v5052_v52 }
 0x265   :  { %v1633_v4 = vpop.f32.mrf.mxu3  ;;  %v1718_v2 = vadd.f32 %v1717_v50, %v5070_v43 }
 0x266   :  { %v1171_v19 = vpop.f32.mrf.mxu0  ;;  %v5359_v36 = vadd.f32 %v1633_v4, %v1304_v14 }
 0x267   :  { %v1719_v15 = vadd.f32 %v1718_v2, %v5086_v46 }
 0x268   :  { %8497 = vst [vmem:[#allocation81_spill] sm:$0xff] %v5359_v36  ;;  %v1306_v42 = vpop.f32.mrf.mxu2 }
 0x269   :  { %v1720_v8 = vadd.f32 %v1719_v15, %v5104_v63 }
 0x26a   :  { %v1505_v47 = vpop.f32.mrf.mxu1 }
 0x26b   :  { %v1721_v54 = vadd.f32 %v1720_v8, %v5120_v49 }
 0x26d   :  { %v1635_v31 = vpop.f32.mrf.mxu3  ;;  %v1722_v26 = vadd.f32 %v1721_v54, %v5138_v28 }
 0x26e   :  { %v1174_v5 = vpop.f32.mrf.mxu0  ;;  %v5364_v3 = vadd.f32 %v1635_v31, %v1306_v42 }
 0x26f   :  { %v1723_v52 = vadd.f32 %v1722_v26, %v5154_v62 }
 0x270   :  { %8498 = vst [vmem:[#allocation82_spill] sm:$0xff] %v5364_v3  ;;  %v1309_v14 = vpop.f32.mrf.mxu2 }
 0x271   :  { %v1724_v50 = vadd.f32 %v1723_v52, %v5172_v57 }
 0x272   :  { %v1508_v17 = vpop.f32.mrf.mxu1 }
 0x273   :  { %v1725_v2 = vadd.f32 %v1724_v50, %v5188_v18  ;;  %v5381_v50 = vadd.f32 %v5268_v1, %v5295_v35  ;;  %v5395_v1 = vadd.f32 %v5323_v60, %v1169_v34 }
 0x275   :  { %v1638_v46 = vpop.f32.mrf.mxu3  ;;  %v1726_v15 = vadd.f32 %v1725_v2, %v5206_v27  ;;  %8501 = vst [vmem:[#allocation85_spill] sm:$0xff] %v5381_v50  ;;  %v5386_v2 = vadd.f32 %v5290_v30, %v5305_v33 }
 0x276   :  { %v1176_v4 = vpop.f32.mrf.mxu0  ;;  %v5371_v63 = vadd.f32 %v1638_v46, %v1309_v14  ;;  %8504 = vst [vmem:[#allocation88_spill] sm:$0xff] %v5395_v1 }
 0x277   :  { %v1727_v42 = vadd.f32 %v1726_v15, %v5213_v39  ;;  %8502 = vst [vmem:[#allocation86_spill] sm:$0xff] %v5386_v2 }
 0x278   :  { %8499 = vst [vmem:[#allocation83_spill] sm:$0xff] %v5371_v63  ;;  %v1311_v28 = vpop.f32.mrf.mxu2 }
 0x279   :  { %v1728_v31 = vadd.f32 %v1727_v42, %v5234_v23  ;;  %v5391_v42 = vadd.f32 %v5301_v22, %v5328_v12  ;;  %v5405_v12 = vadd.f32 %v1505_v47, %v1176_v4 }
 0x27a   :  { %v1510_v8 = vpop.f32.mrf.mxu1 }
 0x27b   :  { %v1729_v26 = vadd.f32 %v1728_v31, %v5242_v40  ;;  %8503 = vst [vmem:[#allocation87_spill] sm:$0xff] %v5391_v42 }
 0x27c   :  { %8507 = vst [vmem:[#allocation91_spill] sm:$0xff] %v5405_v12 }
 0x27d   :  { %v1640_v62 = vpop.f32.mrf.mxu3  ;;  %v1730_v57 = vadd.f32 %v1729_v26, %v5263_v44  ;;  %v5399_v26 = vadd.f32 %v5334_v20, %v1171_v19 }
 0x27e   :  { %v1179_v54 = vpop.f32.mrf.mxu0  ;;  %v5376_v52 = vadd.f32 %v1640_v62, %v1311_v28 }
 0x27f   :  { %v1731_v14 = vadd.f32 %v1730_v57, %v5273_v45  ;;  %8505 = vst [vmem:[#allocation89_spill] sm:$0xff] %v5399_v26  ;;  %v5408_v34 = vadd.f32 %v1508_v17, %v1179_v54  ;;  %v8549_v45 = vld [vmem:[#allocation66_spill] sm:$0xff] }
 0x280   :  { %8500 = vst [vmem:[#allocation84_spill] sm:$0xff] %v5376_v52  ;;  %v1314_v62 = vpop.f32.mrf.mxu2 }
 0x281   :  { %v1732_v15 = vadd.f32 %v1731_v14, %v5381_v50  ;;  %v5402_v14 = vadd.f32 %v1503_v53, %v1174_v5  ;;  %8508 = vst [vmem:[#allocation92_spill] sm:$0xff] %v5408_v34 }
 0x282   :  { %v1513_v46 = vpop.f32.mrf.mxu1 }
 0x283   :  { %v1733_v31 = vadd.f32 %v1732_v15, %v5386_v2  ;;  %8506 = vst [vmem:[#allocation90_spill] sm:$0xff] %v5402_v14 }
 0x285   :  { %v1643_v35 = vpop.f32.mrf.mxu3  ;;  %v1734_v57 = vadd.f32 %v1733_v31, %v5391_v42 }
 0x286   :  { %v1181_v28 = vpop.f32.mrf.mxu0  ;;  %v5410_v2 = vadd.f32 %v1643_v35, %v1314_v62  ;;  %v8514_v62 = vld [vmem:[#allocation12_spill] sm:$0xff] }
 0x287   :  { %v1735_v33 = vadd.f32 %v1734_v57, %v5395_v1  ;;  %v5415_v57 = vadd.f32 %v1510_v8, %v1181_v28  ;;  %v8516_v8 = vld [vmem:[#allocation14_spill] sm:$0xff] }
 0x288   :  { %v1316_v15 = vpop.f32.mrf.mxu2  ;;  %8509 = vst [vmem:[#allocation93_spill] sm:$0xff] %v5410_v2  ;;  %v8544_v1 = vld [vmem:[#allocation58_spill] sm:$0xff] }
 0x289   :  { %v1736_v22 = vadd.f32 %v1735_v33, %v5399_v26  ;;  %8511 = vst [vmem:[#allocation95_spill] sm:$0xff] %v5415_v57 }
 0x28a   :  { %v1515_v30 = vpop.f32.mrf.mxu1 }
 0x28b   :  { %v1737_v60 = vadd.f32 %v1736_v22, %v5402_v14  ;;  %v8528_v14 = vld [vmem:[#allocation28_spill] sm:$0xff] }
 0x28d   :  { %v1645_v31 = vpop.f32.mrf.mxu3  ;;  %v1738_v19 = vadd.f32 %v1737_v60, %v5405_v12 }
 0x28e   :  { %v1184_v50 = vpop.f32.mrf.mxu0  ;;  %v5412_v20 = vadd.f32 %v1645_v31, %v1316_v15 }
 0x28f   :  { %v1739_v5 = vadd.f32 %v1738_v19, %v5408_v34  ;;  %v5418_v47 = vadd.f32 %v1513_v46, %v1184_v50  ;;  %v8518_v19 = vld [vmem:[#allocation15_spill] sm:$0xff]  ;;  %v8525_v34 = vld [vmem:[#allocation24_spill] sm:$0xff] }
 0x290   :  { %8510 = vst [vmem:[#allocation94_spill] sm:$0xff] %v5412_v20  ;;  %v1319_v46 = vpop.f32.mrf.mxu2 }
 0x291   :  { %8512 = vst [vmem:[#allocation96_spill] sm:$0xff] %v5418_v47  ;;  %v1740_v4 = vadd.f32 %v1739_v5, %v5415_v57 }
 0x292   :  { %v1518_v53 = vpop.f32.mrf.mxu1 }
 0x293   :  { %v1741_v17 = vadd.f32 %v1740_v4, %v5418_v47  ;;  %v5425_v35 = vadd.f32 %v1518_v53, %v8514_v62  ;;  %v8521_v53 = vld [vmem:[#allocation17_spill] sm:$0xff]  ;;  %v8522_v47 = vld [vmem:[#allocation18_spill] sm:$0xff] }
 0x295   :  { %8515 = vst [vmem:[#allocation12_spill] sm:$0xff] %v5425_v35  ;;  %v1648_v31 = vpop.f32.mrf.mxu3 }
 0x296   :  { %v1186_v33 = vpop.f32.mrf.mxu0  ;;  %v5434_v4 = vadd.f32 %v1648_v31, %v1319_v46  ;;  %v8529_v46 = vld [vmem:[#allocation30_spill] sm:$0xff] }
 0x297   :  { %v5422_v54 = vadd.f32 %v1515_v30, %v1186_v33  ;;  %v8520_v30 = vld [vmem:[#allocation16_spill] sm:$0xff] }
 0x298   :  { %8519 = vst [vmem:[#allocation98_spill] sm:$0xff] %v5434_v4 }
 0x299   :  { %8513 = vst [vmem:[#allocation97_spill] sm:$0xff] %v5422_v54  ;;  %v1742_v22 = vadd.f32 %v1741_v17, %v5422_v54  ;;  %v8523_v54 = vld [vmem:[#allocation20_spill] sm:$0xff] }
 0x29a   :  { %v1520_v15 = vpop.f32.mrf.mxu1 }
 0x29b   :  { %v5429_v28 = vadd.f32 %v1520_v15, %v8516_v8  ;;  %v1743_v60 = vadd.f32 %v1742_v22, %v5425_v35  ;;  %v8524_v15 = vld [vmem:[#allocation22_spill] sm:$0xff]  ;;  %v8526_v35 = vld [vmem:[#allocation25_spill] sm:$0xff] }
 0x29d   :  { %8517 = vst [vmem:[#allocation14_spill] sm:$0xff] %v5429_v28  ;;  %v1744_v50 = vadd.f32 %v1743_v60, %v5429_v28  ;;  %v8527_v28 = vld [vmem:[#allocation27_spill] sm:$0xff] }
 0x29f   :  { %v1745_v5 = vadd.f32 %v1744_v50, %v8518_v19  ;;  %v8530_v19 = vld [vmem:[#allocation32_spill] sm:$0xff] }
 0x2a1   :  { %v1746_v33 = vadd.f32 %v1745_v5, %v8520_v30  ;;  %v8531_v30 = vld [vmem:[#allocation34_spill] sm:$0xff] }
 0x2a3   :  { %v1747_v62 = vadd.f32 %v1746_v33, %v8521_v53  ;;  %v8532_v53 = vld [vmem:[#allocation36_spill] sm:$0xff] }
 0x2a5   :  { %v1748_v17 = vadd.f32 %v1747_v62, %v8522_v47  ;;  %v8533_v47 = vld [vmem:[#allocation38_spill] sm:$0xff] }
 0x2a7   :  { %v1749_v57 = vadd.f32 %v1748_v17, %v8523_v54  ;;  %v8534_v54 = vld [vmem:[#allocation39_spill] sm:$0xff] }
 0x2a9   :  { %v1750_v8 = vadd.f32 %v1749_v57, %v8524_v15  ;;  %v1321_v15 = vpop.f32.mrf.mxu2 }
 0x2ab   :  { %v1751_v22 = vadd.f32 %v1750_v8, %v8525_v34  ;;  %v1650_v8 = vpop.f32.mrf.mxu3  ;;  %v8535_v34 = vld [vmem:[#allocation41_spill] sm:$0xff] }
 0x2ad   :  { %v1752_v60 = vadd.f32 %v1751_v22, %v8526_v35  ;;  %v8536_v35 = vld [vmem:[#allocation43_spill] sm:$0xff] }
 0x2af   :  { %v1753_v12 = vadd.f32 %v1752_v60, %v8527_v28  ;;  %v8537_v28 = vld [vmem:[#allocation45_spill] sm:$0xff] }
 0x2b1   :  { %v1754_v50 = vadd.f32 %v1753_v12, %v8528_v14  ;;  %v8538_v14 = vld [vmem:[#allocation47_spill] sm:$0xff] }
 0x2b3   :  { %v1755_v31 = vadd.f32 %v1754_v50, %v8529_v46  ;;  %v8539_v46 = vld [vmem:[#allocation49_spill] sm:$0xff] }
 0x2b5   :  { %v1756_v5 = vadd.f32 %v1755_v31, %v8530_v19  ;;  %v1324_v19 = vpop.f32.mrf.mxu2 }
 0x2b7   :  { %v1757_v33 = vadd.f32 %v1756_v5, %v8531_v30  ;;  %v1653_v5 = vpop.f32.mrf.mxu3  ;;  %v8540_v30 = vld [vmem:[#allocation51_spill] sm:$0xff] }
 0x2b9   :  { %v1758_v62 = vadd.f32 %v1757_v33, %v8532_v53  ;;  %v8541_v53 = vld [vmem:[#allocation53_spill] sm:$0xff] }
 0x2bb   :  { %v1759_v17 = vadd.f32 %v1758_v62, %v8533_v47  ;;  %v8542_v47 = vld [vmem:[#allocation54_spill] sm:$0xff] }
 0x2bd   :  { %v1760_v57 = vadd.f32 %v1759_v17, %v8534_v54  ;;  %v8543_v54 = vld [vmem:[#allocation56_spill] sm:$0xff] }
 0x2bf   :  { %v1761_v22 = vadd.f32 %v1760_v57, %v8535_v34  ;;  %v1326_v34 = vpop.f32.mrf.mxu2 }
 0x2c1   :  { %v1762_v60 = vadd.f32 %v1761_v22, %v8536_v35  ;;  %v1655_v22 = vpop.f32.mrf.mxu3  ;;  %v8545_v35 = vld [vmem:[#allocation59_spill] sm:$0xff] }
 0x2c3   :  { %v1763_v12 = vadd.f32 %v1762_v60, %v8537_v28  ;;  %v8546_v28 = vld [vmem:[#allocation61_spill] sm:$0xff] }
 0x2c5   :  { %v1764_v50 = vadd.f32 %v1763_v12, %v8538_v14  ;;  %v8547_v14 = vld [vmem:[#allocation63_spill] sm:$0xff] }
 0x2c7   :  { %v1765_v31 = vadd.f32 %v1764_v50, %v8539_v46  ;;  %v8548_v46 = vld [vmem:[#allocation64_spill] sm:$0xff] }
 0x2c9   :  { %v1766_v33 = vadd.f32 %v1765_v31, %v8540_v30  ;;  %v1329_v30 = vpop.f32.mrf.mxu2 }
 0x2cb   :  { %v1767_v62 = vadd.f32 %v1766_v33, %v8541_v53  ;;  %v1658_v33 = vpop.f32.mrf.mxu3  ;;  %v8550_v53 = vld [vmem:[#allocation68_spill] sm:$0xff] }
 0x2cd   :  { %v1768_v17 = vadd.f32 %v1767_v62, %v8542_v47  ;;  %v8551_v47 = vld [vmem:[#allocation70_spill] sm:$0xff] }
 0x2cf   :  { %v1769_v26 = vadd.f32 %v1768_v17, %v8543_v54  ;;  %v8552_v54 = vld [vmem:[#allocation71_spill] sm:$0xff] }
 0x2d1   :  { %v1770_v57 = vadd.f32 %v1769_v26, %v8544_v1 }
 0x2d3   :  { %v1771_v60 = vadd.f32 %v1770_v57, %v8545_v35  ;;  %v1331_v35 = vpop.f32.mrf.mxu2 }
 0x2d5   :  { %v1772_v12 = vadd.f32 %v1771_v60, %v8546_v28  ;;  %v1660_v60 = vpop.f32.mrf.mxu3 }
 0x2d7   :  { %v1773_v50 = vadd.f32 %v1772_v12, %v8547_v14 }
 0x2d9   :  { %v1774_v42 = vadd.f32 %v1773_v50, %v8548_v46 }
 0x2db   :  { %v1775_v31 = vadd.f32 %v1774_v42, %v8549_v45 }
 0x2dd   :  { %v1776_v62 = vadd.f32 %v1775_v31, %v8550_v53  ;;  %v1334_v53 = vpop.f32.mrf.mxu2 }
 0x2df   :  { %v1777_v17 = vadd.f32 %v1776_v62, %v8551_v47  ;;  %v1663_v62 = vpop.f32.mrf.mxu3 }
 0x2e1   :  { %v1778_v26 = vadd.f32 %v1777_v17, %v8552_v54 }
 0x2e3   :  { %v1779_v1 = vadd.f32 %v1778_v26, %v5208_v0 }
 0x2e5   :  { %v1780_v57 = vadd.f32 %v1779_v1, %v5215_v56 }
 0x2e7   :  { %v1781_v12 = vadd.f32 %v1780_v57, %v5237_v10  ;;  %v1336_v10 = vpop.f32.mrf.mxu2 }
 0x2e9   :  { %v1782_v50 = vadd.f32 %v1781_v12, %v5244_v7  ;;  %v1665_v12 = vpop.f32.mrf.mxu3 }
 0x2eb   :  { %v1783_v42 = vadd.f32 %v1782_v50, %v5266_v41 }
 0x2ed   :  { %v1784_v45 = vadd.f32 %v1783_v42, %v5275_v51 }
 0x2ef   :  { %v1785_v31 = vadd.f32 %v1784_v45, %v5299_v61 }
 0x2f1   :  { %v1786_v17 = vadd.f32 %v1785_v31, %v5308_v37  ;;  %v5486_v37 = vadd.f32 %v1650_v8, %v1321_v15 }
 0x2f3   :  { %v1787_v26 = vadd.f32 %v1786_v17, %v5332_v9  ;;  %v1339_v17 = vpop.f32.mrf.mxu2  ;;  %v1659_v9 = vadd.f32 %v1658_v33, %v1329_v30 }
 0x2f5   :  { %v1788_v1 = vadd.f32 %v1787_v26, %v5339_v29  ;;  %v1668_v26 = vpop.f32.mrf.mxu3 }
 0x2f7   :  { %v1789_v56 = vadd.f32 %v1788_v1, %v5359_v36  ;;  %v1654_v36 = vadd.f32 %v1653_v5, %v1324_v19 }
 0x2f9   :  { %v1790_v57 = vadd.f32 %v1789_v56, %v5364_v3  ;;  %v1656_v3 = vadd.f32 %v1655_v22, %v1326_v34 }
 0x2fb   :  { %v1791_v50 = vadd.f32 %v1790_v57, %v5371_v63  ;;  %v1661_v63 = vadd.f32 %v1660_v60, %v1331_v35 }
 0x2fd   :  { %v1792_v42 = vadd.f32 %v1791_v50, %v5376_v52  ;;  %v1341_v50 = vpop.f32.mrf.mxu2  ;;  %v1670_v52 = vpop.f32.mrf.mxu3 }
 0x2fe   :  { %v1671_v41 = vadd.f32 %v1670_v52, %v1341_v50 }
 0x2ff   :  { %v1793_v45 = vadd.f32 %v1792_v42, %v5410_v2  ;;  %v1664_v2 = vadd.f32 %v1663_v62, %v1334_v53 }
 0x301   :  { %v1794_v61 = vadd.f32 %v1793_v45, %v5412_v20  ;;  %v1666_v20 = vadd.f32 %v1665_v12, %v1336_v10 }
 0x303   :  { %v1795_v31 = vadd.f32 %v1794_v61, %v5434_v4  ;;  %v1669_v4 = vadd.f32 %v1668_v26, %v1339_v17 }
 0x305   :  { %v1796_v1 = vadd.f32 %v1795_v31, %v5486_v37  ;;  %v1344_v15 = vpop.f32.mrf.mxu2  ;;  %v1673_v8 = vpop.f32.mrf.mxu3 }
 0x306   :  { %v1674_v19 = vadd.f32 %v1673_v8, %v1344_v15 }
 0x307   :  { %v1797_v56 = vadd.f32 %v1796_v1, %v1654_v36 }
 0x309   :  { %v1798_v29 = vadd.f32 %v1797_v56, %v1656_v3 }
 0x30b   :  { %v1799_v57 = vadd.f32 %v1798_v29, %v1659_v9 }
 0x30d   :  { %v1800_v42 = vadd.f32 %v1799_v57, %v1661_v63  ;;  %v1346_v5 = vpop.f32.mrf.mxu2  ;;  %v1675_v34 = vpop.f32.mrf.mxu3 }
 0x30e   :  { %v1676_v30 = vadd.f32 %v1675_v34, %v1346_v5  ;;  %v8564_v5 = vld [vmem:[#allocation9_spill] sm:$0xff] }
 0x30f   :  { %v1801_v45 = vadd.f32 %v1800_v42, %v1664_v2 }
 0x311   :  { %v1802_v61 = vadd.f32 %v1801_v45, %v1666_v20 }
 0x313   :  { %v1803_v51 = vadd.f32 %v1802_v61, %v1669_v4  ;;  %v8563_v61 = vld [vmem:[#allocation8_spill] sm:$0xff] }
 0x315   :  { %v1804_v31 = vadd.f32 %v1803_v51, %v1671_v41 }
 0x317   :  { %v1805_v22 = vadd.f32 %v1804_v31, %v1674_v19 }
 0x319   :  { %v1806_v29 = vadd.f32 %v1805_v22, %v1676_v30 }
 0x31b   :  { %v1807_v35 = vrot.slane %v1806_v29, 4 }
 0x31d   :  { %v1808_v33 = vadd.f32 %v1807_v35, %v1806_v29 }
 0x31f   :  { %v1809_v60 = vrot.slane %v1808_v33, 2 }
 0x321   :  { %v1810_v1 = vadd.f32 %v1809_v60, %v1808_v33 }
 0x323   :  { %v1811_v53 = vrot.slane %v1810_v1, 1 }
 0x325   :  { %v1812_v62 = vadd.f32 %v1811_v53, %v1810_v1 }
 0x327   :  { %v5489_v10 = vmul.f32 0.0009765625, %v1812_v62 }
 0x329   :  { %v5492_v12 = vsub.f32 %v1654_v36, %v5489_v10  ;;  %v5495_v52 = vsub.f32 %v1656_v3, %v5489_v10  ;;  %v5498_v51 = vsub.f32 %v1659_v9, %v5489_v10  ;;  %v5501_v17 = vsub.f32 %v1661_v63, %v5489_v10  ;;  %v8560_v63 = vld [vmem:[#allocation5_spill] sm:$0xff] }
 0x32a   :  { %v5504_v26 = vsub.f32 %v1664_v2, %v5489_v10  ;;  %v5507_v56 = vsub.f32 %v1666_v20, %v5489_v10  ;;  %v5510_v57 = vsub.f32 %v1669_v4, %v5489_v10  ;;  %v5513_v36 = vsub.f32 %v1671_v41, %v5489_v10  ;;  %v8561_v2 = vld [vmem:[#allocation6_spill] sm:$0xff]  ;;  %v8562_v4 = vld [vmem:[#allocation7_spill] sm:$0xff] }
 0x32b   :  { %8553 = vst [vmem:[#allocation61_spill] sm:$0xff] %v5495_v52  ;;  %v5516_v3 = vsub.f32 %v1674_v19, %v5489_v10  ;;  %v5519_v9 = vsub.f32 %v1676_v30, %v5489_v10  ;;  %v5523_v50 = vsub.f32 %v8560_v63, %v5489_v10  ;;  %v5527_v20 = vsub.f32 %v8561_v2, %v5489_v10  ;;  %v8565_v63 = vld [vmem:[#allocation10_spill] sm:$0xff] }
 0x32c   :  { %8554 = vst [vmem:[#allocation63_spill] sm:$0xff] %v5498_v51  ;;  %v5531_v42 = vsub.f32 %v8562_v4, %v5489_v10  ;;  %v5539_v15 = vsub.f32 %v8563_v61, %v5489_v10  ;;  %v5543_v8 = vsub.f32 %v4488_v59, %v5489_v10  ;;  %v5549_v34 = vsub.f32 %v8564_v5, %v5489_v10 }
 0x32d   :  { %8555 = vst [vmem:[#allocation64_spill] sm:$0xff] %v5501_v17  ;;  %v1942_v41 = vmul.f32 %v5523_v50, %v5523_v50  ;;  %v1943_v45 = vmul.f32 %v5527_v20, %v5527_v20  ;;  %v5555_v29 = vsub.f32 %v4518_v13, %v5489_v10  ;;  %v5561_v33 = vsub.f32 %v4534_v24, %v5489_v10 }
 0x32e   :  { %8556 = vst [vmem:[#allocation70_spill] sm:$0xff] %v5504_v26  ;;  %v1944_v31 = vmul.f32 %v5531_v42, %v5531_v42  ;;  %v1945_v22 = vmul.f32 %v5539_v15, %v5539_v15  ;;  %v1946_v59 = vmul.f32 %v5543_v8, %v5543_v8  ;;  %v1947_v60 = vmul.f32 %v5549_v34, %v5549_v34 }
 0x32f   :  { %8557 = vst [vmem:[#allocation71_spill] sm:$0xff] %v5507_v56  ;;  %v2070_v19 = vadd.f32 %v1943_v45, %v1942_v41  ;;  %v5567_v53 = vsub.f32 %v4548_v32, %v5489_v10  ;;  %v1948_v13 = vmul.f32 %v5555_v29, %v5555_v29  ;;  %v5573_v2 = vsub.f32 %v8565_v63, %v5489_v10  ;;  %v8566_v41 = vld [vmem:[#allocation11_spill] sm:$0xff] }
 0x330   :  { %8558 = vst [vmem:[#allocation99_spill] sm:$0xff] %v5510_v57  ;;  %v1949_v24 = vmul.f32 %v5561_v33, %v5561_v33  ;;  %v5579_v45 = vsub.f32 %v8566_v41, %v5489_v10  ;;  %v5615_v41 = vsub.f32 %v4678_v6, %v5489_v10 }
 0x331   :  { %8559 = vst [vmem:[#allocation100_spill] sm:$0xff] %v5513_v36  ;;  %v2071_v30 = vadd.f32 %v2070_v19, %v1944_v31  ;;  %v1950_v32 = vmul.f32 %v5567_v53, %v5567_v53  ;;  %v8567_v31 = vld [vmem:[#allocation13_spill] sm:$0xff]  ;;  %v1951_v5 = vmul.f32 %v5573_v2, %v5573_v2 }
 0x332   :  { %v5585_v19 = vsub.f32 %v8567_v31, %v5489_v10  ;;  %v1958_v6 = vmul.f32 %v5615_v41, %v5615_v41 }
 0x333   :  { %v2072_v35 = vadd.f32 %v2071_v30, %v1945_v22  ;;  %v5591_v30 = vsub.f32 %v4612_v11, %v5489_v10 }
 0x335   :  { %v2073_v1 = vadd.f32 %v2072_v35, %v1946_v59  ;;  %v1952_v59 = vmul.f32 %v5579_v45, %v5579_v45  ;;  %v1954_v11 = vmul.f32 %v5591_v30, %v5591_v30 }
 0x337   :  { %v2074_v62 = vadd.f32 %v2073_v1, %v1947_v60  ;;  %v5597_v60 = vsub.f32 %v4628_v25, %v5489_v10  ;;  %v1953_v1 = vmul.f32 %v5585_v19, %v5585_v19 }
 0x339   :  { %v2075_v4 = vadd.f32 %v2074_v62, %v1948_v13  ;;  %v5603_v62 = vsub.f32 %v4644_v38, %v5489_v10  ;;  %v1955_v25 = vmul.f32 %v5597_v60, %v5597_v60 }
 0x33b   :  { %v2076_v61 = vadd.f32 %v2075_v4, %v1949_v24  ;;  %v5609_v24 = vsub.f32 %v4662_v55, %v5489_v10  ;;  %v1956_v38 = vmul.f32 %v5603_v62, %v5603_v62 }
 0x33d   :  { %v2077_v22 = vadd.f32 %v2076_v61, %v1950_v32  ;;  %v8568_v61 = vld [vmem:[#allocation19_spill] sm:$0xff]  ;;  %v1957_v55 = vmul.f32 %v5609_v24, %v5609_v24 }
 0x33e   :  { %v5621_v31 = vsub.f32 %v8568_v61, %v5489_v10 }
 0x33f   :  { %v2078_v35 = vadd.f32 %v2077_v22, %v1951_v5  ;;  %v8569_v22 = vld [vmem:[#allocation21_spill] sm:$0xff] }
 0x341   :  { %v2079_v13 = vadd.f32 %v2078_v35, %v1952_v59  ;;  %v5627_v59 = vsub.f32 %v8569_v22, %v5489_v10  ;;  %v5651_v22 = vsub.f32 %v4780_v58, %v5489_v10 }
 0x343   :  { %v2080_v63 = vadd.f32 %v2079_v13, %v1953_v1  ;;  %v8570_v1 = vld [vmem:[#allocation23_spill] sm:$0xff]  ;;  %8575 = vst [vmem:[#allocation8_spill] sm:$0xff] %v5651_v22  ;;  %v1964_v58 = vmul.f32 %v5651_v22, %v5651_v22 }
 0x344   :  { %v5633_v13 = vsub.f32 %v8570_v1, %v5489_v10 }
 0x345   :  { %v2081_v4 = vadd.f32 %v2080_v63, %v1954_v11  ;;  %v1959_v11 = vmul.f32 %v5621_v31, %v5621_v31 }
 0x346   :  { %8571 = vst [vmem:[#allocation5_spill] sm:$0xff] %v5633_v13 }
 0x347   :  { %v2082_v32 = vadd.f32 %v2081_v4, %v1955_v25  ;;  %v5639_v25 = vsub.f32 %v4746_v16, %v5489_v10  ;;  %v1960_v4 = vmul.f32 %v5627_v59, %v5627_v59 }
 0x349   :  { %v2083_v5 = vadd.f32 %v2082_v32, %v1956_v38  ;;  %8572 = vst [vmem:[#allocation6_spill] sm:$0xff] %v5639_v25  ;;  %v8573_v32 = vld [vmem:[#allocation26_spill] sm:$0xff]  ;;  %v1962_v16 = vmul.f32 %v5639_v25, %v5639_v25 }
 0x34a   :  { %v5645_v61 = vsub.f32 %v8573_v32, %v5489_v10  ;;  %v8577_v32 = vld [vmem:[#allocation31_spill] sm:$0xff] }
 0x34b   :  { %v2084_v35 = vadd.f32 %v2083_v5, %v1957_v55  ;;  %v1961_v55 = vmul.f32 %v5633_v13, %v5633_v13  ;;  %v5663_v13 = vsub.f32 %v8577_v32, %v5489_v10  ;;  %v8583_v32 = vld [vmem:[#allocation37_spill] sm:$0xff] }
 0x34c   :  { %8574 = vst [vmem:[#allocation7_spill] sm:$0xff] %v5645_v61  ;;  %v5681_v22 = vsub.f32 %v8583_v32, %v5489_v10  ;;  %v8588_v32 = vld [vmem:[#allocation42_spill] sm:$0xff] }
 0x34d   :  { %v2085_v63 = vadd.f32 %v2084_v35, %v1958_v6  ;;  %v8576_v35 = vld [vmem:[#allocation29_spill] sm:$0xff]  ;;  %8578 = vst [vmem:[#allocation9_spill] sm:$0xff] %v5663_v13 }
 0x34e   :  { %v5657_v1 = vsub.f32 %v8576_v35, %v5489_v10  ;;  %v8581_v35 = vld [vmem:[#allocation35_spill] sm:$0xff]  ;;  %8584 = vst [vmem:[#allocation13_spill] sm:$0xff] %v5681_v22 }
 0x34f   :  { %v2086_v38 = vadd.f32 %v2085_v63, %v1959_v11  ;;  %v1963_v11 = vmul.f32 %v5645_v61, %v5645_v61  ;;  %v5675_v61 = vsub.f32 %v8581_v35, %v5489_v10  ;;  %v8586_v35 = vld [vmem:[#allocation40_spill] sm:$0xff] }
 0x351   :  { %v2087_v5 = vadd.f32 %v2086_v38, %v1960_v4  ;;  %v8579_v38 = vld [vmem:[#allocation33_spill] sm:$0xff]  ;;  %8582 = vst [vmem:[#allocation11_spill] sm:$0xff] %v5675_v61 }
 0x352   :  { %v5669_v25 = vsub.f32 %v8579_v38, %v5489_v10  ;;  %v5687_v38 = vsub.f32 %v4882_v48, %v5489_v10 }
 0x353   :  { %v2088_v6 = vadd.f32 %v2087_v5, %v1961_v55  ;;  %v1965_v55 = vmul.f32 %v5657_v1, %v5657_v1 }
 0x354   :  { %8580 = vst [vmem:[#allocation10_spill] sm:$0xff] %v5669_v25  ;;  %v1970_v48 = vmul.f32 %v5687_v38, %v5687_v38 }
 0x355   :  { %v2089_v63 = vadd.f32 %v2088_v6, %v1962_v16  ;;  %v1966_v16 = vmul.f32 %v5663_v13, %v5663_v13  ;;  %8585 = vst [vmem:[#allocation19_spill] sm:$0xff] %v5687_v38  ;;  %v5693_v13 = vsub.f32 %v8586_v35, %v5489_v10  ;;  %v8591_v35 = vld [vmem:[#allocation46_spill] sm:$0xff] }
 0x357   :  { %v2090_v4 = vadd.f32 %v2089_v63, %v1963_v11  ;;  %v1967_v11 = vmul.f32 %v5669_v25, %v5669_v25  ;;  %8587 = vst [vmem:[#allocation21_spill] sm:$0xff] %v5693_v13  ;;  %v5699_v25 = vsub.f32 %v8588_v32, %v5489_v10  ;;  %v8593_v32 = vld [vmem:[#allocation48_spill] sm:$0xff] }
 0x358   :  { %v5717_v38 = vsub.f32 %v8593_v32, %v5489_v10  ;;  %v5735_v32 = vsub.f32 %v5018_v21, %v5489_v10 }
 0x359   :  { %v2091_v5 = vadd.f32 %v2090_v4, %v1964_v58  ;;  %v1968_v58 = vmul.f32 %v5675_v61, %v5675_v61  ;;  %8589 = vst [vmem:[#allocation23_spill] sm:$0xff] %v5699_v25 }
 0x35a   :  { %8594 = vst [vmem:[#allocation29_spill] sm:$0xff] %v5717_v38  ;;  %v1978_v21 = vmul.f32 %v5735_v32, %v5735_v32 }
 0x35b   :  { %v2092_v6 = vadd.f32 %v2091_v5, %v1965_v55  ;;  %v1969_v55 = vmul.f32 %v5681_v22, %v5681_v22  ;;  %v5711_v22 = vsub.f32 %v8591_v35, %v5489_v10  ;;  %v8596_v35 = vld [vmem:[#allocation52_spill] sm:$0xff]  ;;  %8598 = vst [vmem:[#allocation33_spill] sm:$0xff] %v5735_v32 }
 0x35d   :  { %v2093_v63 = vadd.f32 %v2092_v6, %v1966_v16  ;;  %v8590_v6 = vld [vmem:[#allocation44_spill] sm:$0xff]  ;;  %8592 = vst [vmem:[#allocation26_spill] sm:$0xff] %v5711_v22 }
 0x35e   :  { %v5705_v61 = vsub.f32 %v8590_v6, %v5489_v10  ;;  %v8595_v6 = vld [vmem:[#allocation50_spill] sm:$0xff] }
 0x35f   :  { %v2094_v4 = vadd.f32 %v2093_v63, %v1967_v11  ;;  %v1971_v11 = vmul.f32 %v5693_v13, %v5693_v13  ;;  %v5723_v13 = vsub.f32 %v8595_v6, %v5489_v10  ;;  %v8599_v6 = vld [vmem:[#allocation55_spill] sm:$0xff] }
 0x361   :  { %v2095_v5 = vadd.f32 %v2094_v4, %v1968_v58  ;;  %v1972_v58 = vmul.f32 %v5699_v25, %v5699_v25  ;;  %v5729_v25 = vsub.f32 %v8596_v35, %v5489_v10  ;;  %v8600_v35 = vld [vmem:[#allocation57_spill] sm:$0xff] }
 0x363   :  { %v2096_v16 = vadd.f32 %v2095_v5, %v1969_v55  ;;  %v1973_v55 = vmul.f32 %v5705_v61, %v5705_v61  ;;  %8597 = vst [vmem:[#allocation31_spill] sm:$0xff] %v5729_v25 }
 0x365   :  { %v2097_v63 = vadd.f32 %v2096_v16, %v1970_v48  ;;  %v1974_v48 = vmul.f32 %v5711_v22, %v5711_v22  ;;  %v5741_v22 = vsub.f32 %v8599_v6, %v5489_v10  ;;  %v8603_v6 = vld [vmem:[#allocation60_spill] sm:$0xff] }
 0x367   :  { %v2098_v4 = vadd.f32 %v2097_v63, %v1971_v11  ;;  %v1975_v11 = vmul.f32 %v5717_v38, %v5717_v38  ;;  %v5747_v38 = vsub.f32 %v8600_v35, %v5489_v10  ;;  %v8605_v35 = vld [vmem:[#allocation62_spill] sm:$0xff] }
 0x368   :  { %v5765_v32 = vsub.f32 %v8605_v35, %v5489_v10  ;;  %v8607_v35 = vld [vmem:[#allocation67_spill] sm:$0xff] }
 0x369   :  { %v2099_v5 = vadd.f32 %v2098_v4, %v1972_v58  ;;  %v1976_v58 = vmul.f32 %v5723_v13, %v5723_v13  ;;  %8601 = vst [vmem:[#allocation35_spill] sm:$0xff] %v5747_v38 }
 0x36b   :  { %v2100_v16 = vadd.f32 %v2099_v5, %v1973_v55  ;;  %v1977_v55 = vmul.f32 %v5729_v25, %v5729_v25  ;;  %v5759_v25 = vsub.f32 %v8603_v6, %v5489_v10  ;;  %v8606_v6 = vld [vmem:[#allocation65_spill] sm:$0xff] }
 0x36d   :  { %v2101_v63 = vadd.f32 %v2100_v16, %v1974_v48  ;;  %v5753_v16 = vsub.f32 %v5070_v43, %v5489_v10  ;;  %8604 = vst [vmem:[#allocation40_spill] sm:$0xff] %v5759_v25 }
 0x36f   :  { %v2102_v4 = vadd.f32 %v2101_v63, %v1975_v11  ;;  %8602 = vst [vmem:[#allocation37_spill] sm:$0xff] %v5753_v16  ;;  %v1979_v11 = vmul.f32 %v5741_v22, %v5741_v22  ;;  %v1981_v43 = vmul.f32 %v5753_v16, %v5753_v16  ;;  %v5783_v16 = vsub.f32 %v8607_v35, %v5489_v10 }
 0x370   :  { %v5801_v35 = vsub.f32 %v5206_v27, %v5489_v10 }
 0x371   :  { %v2103_v5 = vadd.f32 %v2102_v4, %v1976_v58  ;;  %v1980_v58 = vmul.f32 %v5747_v38, %v5747_v38  ;;  %v5777_v38 = vsub.f32 %v8606_v6, %v5489_v10  ;;  %v5795_v6 = vsub.f32 %v5188_v18, %v5489_v10 }
 0x372   :  { %8609 = vst [vmem:[#allocation42_spill] sm:$0xff] %v5801_v35  ;;  %v1989_v27 = vmul.f32 %v5801_v35, %v5801_v35 }
 0x373   :  { %v2104_v48 = vadd.f32 %v2103_v5, %v1977_v55  ;;  %v5771_v5 = vsub.f32 %v5120_v49, %v5489_v10  ;;  %v1988_v18 = vmul.f32 %v5795_v6, %v5795_v6 }
 0x375   :  { %v2105_v63 = vadd.f32 %v2104_v48, %v1978_v21  ;;  %v1982_v21 = vmul.f32 %v5759_v25, %v5759_v25  ;;  %v1984_v49 = vmul.f32 %v5771_v5, %v5771_v5 }
 0x377   :  { %v2106_v4 = vadd.f32 %v2105_v63, %v1979_v11  ;;  %v1983_v11 = vmul.f32 %v5765_v32, %v5765_v32 }
 0x379   :  { %v2107_v55 = vadd.f32 %v2106_v4, %v1980_v58  ;;  %v8608_v4 = vld [vmem:[#allocation69_spill] sm:$0xff] }
 0x37a   :  { %v5789_v25 = vsub.f32 %v8608_v4, %v5489_v10  ;;  %v5807_v4 = vsub.f32 %v5213_v39, %v5489_v10 }
 0x37b   :  { %v2108_v48 = vadd.f32 %v2107_v55, %v1981_v43  ;;  %v1985_v43 = vmul.f32 %v5777_v38, %v5777_v38 }
 0x37c   :  { %8610 = vst [vmem:[#allocation44_spill] sm:$0xff] %v5807_v4  ;;  %v1990_v39 = vmul.f32 %v5807_v4, %v5807_v4 }
 0x37d   :  { %v2109_v63 = vadd.f32 %v2108_v48, %v1982_v21  ;;  %v1986_v21 = vmul.f32 %v5783_v16, %v5783_v16 }
 0x37f   :  { %v2110_v58 = vadd.f32 %v2109_v63, %v1983_v11  ;;  %v1987_v11 = vmul.f32 %v5789_v25, %v5789_v25 }
 0x381   :  { %v2111_v55 = vadd.f32 %v2110_v58, %v1984_v49  ;;  %v5813_v58 = vsub.f32 %v5234_v23, %v5489_v10 }
 0x383   :  { %v2112_v48 = vadd.f32 %v2111_v55, %v1985_v43  ;;  %8611 = vst [vmem:[#allocation46_spill] sm:$0xff] %v5813_v58  ;;  %v5819_v55 = vsub.f32 %v5242_v40, %v5489_v10  ;;  %v1991_v23 = vmul.f32 %v5813_v58, %v5813_v58 }
 0x385   :  { %v2113_v63 = vadd.f32 %v2112_v48, %v1986_v21  ;;  %8612 = vst [vmem:[#allocation48_spill] sm:$0xff] %v5819_v55  ;;  %v5825_v48 = vsub.f32 %v5263_v44, %v5489_v10  ;;  %v1992_v40 = vmul.f32 %v5819_v55, %v5819_v55 }
 0x387   :  { %v2114_v49 = vadd.f32 %v2113_v63, %v1987_v11  ;;  %8613 = vst [vmem:[#allocation50_spill] sm:$0xff] %v5825_v48  ;;  %v8614_v63 = vld [vmem:[#allocation75_spill] sm:$0xff]  ;;  %v1993_v44 = vmul.f32 %v5825_v48, %v5825_v48 }
 0x388   :  { %v5831_v35 = vsub.f32 %v8614_v63, %v5489_v10  ;;  %v8620_v63 = vld [vmem:[#allocation87_spill] sm:$0xff] }
 0x389   :  { %v2115_v43 = vadd.f32 %v2114_v49, %v1988_v18  ;;  %v8616_v49 = vld [vmem:[#allocation85_spill] sm:$0xff]  ;;  %v5849_v55 = vsub.f32 %v8620_v63, %v5489_v10  ;;  %v8626_v63 = vld [vmem:[#allocation90_spill] sm:$0xff] }
 0x38a   :  { %8615 = vst [vmem:[#allocation52_spill] sm:$0xff] %v5831_v35  ;;  %v5837_v4 = vsub.f32 %v8616_v49, %v5489_v10  ;;  %v8622_v49 = vld [vmem:[#allocation88_spill] sm:$0xff] }
 0x38b   :  { %v2116_v21 = vadd.f32 %v2115_v43, %v1989_v27  ;;  %v8618_v43 = vld [vmem:[#allocation86_spill] sm:$0xff]  ;;  %8621 = vst [vmem:[#allocation60_spill] sm:$0xff] %v5849_v55  ;;  %v5855_v48 = vsub.f32 %v8622_v49, %v5489_v10  ;;  %v8628_v49 = vld [vmem:[#allocation91_spill] sm:$0xff] }
 0x38c   :  { %8617 = vst [vmem:[#allocation55_spill] sm:$0xff] %v5837_v4  ;;  %v5843_v58 = vsub.f32 %v8618_v43, %v5489_v10  ;;  %v8624_v43 = vld [vmem:[#allocation89_spill] sm:$0xff] }
 0x38d   :  { %v2117_v11 = vadd.f32 %v2116_v21, %v1990_v39  ;;  %v1994_v39 = vmul.f32 %v5831_v35, %v5831_v35  ;;  %8623 = vst [vmem:[#allocation62_spill] sm:$0xff] %v5855_v48  ;;  %v5861_v35 = vsub.f32 %v8624_v43, %v5489_v10  ;;  %v8630_v43 = vld [vmem:[#allocation92_spill] sm:$0xff] }
 0x38e   :  { %8619 = vst [vmem:[#allocation57_spill] sm:$0xff] %v5843_v58 }
 0x38f   :  { %v2118_v18 = vadd.f32 %v2117_v11, %v1991_v23  ;;  %v1995_v23 = vmul.f32 %v5837_v4, %v5837_v4  ;;  %8625 = vst [vmem:[#allocation65_spill] sm:$0xff] %v5861_v35  ;;  %v5867_v4 = vsub.f32 %v8626_v63, %v5489_v10  ;;  %v8632_v63 = vld [vmem:[#allocation95_spill] sm:$0xff] }
 0x391   :  { %v2119_v27 = vadd.f32 %v2118_v18, %v1992_v40  ;;  %v1996_v40 = vmul.f32 %v5843_v58, %v5843_v58  ;;  %8627 = vst [vmem:[#allocation67_spill] sm:$0xff] %v5867_v4  ;;  %v5873_v58 = vsub.f32 %v8628_v49, %v5489_v10  ;;  %v8634_v49 = vld [vmem:[#allocation96_spill] sm:$0xff] }
 0x393   :  { %v2120_v21 = vadd.f32 %v2119_v27, %v1993_v44  ;;  %v1997_v44 = vmul.f32 %v5849_v55, %v5849_v55  ;;  %8629 = vst [vmem:[#allocation69_spill] sm:$0xff] %v5873_v58  ;;  %v5879_v55 = vsub.f32 %v8630_v43, %v5489_v10  ;;  %v8636_v43 = vld [vmem:[#allocation97_spill] sm:$0xff] }
 0x395   :  { %v2121_v11 = vadd.f32 %v2120_v21, %v1994_v39  ;;  %v1998_v39 = vmul.f32 %v5855_v48, %v5855_v48  ;;  %8631 = vst [vmem:[#allocation75_spill] sm:$0xff] %v5879_v55  ;;  %v5885_v48 = vsub.f32 %v8632_v63, %v5489_v10  ;;  %v8638_v63 = vld [vmem:[#allocation12_spill] sm:$0xff] }
 0x397   :  { %v2122_v18 = vadd.f32 %v2121_v11, %v1995_v23  ;;  %v1999_v23 = vmul.f32 %v5861_v35, %v5861_v35  ;;  %8633 = vst [vmem:[#allocation85_spill] sm:$0xff] %v5885_v48  ;;  %v5891_v35 = vsub.f32 %v8634_v49, %v5489_v10  ;;  %v8640_v49 = vld [vmem:[#allocation14_spill] sm:$0xff] }
 0x399   :  { %v2123_v27 = vadd.f32 %v2122_v18, %v1996_v40  ;;  %v2000_v40 = vmul.f32 %v5867_v4, %v5867_v4  ;;  %8635 = vst [vmem:[#allocation86_spill] sm:$0xff] %v5891_v35  ;;  %v5897_v4 = vsub.f32 %v8636_v43, %v5489_v10  ;;  %v8642_v43 = vld [vmem:[#allocation15_spill] sm:$0xff] }
 0x39b   :  { %v2124_v21 = vadd.f32 %v2123_v27, %v1997_v44  ;;  %v2001_v44 = vmul.f32 %v5873_v58, %v5873_v58  ;;  %8637 = vst [vmem:[#allocation87_spill] sm:$0xff] %v5897_v4  ;;  %v5903_v58 = vsub.f32 %v8638_v63, %v5489_v10  ;;  %v8644_v63 = vld [vmem:[#allocation16_spill] sm:$0xff] }
 0x39d   :  { %v2125_v11 = vadd.f32 %v2124_v21, %v1998_v39  ;;  %v2002_v39 = vmul.f32 %v5879_v55, %v5879_v55  ;;  %8639 = vst [vmem:[#allocation88_spill] sm:$0xff] %v5903_v58  ;;  %v5909_v55 = vsub.f32 %v8640_v49, %v5489_v10  ;;  %v8646_v49 = vld [vmem:[#allocation17_spill] sm:$0xff] }
 0x39f   :  { %v2126_v18 = vadd.f32 %v2125_v11, %v1999_v23  ;;  %v2003_v23 = vmul.f32 %v5885_v48, %v5885_v48  ;;  %8641 = vst [vmem:[#allocation89_spill] sm:$0xff] %v5909_v55  ;;  %v5915_v48 = vsub.f32 %v8642_v43, %v5489_v10  ;;  %v8648_v43 = vld [vmem:[#allocation18_spill] sm:$0xff] }
 0x3a1   :  { %v2127_v27 = vadd.f32 %v2126_v18, %v2000_v40  ;;  %v2004_v40 = vmul.f32 %v5891_v35, %v5891_v35  ;;  %8643 = vst [vmem:[#allocation90_spill] sm:$0xff] %v5915_v48  ;;  %v5921_v35 = vsub.f32 %v8644_v63, %v5489_v10  ;;  %v8650_v63 = vld [vmem:[#allocation20_spill] sm:$0xff] }
 0x3a3   :  { %v2128_v21 = vadd.f32 %v2127_v27, %v2001_v44  ;;  %v2005_v44 = vmul.f32 %v5897_v4, %v5897_v4  ;;  %8645 = vst [vmem:[#allocation91_spill] sm:$0xff] %v5921_v35  ;;  %v5927_v4 = vsub.f32 %v8646_v49, %v5489_v10  ;;  %v8652_v49 = vld [vmem:[#allocation22_spill] sm:$0xff] }
 0x3a5   :  { %v2129_v11 = vadd.f32 %v2128_v21, %v2002_v39  ;;  %v2006_v39 = vmul.f32 %v5903_v58, %v5903_v58  ;;  %8647 = vst [vmem:[#allocation92_spill] sm:$0xff] %v5927_v4  ;;  %v5933_v58 = vsub.f32 %v8648_v43, %v5489_v10  ;;  %v8654_v43 = vld [vmem:[#allocation24_spill] sm:$0xff] }
 0x3a7   :  { %v2130_v18 = vadd.f32 %v2129_v11, %v2003_v23  ;;  %v2007_v23 = vmul.f32 %v5909_v55, %v5909_v55  ;;  %8649 = vst [vmem:[#allocation95_spill] sm:$0xff] %v5933_v58  ;;  %v5939_v55 = vsub.f32 %v8650_v63, %v5489_v10  ;;  %v8656_v63 = vld [vmem:[#allocation25_spill] sm:$0xff] }
 0x3a9   :  { %v2131_v27 = vadd.f32 %v2130_v18, %v2004_v40  ;;  %v2008_v40 = vmul.f32 %v5915_v48, %v5915_v48  ;;  %8651 = vst [vmem:[#allocation96_spill] sm:$0xff] %v5939_v55  ;;  %v5945_v48 = vsub.f32 %v8652_v49, %v5489_v10  ;;  %v8658_v49 = vld [vmem:[#allocation27_spill] sm:$0xff] }
 0x3ab   :  { %v2132_v21 = vadd.f32 %v2131_v27, %v2005_v44  ;;  %v2009_v44 = vmul.f32 %v5921_v35, %v5921_v35  ;;  %8653 = vst [vmem:[#allocation97_spill] sm:$0xff] %v5945_v48  ;;  %v5951_v35 = vsub.f32 %v8654_v43, %v5489_v10  ;;  %v8660_v43 = vld [vmem:[#allocation28_spill] sm:$0xff] }
 0x3ad   :  { %v2133_v11 = vadd.f32 %v2132_v21, %v2006_v39  ;;  %v2010_v39 = vmul.f32 %v5927_v4, %v5927_v4  ;;  %8655 = vst [vmem:[#allocation12_spill] sm:$0xff] %v5951_v35  ;;  %v5957_v4 = vsub.f32 %v8656_v63, %v5489_v10  ;;  %v8662_v63 = vld [vmem:[#allocation30_spill] sm:$0xff] }
 0x3af   :  { %v2134_v18 = vadd.f32 %v2133_v11, %v2007_v23  ;;  %v2011_v23 = vmul.f32 %v5933_v58, %v5933_v58  ;;  %8657 = vst [vmem:[#allocation14_spill] sm:$0xff] %v5957_v4  ;;  %v5963_v58 = vsub.f32 %v8658_v49, %v5489_v10  ;;  %v8664_v49 = vld [vmem:[#allocation32_spill] sm:$0xff] }
 0x3b1   :  { %v2135_v27 = vadd.f32 %v2134_v18, %v2008_v40  ;;  %v2012_v40 = vmul.f32 %v5939_v55, %v5939_v55  ;;  %8659 = vst [vmem:[#allocation15_spill] sm:$0xff] %v5963_v58  ;;  %v5969_v55 = vsub.f32 %v8660_v43, %v5489_v10  ;;  %v8666_v43 = vld [vmem:[#allocation34_spill] sm:$0xff] }
 0x3b3   :  { %v2136_v21 = vadd.f32 %v2135_v27, %v2009_v44  ;;  %v2013_v44 = vmul.f32 %v5945_v48, %v5945_v48  ;;  %8661 = vst [vmem:[#allocation16_spill] sm:$0xff] %v5969_v55  ;;  %v5975_v48 = vsub.f32 %v8662_v63, %v5489_v10  ;;  %v8668_v63 = vld [vmem:[#allocation36_spill] sm:$0xff] }
 0x3b5   :  { %v2137_v11 = vadd.f32 %v2136_v21, %v2010_v39  ;;  %v2014_v39 = vmul.f32 %v5951_v35, %v5951_v35  ;;  %8663 = vst [vmem:[#allocation17_spill] sm:$0xff] %v5975_v48  ;;  %v5981_v35 = vsub.f32 %v8664_v49, %v5489_v10  ;;  %v8670_v49 = vld [vmem:[#allocation38_spill] sm:$0xff] }
 0x3b7   :  { %v2138_v18 = vadd.f32 %v2137_v11, %v2011_v23  ;;  %v2015_v23 = vmul.f32 %v5957_v4, %v5957_v4  ;;  %8665 = vst [vmem:[#allocation18_spill] sm:$0xff] %v5981_v35  ;;  %v5987_v4 = vsub.f32 %v8666_v43, %v5489_v10  ;;  %v8672_v43 = vld [vmem:[#allocation39_spill] sm:$0xff] }
 0x3b9   :  { %v2139_v27 = vadd.f32 %v2138_v18, %v2012_v40  ;;  %v2016_v40 = vmul.f32 %v5963_v58, %v5963_v58  ;;  %8667 = vst [vmem:[#allocation20_spill] sm:$0xff] %v5987_v4  ;;  %v5993_v58 = vsub.f32 %v8668_v63, %v5489_v10  ;;  %v8674_v63 = vld [vmem:[#allocation41_spill] sm:$0xff] }
 0x3bb   :  { %v2140_v21 = vadd.f32 %v2139_v27, %v2013_v44  ;;  %v2017_v44 = vmul.f32 %v5969_v55, %v5969_v55  ;;  %8669 = vst [vmem:[#allocation22_spill] sm:$0xff] %v5993_v58  ;;  %v5999_v55 = vsub.f32 %v8670_v49, %v5489_v10  ;;  %v8676_v49 = vld [vmem:[#allocation43_spill] sm:$0xff] }
 0x3bd   :  { %v2141_v11 = vadd.f32 %v2140_v21, %v2014_v39  ;;  %v2018_v39 = vmul.f32 %v5975_v48, %v5975_v48  ;;  %8671 = vst [vmem:[#allocation24_spill] sm:$0xff] %v5999_v55  ;;  %v6005_v48 = vsub.f32 %v8672_v43, %v5489_v10  ;;  %v8678_v43 = vld [vmem:[#allocation45_spill] sm:$0xff] }
 0x3bf   :  { %v2142_v18 = vadd.f32 %v2141_v11, %v2015_v23  ;;  %v2019_v23 = vmul.f32 %v5981_v35, %v5981_v35  ;;  %8673 = vst [vmem:[#allocation25_spill] sm:$0xff] %v6005_v48  ;;  %v6011_v35 = vsub.f32 %v8674_v63, %v5489_v10  ;;  %v8680_v63 = vld [vmem:[#allocation47_spill] sm:$0xff] }
 0x3c1   :  { %v2143_v27 = vadd.f32 %v2142_v18, %v2016_v40  ;;  %v2020_v40 = vmul.f32 %v5987_v4, %v5987_v4  ;;  %8675 = vst [vmem:[#allocation27_spill] sm:$0xff] %v6011_v35  ;;  %v6017_v4 = vsub.f32 %v8676_v49, %v5489_v10  ;;  %v8682_v49 = vld [vmem:[#allocation49_spill] sm:$0xff] }
 0x3c3   :  { %v2144_v21 = vadd.f32 %v2143_v27, %v2017_v44  ;;  %v2021_v44 = vmul.f32 %v5993_v58, %v5993_v58  ;;  %8677 = vst [vmem:[#allocation28_spill] sm:$0xff] %v6017_v4  ;;  %v6023_v58 = vsub.f32 %v8678_v43, %v5489_v10  ;;  %v8684_v43 = vld [vmem:[#allocation51_spill] sm:$0xff] }
 0x3c5   :  { %v2145_v11 = vadd.f32 %v2144_v21, %v2018_v39  ;;  %v2022_v39 = vmul.f32 %v5999_v55, %v5999_v55  ;;  %8679 = vst [vmem:[#allocation30_spill] sm:$0xff] %v6023_v58  ;;  %v6029_v55 = vsub.f32 %v8680_v63, %v5489_v10  ;;  %v8686_v63 = vld [vmem:[#allocation53_spill] sm:$0xff] }
 0x3c7   :  { %v2146_v18 = vadd.f32 %v2145_v11, %v2019_v23  ;;  %v2023_v23 = vmul.f32 %v6005_v48, %v6005_v48  ;;  %8681 = vst [vmem:[#allocation32_spill] sm:$0xff] %v6029_v55  ;;  %v6035_v48 = vsub.f32 %v8682_v49, %v5489_v10  ;;  %v8687_v49 = vld [vmem:[#allocation54_spill] sm:$0xff] }
 0x3c9   :  { %v2147_v27 = vadd.f32 %v2146_v18, %v2020_v40  ;;  %v2024_v40 = vmul.f32 %v6011_v35, %v6011_v35  ;;  %8683 = vst [vmem:[#allocation34_spill] sm:$0xff] %v6035_v48  ;;  %v6041_v35 = vsub.f32 %v8684_v43, %v5489_v10  ;;  %v8688_v43 = vld [vmem:[#allocation56_spill] sm:$0xff] }
 0x3cb   :  { %v2148_v21 = vadd.f32 %v2147_v27, %v2021_v44  ;;  %v2025_v44 = vmul.f32 %v6017_v4, %v6017_v4  ;;  %8685 = vst [vmem:[#allocation36_spill] sm:$0xff] %v6041_v35  ;;  %v6047_v4 = vsub.f32 %v8686_v63, %v5489_v10  ;;  %v8689_v63 = vld [vmem:[#allocation58_spill] sm:$0xff] }
 0x3cd   :  { %v2149_v11 = vadd.f32 %v2148_v21, %v2022_v39  ;;  %v2026_v39 = vmul.f32 %v6023_v58, %v6023_v58  ;;  %v6053_v58 = vsub.f32 %v8687_v49, %v5489_v10  ;;  %v8691_v49 = vld [vmem:[#allocation59_spill] sm:$0xff] }
 0x3cf   :  { %v2150_v18 = vadd.f32 %v2149_v11, %v2023_v23  ;;  %v2027_v23 = vmul.f32 %v6029_v55, %v6029_v55  ;;  %v6059_v55 = vsub.f32 %v8688_v43, %v5489_v10  ;;  %v6077_v43 = vsub.f32 %v8546_v28, %v5489_v10 }
 0x3d1   :  { %v2151_v27 = vadd.f32 %v2150_v18, %v2024_v40  ;;  %v2028_v40 = vmul.f32 %v6035_v48, %v6035_v48  ;;  %v6065_v48 = vsub.f32 %v8689_v63, %v5489_v10  ;;  %v6083_v63 = vsub.f32 %v8547_v14, %v5489_v10 }
 0x3d2   :  { %v2035_v28 = vmul.f32 %v6077_v43, %v6077_v43 }
 0x3d3   :  { %v2152_v21 = vadd.f32 %v2151_v27, %v2025_v44  ;;  %v2029_v44 = vmul.f32 %v6041_v35, %v6041_v35  ;;  %8690 = vst [vmem:[#allocation38_spill] sm:$0xff] %v6065_v48  ;;  %v6071_v35 = vsub.f32 %v8691_v49, %v5489_v10  ;;  %v6089_v49 = vsub.f32 %v8548_v46, %v5489_v10 }
 0x3d4   :  { %v2036_v14 = vmul.f32 %v6083_v63, %v6083_v63 }
 0x3d5   :  { %v2153_v11 = vadd.f32 %v2152_v21, %v2026_v39  ;;  %v2030_v39 = vmul.f32 %v6047_v4, %v6047_v4  ;;  %8692 = vst [vmem:[#allocation39_spill] sm:$0xff] %v6071_v35  ;;  %v2037_v46 = vmul.f32 %v6089_v49, %v6089_v49 }
 0x3d7   :  { %v2154_v18 = vadd.f32 %v2153_v11, %v2027_v23  ;;  %v2031_v23 = vmul.f32 %v6053_v58, %v6053_v58 }
 0x3d9   :  { %v2155_v27 = vadd.f32 %v2154_v18, %v2028_v40  ;;  %v2032_v40 = vmul.f32 %v6059_v55, %v6059_v55 }
 0x3db   :  { %v2156_v21 = vadd.f32 %v2155_v27, %v2029_v44  ;;  %v2033_v44 = vmul.f32 %v6065_v48, %v6065_v48 }
 0x3dd   :  { %v2157_v11 = vadd.f32 %v2156_v21, %v2030_v39  ;;  %v2034_v39 = vmul.f32 %v6071_v35, %v6071_v35 }
 0x3df   :  { %v2158_v18 = vadd.f32 %v2157_v11, %v2031_v23  ;;  %v8693_v11 = vld [vmem:[#allocation66_spill] sm:$0xff] }
 0x3e0   :  { %v6095_v48 = vsub.f32 %v8693_v11, %v5489_v10  ;;  %v6113_v11 = vsub.f32 %v8552_v54, %v5489_v10 }
 0x3e1   :  { %v2159_v27 = vadd.f32 %v2158_v18, %v2032_v40  ;;  %v8695_v18 = vld [vmem:[#allocation68_spill] sm:$0xff] }
 0x3e2   :  { %8694 = vst [vmem:[#allocation41_spill] sm:$0xff] %v6095_v48  ;;  %v6101_v35 = vsub.f32 %v8695_v18, %v5489_v10  ;;  %v6119_v18 = vsub.f32 %v5208_v0, %v5489_v10  ;;  %v2041_v54 = vmul.f32 %v6113_v11, %v6113_v11 }
 0x3e3   :  { %v2160_v21 = vadd.f32 %v2159_v27, %v2033_v44  ;;  %v6107_v27 = vsub.f32 %v8551_v47, %v5489_v10  ;;  %8697 = vst [vmem:[#allocation45_spill] sm:$0xff] %v6113_v11 }
 0x3e4   :  { %8696 = vst [vmem:[#allocation43_spill] sm:$0xff] %v6101_v35  ;;  %v2042_v0 = vmul.f32 %v6119_v18, %v6119_v18 }
 0x3e5   :  { %v2161_v23 = vadd.f32 %v2160_v21, %v2034_v39  ;;  %v2038_v39 = vmul.f32 %v6095_v48, %v6095_v48  ;;  %8698 = vst [vmem:[#allocation47_spill] sm:$0xff] %v6119_v18  ;;  %v2040_v47 = vmul.f32 %v6107_v27, %v6107_v27 }
 0x3e7   :  { %v2162_v40 = vadd.f32 %v2161_v23, %v2035_v28  ;;  %v2039_v28 = vmul.f32 %v6101_v35, %v6101_v35 }
 0x3e9   :  { %v2163_v44 = vadd.f32 %v2162_v40, %v2036_v14  ;;  %v8699_v40 = vld [vmem:[#allocation72_spill] sm:$0xff] }
 0x3ea   :  { %v6125_v48 = vsub.f32 %v8699_v40, %v5489_v10  ;;  %v8704_v40 = vld [vmem:[#allocation74_spill] sm:$0xff] }
 0x3eb   :  { %v2164_v21 = vadd.f32 %v2163_v44, %v2037_v46  ;;  %v8701_v44 = vld [vmem:[#allocation73_spill] sm:$0xff]  ;;  %v6143_v11 = vsub.f32 %v8704_v40, %v5489_v10  ;;  %v8710_v40 = vld [vmem:[#allocation78_spill] sm:$0xff] }
 0x3ec   :  { %8700 = vst [vmem:[#allocation49_spill] sm:$0xff] %v6125_v48  ;;  %v6131_v35 = vsub.f32 %v8701_v44, %v5489_v10  ;;  %v8706_v44 = vld [vmem:[#allocation76_spill] sm:$0xff] }
 0x3ed   :  { %v2165_v23 = vadd.f32 %v2164_v21, %v2038_v39  ;;  %v6137_v21 = vsub.f32 %v5244_v7, %v5489_v10  ;;  %8705 = vst [vmem:[#allocation54_spill] sm:$0xff] %v6143_v11  ;;  %v6149_v18 = vsub.f32 %v8706_v44, %v5489_v10  ;;  %v8712_v44 = vld [vmem:[#allocation79_spill] sm:$0xff] }
 0x3ee   :  { %8702 = vst [vmem:[#allocation51_spill] sm:$0xff] %v6131_v35 }
 0x3ef   :  { %v2166_v14 = vadd.f32 %v2165_v23, %v2039_v28  ;;  %8703 = vst [vmem:[#allocation53_spill] sm:$0xff] %v6137_v21  ;;  %v2043_v28 = vmul.f32 %v6125_v48, %v6125_v48  ;;  %v2045_v7 = vmul.f32 %v6137_v21, %v6137_v21  ;;  %v6167_v21 = vsub.f32 %v8712_v44, %v5489_v10  ;;  %v8718_v44 = vld [vmem:[#allocation82_spill] sm:$0xff] }
 0x3f0   :  { %8707 = vst [vmem:[#allocation56_spill] sm:$0xff] %v6149_v18 }
 0x3f1   :  { %v2167_v46 = vadd.f32 %v2166_v14, %v2040_v47  ;;  %v2044_v47 = vmul.f32 %v6131_v35, %v6131_v35  ;;  %v6161_v35 = vsub.f32 %v8710_v40, %v5489_v10  ;;  %8713 = vst [vmem:[#allocation66_spill] sm:$0xff] %v6167_v21  ;;  %v8716_v40 = vld [vmem:[#allocation81_spill] sm:$0xff] }
 0x3f3   :  { %v2168_v39 = vadd.f32 %v2167_v46, %v2041_v54  ;;  %v8708_v46 = vld [vmem:[#allocation77_spill] sm:$0xff]  ;;  %8711 = vst [vmem:[#allocation59_spill] sm:$0xff] %v6161_v35 }
 0x3f4   :  { %v6155_v48 = vsub.f32 %v8708_v46, %v5489_v10  ;;  %v8714_v46 = vld [vmem:[#allocation80_spill] sm:$0xff] }
 0x3f5   :  { %v2169_v23 = vadd.f32 %v2168_v39, %v2042_v0  ;;  %v2046_v0 = vmul.f32 %v6143_v11, %v6143_v11  ;;  %v6173_v11 = vsub.f32 %v8714_v46, %v5489_v10  ;;  %v8720_v46 = vld [vmem:[#allocation83_spill] sm:$0xff] }
 0x3f6   :  { %8709 = vst [vmem:[#allocation58_spill] sm:$0xff] %v6155_v48 }
 0x3f7   :  { %v2170_v14 = vadd.f32 %v2169_v23, %v2043_v28  ;;  %v2047_v28 = vmul.f32 %v6149_v18, %v6149_v18  ;;  %8715 = vst [vmem:[#allocation68_spill] sm:$0xff] %v6173_v11  ;;  %v6179_v18 = vsub.f32 %v8716_v40, %v5489_v10  ;;  %v8721_v40 = vld [vmem:[#allocation84_spill] sm:$0xff] }
 0x3f9   :  { %v2171_v54 = vadd.f32 %v2170_v14, %v2044_v47  ;;  %v2048_v47 = vmul.f32 %v6155_v48, %v6155_v48  ;;  %8717 = vst [vmem:[#allocation72_spill] sm:$0xff] %v6179_v18  ;;  %v6185_v48 = vsub.f32 %v8718_v44, %v5489_v10  ;;  %v8722_v44 = vld [vmem:[#allocation93_spill] sm:$0xff] }
 0x3fb   :  { %v2172_v39 = vadd.f32 %v2171_v54, %v2045_v7  ;;  %v2049_v7 = vmul.f32 %v6161_v35, %v6161_v35  ;;  %8719 = vst [vmem:[#allocation73_spill] sm:$0xff] %v6185_v48  ;;  %v6191_v35 = vsub.f32 %v8720_v46, %v5489_v10  ;;  %v8724_v46 = vld [vmem:[#allocation94_spill] sm:$0xff] }
 0x3fd   :  { %v2173_v23 = vadd.f32 %v2172_v39, %v2046_v0  ;;  %v2050_v0 = vmul.f32 %v6167_v21, %v6167_v21  ;;  %v6197_v21 = vsub.f32 %v8721_v40, %v5489_v10  ;;  %v8725_v40 = vld [vmem:[#allocation98_spill] sm:$0xff] }
 0x3ff   :  { %v2174_v14 = vadd.f32 %v2173_v23, %v2047_v28  ;;  %v2051_v28 = vmul.f32 %v6173_v11, %v6173_v11  ;;  %v6203_v11 = vsub.f32 %v8722_v44, %v5489_v10  ;;  %v6221_v44 = vsub.f32 %v5486_v37, %v5489_v10 }
 0x400   :  { %v2061_v37 = vmul.f32 %v5495_v52, %v5495_v52 }
 0x401   :  { %v2175_v54 = vadd.f32 %v2174_v14, %v2048_v47  ;;  %v2052_v47 = vmul.f32 %v6179_v18, %v6179_v18  ;;  %8723 = vst [vmem:[#allocation74_spill] sm:$0xff] %v6203_v11  ;;  %v6209_v18 = vsub.f32 %v8724_v46, %v5489_v10 }
 0x403   :  { %v2176_v39 = vadd.f32 %v2175_v54, %v2049_v7  ;;  %v2053_v7 = vmul.f32 %v6185_v48, %v6185_v48  ;;  %v6215_v48 = vsub.f32 %v8725_v40, %v5489_v10 }
 0x405   :  { %v2177_v23 = vadd.f32 %v2176_v39, %v2050_v0  ;;  %v2054_v0 = vmul.f32 %v6191_v35, %v6191_v35  ;;  %v2058_v46 = vmul.f32 %v6215_v48, %v6215_v48 }
 0x407   :  { %v2178_v14 = vadd.f32 %v2177_v23, %v2051_v28  ;;  %v2055_v28 = vmul.f32 %v6197_v21, %v6197_v21 }
 0x409   :  { %v2179_v54 = vadd.f32 %v2178_v14, %v2052_v47  ;;  %v2056_v47 = vmul.f32 %v6203_v11, %v6203_v11  ;;  %v2060_v11 = vmul.f32 %v5492_v12, %v5492_v12 }
 0x40b   :  { %v2180_v39 = vadd.f32 %v2179_v54, %v2053_v7  ;;  %v2057_v7 = vmul.f32 %v6209_v18, %v6209_v18 }
 0x40d   :  { %v2181_v23 = vadd.f32 %v2180_v39, %v2054_v0  ;;  %v2059_v39 = vmul.f32 %v6221_v44, %v6221_v44 }
 0x40f   :  { %v2182_v14 = vadd.f32 %v2181_v23, %v2055_v28  ;;  %v2062_v23 = vmul.f32 %v5498_v51, %v5498_v51 }
 0x411   :  { %v2183_v54 = vadd.f32 %v2182_v14, %v2056_v47  ;;  %v2063_v14 = vmul.f32 %v5501_v17, %v5501_v17 }
 0x413   :  { %v2184_v0 = vadd.f32 %v2183_v54, %v2057_v7  ;;  %v2064_v54 = vmul.f32 %v5504_v26, %v5504_v26 }
 0x415   :  { %v2185_v40 = vadd.f32 %v2184_v0, %v2058_v46  ;;  %v2065_v0 = vmul.f32 %v5507_v56, %v5507_v56 }
 0x417   :  { %v2186_v28 = vadd.f32 %v2185_v40, %v2059_v39  ;;  %v2066_v40 = vmul.f32 %v5510_v57, %v5510_v57 }
 0x419   :  { %v2187_v10 = vadd.f32 %v2186_v28, %v2060_v11  ;;  %v2067_v28 = vmul.f32 %v5513_v36, %v5513_v36 }
 0x41b   :  { %v2188_v47 = vadd.f32 %v2187_v10, %v2061_v37  ;;  %v2068_v10 = vmul.f32 %v5516_v3, %v5516_v3 }
 0x41d   :  { %v2189_v7 = vadd.f32 %v2188_v47, %v2062_v23  ;;  %v2069_v47 = vmul.f32 %v5519_v9, %v5519_v9 }
 0x41f   :  { %v2190_v46 = vadd.f32 %v2189_v7, %v2063_v14 }
 0x421   :  { %v2191_v39 = vadd.f32 %v2190_v46, %v2064_v54 }
 0x423   :  { %v2192_v11 = vadd.f32 %v2191_v39, %v2065_v0 }
 0x425   :  { %v2193_v37 = vadd.f32 %v2192_v11, %v2066_v40 }
 0x427   :  { %v2194_v23 = vadd.f32 %v2193_v37, %v2067_v28  ;;  %v6252_v37 = vld [vmem:[%s8179_s2] ss:$0 sm:$0xff] }
 0x429   :  { %v2195_v14 = vadd.f32 %v2194_v23, %v2068_v10 }
 0x42b   :  { %v2196_v7 = vadd.f32 %v2195_v14, %v2069_v47 }
 0x42d   :  { %v2197_v26 = vrot.slane %v2196_v7, 4 }
 0x42f   :  { %v2198_v56 = vadd.f32 %v2197_v26, %v2196_v7 }
 0x431   :  { %v2199_v54 = vrot.slane %v2198_v56, 2 }
 0x433   :  { %v2200_v46 = vadd.f32 %v2199_v54, %v2198_v56 }
 0x435   :  { %v2201_v17 = vrot.slane %v2200_v46, 1 }
 0x437   :  { %v2202_v57 = vadd.f32 %v2201_v17, %v2200_v46  ;;  %v6259_v17 = vld [vmem:[%s8180_s3] ss:$0 sm:$0xff] }
 0x438   :  { %8726 = vst [vmem:[#allocation76_spill] sm:$0xff] %v6259_v17 }
 0x439   :  { %v2203_v0 = vmul.f32 0.0009765625, %v2202_v57 }
 0x43b   :  { %v2204_v39 = vadd.f32 1e-05, %v2203_v0 }
 0x43d   :  { %4177 = vrsqrt.f32 %v2204_v39  ;;  %vm2211_vm2 = vweird.f32 %v2204_v39 }
 0x443   :  { %v4178_v36 = vpop.eup %4177 }
 0x444   :  { %v2206_v40 = vmul.f32 %v4178_v36, %v2204_v39  ;;  %vm2212_vm1 = vweird.f32 %v4178_v36 }
 0x445   :  { %vm2213_vm3 = vmor %vm2211_vm2, %vm2212_vm1 }
 0x446   :  { %v2207_v11 = vmul.f32 %v4178_v36, %v2206_v40 }
 0x448   :  { %v2208_v51 = vmul.f32 0.5, %v2207_v11 }
 0x44a   :  { %v2209_v52 = vsub.f32 1.5, %v2208_v51 }
 0x44c   :  { %v2210_v28 = vmul.f32 %v4178_v36, %v2209_v52 }
 0x44e   :  { %v6254_v26 = vsel %vm2213_vm3, %v4178_v36, %v2210_v28  ;;  %v8731_v28 = vld [vmem:[#allocation9_spill] sm:$0xff] }
 0x44f   :  { %v2341_v56 = vmul.f32 %v6254_v26, %v5516_v3  ;;  %v2342_v52 = vmul.f32 %v6254_v26, %v5519_v9  ;;  %v6267_v51 = vmul.f32 %v6254_v26, %v5523_v50  ;;  %v6271_v57 = vmul.f32 %v6254_v26, %v5527_v20 }
 0x450   :  { %v6275_v36 = vmul.f32 %v6254_v26, %v5531_v42  ;;  %v6279_v10 = vmul.f32 %v6254_v26, %v5539_v15  ;;  %v6283_v3 = vmul.f32 %v6254_v26, %v5543_v8  ;;  %v6287_v9 = vmul.f32 %v6254_v26, %v5549_v34 }
 0x451   :  { %v2472_v50 = vmul.f32 %v6252_v37, %v2341_v56  ;;  %v2473_v20 = vmul.f32 %v6252_v37, %v2342_v52  ;;  %v6293_v42 = vmul.f32 %v6254_v26, %v5555_v29  ;;  %v6297_v15 = vmul.f32 %v6254_v26, %v5561_v33  ;;  %v8732_v52 = vld [vmem:[#allocation10_spill] sm:$0xff] }
 0x452   :  { %v6301_v8 = vmul.f32 %v6254_v26, %v5567_v53  ;;  %v6305_v34 = vmul.f32 %v6254_v26, %v5573_v2  ;;  %v6309_v23 = vmul.f32 %v6254_v26, %v5579_v45  ;;  %v6313_v29 = vmul.f32 %v6254_v26, %v5585_v19 }
 0x453   :  { %v2603_v47 = vadd.f32 %v6259_v17, %v2472_v50  ;;  %v2604_v33 = vadd.f32 %v6259_v17, %v2473_v20  ;;  %v6319_v53 = vmul.f32 %v6254_v26, %v5591_v30  ;;  %v6323_v2 = vmul.f32 %v6254_v26, %v5597_v60  ;;  %v8733_v20 = vld [vmem:[#allocation11_spill] sm:$0xff] }
 0x454   :  { %v6327_v45 = vmul.f32 %v6254_v26, %v5603_v62  ;;  %v6331_v19 = vmul.f32 %v6254_v26, %v5609_v24  ;;  %v6335_v14 = vmul.f32 %v6254_v26, %v5615_v41  ;;  %v6339_v30 = vmul.f32 %v6254_v26, %v5621_v31  ;;  %v8727_v62 = vld [vmem:[#allocation5_spill] sm:$0xff]  ;;  %v8728_v24 = vld [vmem:[#allocation6_spill] sm:$0xff]  ;;  %v8729_v41 = vld [vmem:[#allocation7_spill] sm:$0xff] }
 0x455   :  { %v2731_v7 = vmax.f32 %v2603_v47, 0.0  ;;  %v2732_v54 = vmax.f32 %v2604_v33, 0.0  ;;  %v6343_v60 = vmul.f32 %v6254_v26, %v5627_v59  ;;  %v6347_v46 = vmul.f32 %v6254_v26, %v8727_v62  ;;  %v8730_v31 = vld [vmem:[#allocation8_spill] sm:$0xff]  ;;  %v8734_v33 = vld [vmem:[#allocation13_spill] sm:$0xff]  ;;  %v8743_v17 = vld [vmem:[#allocation31_spill] sm:$0xff] }
 0x456   :  { %v6351_v0 = vmul.f32 %v6254_v26, %v8728_v24  ;;  %v6355_v39 = vmul.f32 %v6254_v26, %v8729_v41  ;;  %v6359_v40 = vmul.f32 %v6254_v26, %v8730_v31  ;;  %v6363_v59 = vmul.f32 %v6254_v26, %v5657_v1  ;;  %v8735_v24 = vld [vmem:[#allocation19_spill] sm:$0xff] }
 0x457   :  { %v4094_v11 = vpack.c.bf16 %v2732_v54, %v2731_v7  ;;  %v6367_v56 = vmul.f32 %v6254_v26, %v8731_v28  ;;  %v6371_v50 = vmul.f32 %v6254_v26, %v8732_v52  ;;  %v6375_v47 = vmul.f32 %v6254_v26, %v8733_v20  ;;  %v8736_v7 = vld [vmem:[#allocation21_spill] sm:$0xff]  ;;  %v8737_v41 = vld [vmem:[#allocation23_spill] sm:$0xff]  ;;  %v8738_v52 = vld [vmem:[#allocation26_spill] sm:$0xff] }
 0x458   :  { %v6379_v62 = vmul.f32 %v6254_v26, %v8734_v33  ;;  %v6383_v1 = vmul.f32 %v6254_v26, %v8735_v24  ;;  %v6387_v54 = vmul.f32 %v6254_v26, %v8736_v7  ;;  %v6391_v31 = vmul.f32 %v6254_v26, %v8737_v41  ;;  %v8740_v33 = vld [vmem:[#allocation29_spill] sm:$0xff] }
 0x459   :  { %4158 = vst [vmem:[#allocation2 + $0x1f8] sm:$0xff] %v4094_v11   ;;  %v6395_v28 = vmul.f32 %v6254_v26, %v5705_v61  ;;  %v6399_v20 = vmul.f32 %v6254_v26, %v8738_v52  ;;  %v6403_v24 = vmul.f32 %v6254_v26, %v8740_v33  ;;  %v6407_v7 = vmul.f32 %v6254_v26, %v5723_v13  ;;  %v8744_v11 = vld [vmem:[#allocation33_spill] sm:$0xff] }
 0x45a   :  { %v6411_v41 = vmul.f32 %v6254_v26, %v8743_v17  ;;  %v6415_v61 = vmul.f32 %v6254_v26, %v8744_v11  ;;  %v6419_v52 = vmul.f32 %v6254_v26, %v5741_v22  ;;  %v6435_v11 = vmul.f32 %v6254_v26, %v5765_v32 }
 0x45b   :  { %8739 = vst [vmem:[#allocation77_spill] sm:$0xff] %v6399_v20  ;;  %v8745_v20 = vld [vmem:[#allocation35_spill] sm:$0xff]  ;;  %v6439_v22 = vmul.f32 %v6254_v26, %v5771_v5  ;;  %v6455_v32 = vmul.f32 %v6254_v26, %v5795_v6 }
 0x45c   :  { %8741 = vst [vmem:[#allocation78_spill] sm:$0xff] %v6403_v24  ;;  %v6423_v33 = vmul.f32 %v6254_v26, %v8745_v20  ;;  %v8746_v24 = vld [vmem:[#allocation37_spill] sm:$0xff]  ;;  %v6443_v20 = vmul.f32 %v6254_v26, %v5777_v38 }
 0x45d   :  { %8742 = vst [vmem:[#allocation79_spill] sm:$0xff] %v6407_v7  ;;  %v6427_v13 = vmul.f32 %v6254_v26, %v8746_v24  ;;  %v8747_v7 = vld [vmem:[#allocation40_spill] sm:$0xff]  ;;  %v6447_v24 = vmul.f32 %v6254_v26, %v5783_v16 }
 0x45e   :  { %v6431_v17 = vmul.f32 %v6254_v26, %v8747_v7  ;;  %8748 = vst [vmem:[#allocation80_spill] sm:$0xff] %v6435_v11  ;;  %v6451_v7 = vmul.f32 %v6254_v26, %v5789_v25  ;;  %v8754_v11 = vld [vmem:[#allocation42_spill] sm:$0xff] }
 0x45f   :  { %8749 = vst [vmem:[#allocation81_spill] sm:$0xff] %v6439_v22  ;;  %v6459_v5 = vmul.f32 %v6254_v26, %v8754_v11  ;;  %v8756_v22 = vld [vmem:[#allocation44_spill] sm:$0xff] }
 0x460   :  { %8750 = vst [vmem:[#allocation82_spill] sm:$0xff] %v6443_v20  ;;  %v6463_v38 = vmul.f32 %v6254_v26, %v8756_v22  ;;  %v8758_v20 = vld [vmem:[#allocation46_spill] sm:$0xff] }
 0x461   :  { %8751 = vst [vmem:[#allocation83_spill] sm:$0xff] %v6447_v24  ;;  %v6467_v16 = vmul.f32 %v6254_v26, %v8758_v20  ;;  %v8760_v24 = vld [vmem:[#allocation48_spill] sm:$0xff] }
 0x462   :  { %8752 = vst [vmem:[#allocation84_spill] sm:$0xff] %v6451_v7  ;;  %v6471_v25 = vmul.f32 %v6254_v26, %v8760_v24  ;;  %v8762_v7 = vld [vmem:[#allocation50_spill] sm:$0xff] }
 0x463   :  { %8753 = vst [vmem:[#allocation93_spill] sm:$0xff] %v6455_v32  ;;  %v6475_v6 = vmul.f32 %v6254_v26, %v8762_v7  ;;  %v8764_v32 = vld [vmem:[#allocation52_spill] sm:$0xff] }
 0x464   :  { %8755 = vst [vmem:[#allocation94_spill] sm:$0xff] %v6459_v5  ;;  %v6479_v11 = vmul.f32 %v6254_v26, %v8764_v32  ;;  %v8766_v5 = vld [vmem:[#allocation55_spill] sm:$0xff] }
 0x465   :  { %8757 = vst [vmem:[#allocation98_spill] sm:$0xff] %v6463_v38  ;;  %v6483_v22 = vmul.f32 %v6254_v26, %v8766_v5  ;;  %v8768_v38 = vld [vmem:[#allocation57_spill] sm:$0xff] }
 0x466   :  { %8759 = vst [vmem:[#allocation5_spill] sm:$0xff] %v6467_v16  ;;  %v6487_v20 = vmul.f32 %v6254_v26, %v8768_v38  ;;  %v8770_v16 = vld [vmem:[#allocation60_spill] sm:$0xff] }
 0x467   :  { %8761 = vst [vmem:[#allocation6_spill] sm:$0xff] %v6471_v25  ;;  %v6491_v24 = vmul.f32 %v6254_v26, %v8770_v16  ;;  %v8772_v25 = vld [vmem:[#allocation62_spill] sm:$0xff] }
 0x468   :  { %8763 = vst [vmem:[#allocation7_spill] sm:$0xff] %v6475_v6  ;;  %v6495_v7 = vmul.f32 %v6254_v26, %v8772_v25  ;;  %v8774_v6 = vld [vmem:[#allocation65_spill] sm:$0xff] }
 0x469   :  { %8765 = vst [vmem:[#allocation8_spill] sm:$0xff] %v6479_v11  ;;  %v6499_v32 = vmul.f32 %v6254_v26, %v8774_v6  ;;  %v8776_v11 = vld [vmem:[#allocation67_spill] sm:$0xff] }
 0x46a   :  { %8767 = vst [vmem:[#allocation9_spill] sm:$0xff] %v6483_v22  ;;  %v6503_v5 = vmul.f32 %v6254_v26, %v8776_v11  ;;  %v8778_v22 = vld [vmem:[#allocation69_spill] sm:$0xff] }
 0x46b   :  { %8769 = vst [vmem:[#allocation10_spill] sm:$0xff] %v6487_v20  ;;  %v6507_v38 = vmul.f32 %v6254_v26, %v8778_v22  ;;  %v8780_v20 = vld [vmem:[#allocation75_spill] sm:$0xff] }
 0x46c   :  { %8771 = vst [vmem:[#allocation11_spill] sm:$0xff] %v6491_v24  ;;  %v6511_v16 = vmul.f32 %v6254_v26, %v8780_v20  ;;  %v8782_v24 = vld [vmem:[#allocation85_spill] sm:$0xff] }
 0x46d   :  { %8773 = vst [vmem:[#allocation13_spill] sm:$0xff] %v6495_v7  ;;  %v6515_v25 = vmul.f32 %v6254_v26, %v8782_v24  ;;  %v8784_v7 = vld [vmem:[#allocation86_spill] sm:$0xff] }
 0x46e   :  { %8775 = vst [vmem:[#allocation19_spill] sm:$0xff] %v6499_v32  ;;  %v6519_v6 = vmul.f32 %v6254_v26, %v8784_v7  ;;  %v8786_v32 = vld [vmem:[#allocation87_spill] sm:$0xff] }
 0x46f   :  { %8777 = vst [vmem:[#allocation21_spill] sm:$0xff] %v6503_v5  ;;  %v6523_v11 = vmul.f32 %v6254_v26, %v8786_v32  ;;  %v8788_v5 = vld [vmem:[#allocation88_spill] sm:$0xff] }
 0x470   :  { %8779 = vst [vmem:[#allocation23_spill] sm:$0xff] %v6507_v38  ;;  %v6527_v22 = vmul.f32 %v6254_v26, %v8788_v5  ;;  %v8790_v38 = vld [vmem:[#allocation89_spill] sm:$0xff] }
 0x471   :  { %8781 = vst [vmem:[#allocation26_spill] sm:$0xff] %v6511_v16  ;;  %v6531_v20 = vmul.f32 %v6254_v26, %v8790_v38  ;;  %v8792_v16 = vld [vmem:[#allocation90_spill] sm:$0xff] }
 0x472   :  { %8783 = vst [vmem:[#allocation29_spill] sm:$0xff] %v6515_v25  ;;  %v6535_v24 = vmul.f32 %v6254_v26, %v8792_v16  ;;  %v8794_v25 = vld [vmem:[#allocation91_spill] sm:$0xff] }
 0x473   :  { %8785 = vst [vmem:[#allocation31_spill] sm:$0xff] %v6519_v6  ;;  %v6539_v7 = vmul.f32 %v6254_v26, %v8794_v25  ;;  %v8796_v6 = vld [vmem:[#allocation92_spill] sm:$0xff] }
 0x474   :  { %8787 = vst [vmem:[#allocation33_spill] sm:$0xff] %v6523_v11  ;;  %v6543_v32 = vmul.f32 %v6254_v26, %v8796_v6  ;;  %v8798_v11 = vld [vmem:[#allocation95_spill] sm:$0xff] }
 0x475   :  { %8789 = vst [vmem:[#allocation35_spill] sm:$0xff] %v6527_v22  ;;  %v6547_v5 = vmul.f32 %v6254_v26, %v8798_v11  ;;  %v8800_v22 = vld [vmem:[#allocation96_spill] sm:$0xff] }
 0x476   :  { %8791 = vst [vmem:[#allocation37_spill] sm:$0xff] %v6531_v20  ;;  %v6551_v38 = vmul.f32 %v6254_v26, %v8800_v22  ;;  %v8802_v20 = vld [vmem:[#allocation97_spill] sm:$0xff] }
 0x477   :  { %8793 = vst [vmem:[#allocation40_spill] sm:$0xff] %v6535_v24  ;;  %v6555_v16 = vmul.f32 %v6254_v26, %v8802_v20  ;;  %v8804_v24 = vld [vmem:[#allocation12_spill] sm:$0xff] }
 0x478   :  { %8795 = vst [vmem:[#allocation42_spill] sm:$0xff] %v6539_v7  ;;  %v6559_v25 = vmul.f32 %v6254_v26, %v8804_v24  ;;  %v8806_v7 = vld [vmem:[#allocation14_spill] sm:$0xff] }
 0x479   :  { %8797 = vst [vmem:[#allocation44_spill] sm:$0xff] %v6543_v32  ;;  %v6563_v6 = vmul.f32 %v6254_v26, %v8806_v7  ;;  %v8808_v32 = vld [vmem:[#allocation15_spill] sm:$0xff] }
 0x47a   :  { %8799 = vst [vmem:[#allocation46_spill] sm:$0xff] %v6547_v5  ;;  %v6567_v11 = vmul.f32 %v6254_v26, %v8808_v32  ;;  %v8810_v5 = vld [vmem:[#allocation16_spill] sm:$0xff] }
 0x47b   :  { %8801 = vst [vmem:[#allocation48_spill] sm:$0xff] %v6551_v38  ;;  %v6571_v22 = vmul.f32 %v6254_v26, %v8810_v5  ;;  %v8812_v38 = vld [vmem:[#allocation17_spill] sm:$0xff] }
 0x47c   :  { %8803 = vst [vmem:[#allocation50_spill] sm:$0xff] %v6555_v16  ;;  %v6575_v20 = vmul.f32 %v6254_v26, %v8812_v38  ;;  %v8814_v16 = vld [vmem:[#allocation18_spill] sm:$0xff] }
 0x47d   :  { %8805 = vst [vmem:[#allocation52_spill] sm:$0xff] %v6559_v25  ;;  %v6579_v24 = vmul.f32 %v6254_v26, %v8814_v16  ;;  %v8816_v25 = vld [vmem:[#allocation20_spill] sm:$0xff] }
 0x47e   :  { %8807 = vst [vmem:[#allocation55_spill] sm:$0xff] %v6563_v6  ;;  %v6583_v7 = vmul.f32 %v6254_v26, %v8816_v25  ;;  %v8818_v6 = vld [vmem:[#allocation22_spill] sm:$0xff] }
 0x47f   :  { %8809 = vst [vmem:[#allocation57_spill] sm:$0xff] %v6567_v11  ;;  %v6587_v32 = vmul.f32 %v6254_v26, %v8818_v6  ;;  %v8820_v11 = vld [vmem:[#allocation24_spill] sm:$0xff] }
 0x480   :  { %8811 = vst [vmem:[#allocation60_spill] sm:$0xff] %v6571_v22  ;;  %v6591_v5 = vmul.f32 %v6254_v26, %v8820_v11  ;;  %v8822_v22 = vld [vmem:[#allocation25_spill] sm:$0xff] }
 0x481   :  { %8813 = vst [vmem:[#allocation62_spill] sm:$0xff] %v6575_v20  ;;  %v6595_v38 = vmul.f32 %v6254_v26, %v8822_v22  ;;  %v8824_v20 = vld [vmem:[#allocation27_spill] sm:$0xff] }
 0x482   :  { %8815 = vst [vmem:[#allocation65_spill] sm:$0xff] %v6579_v24  ;;  %v6599_v16 = vmul.f32 %v6254_v26, %v8824_v20  ;;  %v8825_v24 = vld [vmem:[#allocation28_spill] sm:$0xff] }
 0x483   :  { %8817 = vst [vmem:[#allocation67_spill] sm:$0xff] %v6583_v7  ;;  %v6603_v25 = vmul.f32 %v6254_v26, %v8825_v24  ;;  %v8826_v7 = vld [vmem:[#allocation30_spill] sm:$0xff]  ;;  %v6623_v24 = vmul.f32 %v6254_v26, %v6047_v4  ;;  %v6643_v4 = vmul.f32 %v6254_v26, %v6077_v43  ;;  %v6663_v43 = vmul.f32 %v6254_v26, %v6107_v27 }
 0x484   :  { %8819 = vst [vmem:[#allocation69_spill] sm:$0xff] %v6587_v32  ;;  %v6607_v6 = vmul.f32 %v6254_v26, %v8826_v7  ;;  %v8827_v32 = vld [vmem:[#allocation32_spill] sm:$0xff]  ;;  %v6627_v7 = vmul.f32 %v6254_v26, %v6053_v58  ;;  %v6647_v58 = vmul.f32 %v6254_v26, %v6083_v63 }
 0x485   :  { %8821 = vst [vmem:[#allocation75_spill] sm:$0xff] %v6591_v5  ;;  %v6611_v11 = vmul.f32 %v6254_v26, %v8827_v32  ;;  %v8829_v5 = vld [vmem:[#allocation34_spill] sm:$0xff]  ;;  %v6631_v32 = vmul.f32 %v6254_v26, %v6059_v55  ;;  %v6651_v55 = vmul.f32 %v6254_v26, %v6089_v49 }
 0x486   :  { %8823 = vst [vmem:[#allocation85_spill] sm:$0xff] %v6595_v38  ;;  %v6615_v22 = vmul.f32 %v6254_v26, %v8829_v5  ;;  %v8831_v38 = vld [vmem:[#allocation36_spill] sm:$0xff] }
 0x487   :  { %8828 = vst [vmem:[#allocation86_spill] sm:$0xff] %v6611_v11  ;;  %v6619_v20 = vmul.f32 %v6254_v26, %v8831_v38  ;;  %v8833_v11 = vld [vmem:[#allocation38_spill] sm:$0xff] }
 0x488   :  { %8830 = vst [vmem:[#allocation87_spill] sm:$0xff] %v6615_v22  ;;  %v6635_v5 = vmul.f32 %v6254_v26, %v8833_v11  ;;  %v8835_v22 = vld [vmem:[#allocation39_spill] sm:$0xff] }
 0x489   :  { %8832 = vst [vmem:[#allocation88_spill] sm:$0xff] %v6631_v32  ;;  %v6639_v38 = vmul.f32 %v6254_v26, %v8835_v22  ;;  %v8839_v32 = vld [vmem:[#allocation41_spill] sm:$0xff] }
 0x48a   :  { %8834 = vst [vmem:[#allocation89_spill] sm:$0xff] %v6635_v5  ;;  %v6655_v11 = vmul.f32 %v6254_v26, %v8839_v32  ;;  %v8841_v5 = vld [vmem:[#allocation43_spill] sm:$0xff] }
 0x48b   :  { %8836 = vst [vmem:[#allocation90_spill] sm:$0xff] %v6643_v4  ;;  %v6659_v22 = vmul.f32 %v6254_v26, %v8841_v5  ;;  %v8844_v4 = vld [vmem:[#allocation45_spill] sm:$0xff] }
 0x48c   :  { %8837 = vst [vmem:[#allocation91_spill] sm:$0xff] %v6647_v58  ;;  %v6667_v63 = vmul.f32 %v6254_v26, %v8844_v4  ;;  %v8846_v58 = vld [vmem:[#allocation47_spill] sm:$0xff] }
 0x48d   :  { %8838 = vst [vmem:[#allocation92_spill] sm:$0xff] %v6651_v55  ;;  %v6671_v49 = vmul.f32 %v6254_v26, %v8846_v58  ;;  %v8848_v55 = vld [vmem:[#allocation49_spill] sm:$0xff] }
 0x48e   :  { %8840 = vst [vmem:[#allocation95_spill] sm:$0xff] %v6655_v11  ;;  %v6675_v32 = vmul.f32 %v6254_v26, %v8848_v55  ;;  %v8850_v11 = vld [vmem:[#allocation51_spill] sm:$0xff] }
 0x48f   :  { %8842 = vst [vmem:[#allocation96_spill] sm:$0xff] %v6659_v22  ;;  %v6679_v5 = vmul.f32 %v6254_v26, %v8850_v11  ;;  %v8852_v22 = vld [vmem:[#allocation53_spill] sm:$0xff] }
 0x490   :  { %8843 = vst [vmem:[#allocation97_spill] sm:$0xff] %v6663_v43  ;;  %v6683_v27 = vmul.f32 %v6254_v26, %v8852_v22  ;;  %v8854_v43 = vld [vmem:[#allocation54_spill] sm:$0xff] }
 0x491   :  { %8845 = vst [vmem:[#allocation12_spill] sm:$0xff] %v6667_v63  ;;  %v6687_v4 = vmul.f32 %v6254_v26, %v8854_v43  ;;  %v8856_v63 = vld [vmem:[#allocation56_spill] sm:$0xff] }
 0x492   :  { %8847 = vst [vmem:[#allocation14_spill] sm:$0xff] %v6671_v49  ;;  %v6691_v58 = vmul.f32 %v6254_v26, %v8856_v63  ;;  %v8858_v49 = vld [vmem:[#allocation58_spill] sm:$0xff] }
 0x493   :  { %8849 = vst [vmem:[#allocation15_spill] sm:$0xff] %v6675_v32  ;;  %v6695_v55 = vmul.f32 %v6254_v26, %v8858_v49  ;;  %v8859_v32 = vld [vmem:[#allocation59_spill] sm:$0xff] }
 0x494   :  { %8851 = vst [vmem:[#allocation16_spill] sm:$0xff] %v6679_v5  ;;  %v6699_v11 = vmul.f32 %v6254_v26, %v8859_v32  ;;  %v8860_v5 = vld [vmem:[#allocation66_spill] sm:$0xff]  ;;  %v6719_v32 = vmul.f32 %v6254_v26, %v6191_v35  ;;  %v6739_v35 = vmul.f32 %v6254_v26, %v6221_v44 }
 0x495   :  { %8853 = vst [vmem:[#allocation17_spill] sm:$0xff] %v6683_v27  ;;  %v6703_v22 = vmul.f32 %v6254_v26, %v8860_v5  ;;  %v8862_v27 = vld [vmem:[#allocation68_spill] sm:$0xff]  ;;  %v6723_v5 = vmul.f32 %v6254_v26, %v6197_v21  ;;  %v6743_v21 = vmul.f32 %v6254_v26, %v5492_v12 }
 0x496   :  { %8855 = vst [vmem:[#allocation18_spill] sm:$0xff] %v6687_v4  ;;  %v6707_v43 = vmul.f32 %v6254_v26, %v8862_v27  ;;  %v8863_v4 = vld [vmem:[#allocation72_spill] sm:$0xff] }
 0x497   :  { %8857 = vst [vmem:[#allocation20_spill] sm:$0xff] %v6691_v58  ;;  %v6711_v63 = vmul.f32 %v6254_v26, %v8863_v4  ;;  %v8864_v58 = vld [vmem:[#allocation73_spill] sm:$0xff]  ;;  %v6731_v4 = vmul.f32 %v6254_v26, %v6209_v18 }
 0x498   :  { %8861 = vst [vmem:[#allocation22_spill] sm:$0xff] %v6703_v22  ;;  %v6715_v49 = vmul.f32 %v6254_v26, %v8864_v58  ;;  %v8866_v22 = vld [vmem:[#allocation74_spill] sm:$0xff]  ;;  %v6735_v58 = vmul.f32 %v6254_v26, %v6215_v48 }
 0x499   :  { %8865 = vst [vmem:[#allocation24_spill] sm:$0xff] %v6723_v5  ;;  %v6727_v27 = vmul.f32 %v6254_v26, %v8866_v22  ;;  %v8872_v5 = vld [vmem:[#allocation61_spill] sm:$0xff] }
 0x49a   :  { %8868 = vst [vmem:[#allocation27_spill] sm:$0xff] %v6731_v4  ;;  %v6747_v22 = vmul.f32 %v6254_v26, %v8872_v5  ;;  %v8875_v4 = vld [vmem:[#allocation64_spill] sm:$0xff] }
 0x49b   :  { %8867 = vst [vmem:[#allocation25_spill] sm:$0xff] %v6727_v27  ;;  %v8874_v27 = vld [vmem:[#allocation63_spill] sm:$0xff]  ;;  %v6755_v48 = vmul.f32 %v6254_v26, %v8875_v4  ;;  %v6775_v4 = vmul.f32 %v6252_v37, %v6267_v51  ;;  %v6795_v51 = vmul.f32 %v6252_v37, %v6287_v9  ;;  %v6815_v9 = vmul.f32 %v6252_v37, %v6309_v23 }
 0x49c   :  { %8869 = vst [vmem:[#allocation28_spill] sm:$0xff] %v6735_v58  ;;  %v6751_v18 = vmul.f32 %v6254_v26, %v8874_v27  ;;  %v8876_v58 = vld [vmem:[#allocation70_spill] sm:$0xff]  ;;  %v6835_v23 = vmul.f32 %v6252_v37, %v6331_v19  ;;  %v6855_v19 = vmul.f32 %v6252_v37, %v6351_v0  ;;  %v6875_v0 = vmul.f32 %v6252_v37, %v6371_v50 }
 0x49d   :  { %8870 = vst [vmem:[#allocation30_spill] sm:$0xff] %v6739_v35  ;;  %v6759_v44 = vmul.f32 %v6254_v26, %v8876_v58  ;;  %v8877_v35 = vld [vmem:[#allocation71_spill] sm:$0xff]  ;;  %v6779_v58 = vmul.f32 %v6252_v37, %v6271_v57  ;;  %v6799_v57 = vmul.f32 %v6252_v37, %v6293_v42  ;;  %v6819_v42 = vmul.f32 %v6252_v37, %v6313_v29 }
 0x49e   :  { %8871 = vst [vmem:[#allocation32_spill] sm:$0xff] %v6743_v21  ;;  %v6763_v12 = vmul.f32 %v6254_v26, %v8877_v35  ;;  %v8878_v21 = vld [vmem:[#allocation99_spill] sm:$0xff]  ;;  %v6783_v35 = vmul.f32 %v6252_v37, %v6275_v36  ;;  %v6803_v36 = vmul.f32 %v6252_v37, %v6297_v15  ;;  %v6823_v15 = vmul.f32 %v6252_v37, %v6319_v53 }
 0x49f   :  { %8873 = vst [vmem:[#allocation34_spill] sm:$0xff] %v6747_v22  ;;  %v6767_v5 = vmul.f32 %v6254_v26, %v8878_v21  ;;  %v8879_v22 = vld [vmem:[#allocation100_spill] sm:$0xff]  ;;  %v6787_v21 = vmul.f32 %v6252_v37, %v6279_v10  ;;  %v6807_v10 = vmul.f32 %v6252_v37, %v6301_v8  ;;  %v6827_v8 = vmul.f32 %v6252_v37, %v6323_v2 }
 0x4a0   :  { %v6771_v27 = vmul.f32 %v6254_v26, %v8879_v22  ;;  %v6791_v26 = vmul.f32 %v6252_v37, %v6283_v3  ;;  %v6811_v3 = vmul.f32 %v6252_v37, %v6305_v34  ;;  %v6831_v34 = vmul.f32 %v6252_v37, %v6327_v45  ;;  %v8882_v22 = vld [vmem:[#allocation77_spill] sm:$0xff] }
 0x4a1   :  { %v6839_v29 = vmul.f32 %v6252_v37, %v6335_v14  ;;  %v6843_v53 = vmul.f32 %v6252_v37, %v6339_v30  ;;  %v6847_v2 = vmul.f32 %v6252_v37, %v6343_v60  ;;  %v6851_v45 = vmul.f32 %v6252_v37, %v6347_v46 }
 0x4a2   :  { %v6859_v14 = vmul.f32 %v6252_v37, %v6355_v39  ;;  %v6863_v30 = vmul.f32 %v6252_v37, %v6359_v40  ;;  %v6867_v60 = vmul.f32 %v6252_v37, %v6363_v59  ;;  %v6871_v46 = vmul.f32 %v6252_v37, %v6367_v56 }
 0x4a3   :  { %v6879_v39 = vmul.f32 %v6252_v37, %v6375_v47  ;;  %v6883_v40 = vmul.f32 %v6252_v37, %v6379_v62  ;;  %v6887_v59 = vmul.f32 %v6252_v37, %v6383_v1  ;;  %v6891_v56 = vmul.f32 %v6252_v37, %v6387_v54 }
 0x4a4   :  { %v6895_v50 = vmul.f32 %v6252_v37, %v6391_v31  ;;  %v6899_v47 = vmul.f32 %v6252_v37, %v6395_v28  ;;  %v6903_v62 = vmul.f32 %v6252_v37, %v8882_v22  ;;  %v6915_v31 = vmul.f32 %v6252_v37, %v6411_v41 }
 0x4a5   :  { %8880 = vst [vmem:[#allocation36_spill] sm:$0xff] %v6883_v40  ;;  %v8883_v40 = vld [vmem:[#allocation78_spill] sm:$0xff]  ;;  %v6919_v28 = vmul.f32 %v6252_v37, %v6415_v61  ;;  %v6923_v22 = vmul.f32 %v6252_v37, %v6419_v52  ;;  %v6935_v41 = vmul.f32 %v6252_v37, %v6431_v17 }
 0x4a6   :  { %8881 = vst [vmem:[#allocation38_spill] sm:$0xff] %v6887_v59  ;;  %v6907_v1 = vmul.f32 %v6252_v37, %v8883_v40  ;;  %v8884_v59 = vld [vmem:[#allocation79_spill] sm:$0xff]  ;;  %v6927_v40 = vmul.f32 %v6252_v37, %v6423_v33 }
 0x4a7   :  { %v6911_v54 = vmul.f32 %v6252_v37, %v8884_v59  ;;  %8885 = vst [vmem:[#allocation39_spill] sm:$0xff] %v6915_v31  ;;  %v6931_v59 = vmul.f32 %v6252_v37, %v6427_v13  ;;  %v8891_v31 = vld [vmem:[#allocation80_spill] sm:$0xff] }
 0x4a8   :  { %8886 = vst [vmem:[#allocation41_spill] sm:$0xff] %v6919_v28  ;;  %v6939_v61 = vmul.f32 %v6252_v37, %v8891_v31  ;;  %v8893_v28 = vld [vmem:[#allocation81_spill] sm:$0xff] }
 0x4a9   :  { %8887 = vst [vmem:[#allocation43_spill] sm:$0xff] %v6923_v22  ;;  %v6943_v52 = vmul.f32 %v6252_v37, %v8893_v28  ;;  %v8895_v22 = vld [vmem:[#allocation82_spill] sm:$0xff] }
 0x4aa   :  { %8888 = vst [vmem:[#allocation45_spill] sm:$0xff] %v6927_v40  ;;  %v6947_v33 = vmul.f32 %v6252_v37, %v8895_v22  ;;  %v8897_v40 = vld [vmem:[#allocation83_spill] sm:$0xff] }
 0x4ab   :  { %8889 = vst [vmem:[#allocation47_spill] sm:$0xff] %v6931_v59  ;;  %v6951_v13 = vmul.f32 %v6252_v37, %v8897_v40  ;;  %v8899_v59 = vld [vmem:[#allocation84_spill] sm:$0xff] }
 0x4ac   :  { %8890 = vst [vmem:[#allocation49_spill] sm:$0xff] %v6935_v41  ;;  %v6955_v17 = vmul.f32 %v6252_v37, %v8899_v59  ;;  %v8901_v41 = vld [vmem:[#allocation93_spill] sm:$0xff] }
 0x4ad   :  { %8892 = vst [vmem:[#allocation51_spill] sm:$0xff] %v6939_v61  ;;  %v6959_v31 = vmul.f32 %v6252_v37, %v8901_v41  ;;  %v8903_v61 = vld [vmem:[#allocation94_spill] sm:$0xff] }
 0x4ae   :  { %8894 = vst [vmem:[#allocation53_spill] sm:$0xff] %v6943_v52  ;;  %v6963_v28 = vmul.f32 %v6252_v37, %v8903_v61  ;;  %v8905_v52 = vld [vmem:[#allocation98_spill] sm:$0xff] }
 0x4af   :  { %8896 = vst [vmem:[#allocation54_spill] sm:$0xff] %v6947_v33  ;;  %v6967_v22 = vmul.f32 %v6252_v37, %v8905_v52  ;;  %v8907_v33 = vld [vmem:[#allocation5_spill] sm:$0xff] }
 0x4b0   :  { %8898 = vst [vmem:[#allocation56_spill] sm:$0xff] %v6951_v13  ;;  %v6971_v40 = vmul.f32 %v6252_v37, %v8907_v33  ;;  %v8909_v13 = vld [vmem:[#allocation6_spill] sm:$0xff] }
 0x4b1   :  { %8900 = vst [vmem:[#allocation58_spill] sm:$0xff] %v6955_v17  ;;  %v6975_v59 = vmul.f32 %v6252_v37, %v8909_v13  ;;  %v8911_v17 = vld [vmem:[#allocation7_spill] sm:$0xff] }
 0x4b2   :  { %8902 = vst [vmem:[#allocation59_spill] sm:$0xff] %v6959_v31  ;;  %v6979_v41 = vmul.f32 %v6252_v37, %v8911_v17  ;;  %v8913_v31 = vld [vmem:[#allocation8_spill] sm:$0xff] }
 0x4b3   :  { %8904 = vst [vmem:[#allocation66_spill] sm:$0xff] %v6963_v28  ;;  %v6983_v61 = vmul.f32 %v6252_v37, %v8913_v31  ;;  %v8915_v28 = vld [vmem:[#allocation9_spill] sm:$0xff] }
 0x4b4   :  { %8906 = vst [vmem:[#allocation68_spill] sm:$0xff] %v6967_v22  ;;  %v6987_v52 = vmul.f32 %v6252_v37, %v8915_v28  ;;  %v8917_v22 = vld [vmem:[#allocation10_spill] sm:$0xff] }
 0x4b5   :  { %8908 = vst [vmem:[#allocation72_spill] sm:$0xff] %v6971_v40  ;;  %v6991_v33 = vmul.f32 %v6252_v37, %v8917_v22  ;;  %v8919_v40 = vld [vmem:[#allocation11_spill] sm:$0xff] }
 0x4b6   :  { %8910 = vst [vmem:[#allocation73_spill] sm:$0xff] %v6975_v59  ;;  %v6995_v13 = vmul.f32 %v6252_v37, %v8919_v40  ;;  %v8921_v59 = vld [vmem:[#allocation13_spill] sm:$0xff] }
 0x4b7   :  { %8912 = vst [vmem:[#allocation74_spill] sm:$0xff] %v6979_v41  ;;  %v6999_v17 = vmul.f32 %v6252_v37, %v8921_v59  ;;  %v8923_v41 = vld [vmem:[#allocation19_spill] sm:$0xff] }
 0x4b8   :  { %8914 = vst [vmem:[#allocation61_spill] sm:$0xff] %v6983_v61  ;;  %v7003_v31 = vmul.f32 %v6252_v37, %v8923_v41  ;;  %v8925_v61 = vld [vmem:[#allocation21_spill] sm:$0xff] }
 0x4b9   :  { %8916 = vst [vmem:[#allocation63_spill] sm:$0xff] %v6987_v52  ;;  %v7007_v28 = vmul.f32 %v6252_v37, %v8925_v61  ;;  %v8927_v52 = vld [vmem:[#allocation23_spill] sm:$0xff] }
 0x4ba   :  { %8918 = vst [vmem:[#allocation64_spill] sm:$0xff] %v6991_v33  ;;  %v7011_v22 = vmul.f32 %v6252_v37, %v8927_v52  ;;  %v8929_v33 = vld [vmem:[#allocation26_spill] sm:$0xff] }
 0x4bb   :  { %8920 = vst [vmem:[#allocation70_spill] sm:$0xff] %v6995_v13  ;;  %v7015_v40 = vmul.f32 %v6252_v37, %v8929_v33  ;;  %v8931_v13 = vld [vmem:[#allocation29_spill] sm:$0xff] }
 0x4bc   :  { %8922 = vst [vmem:[#allocation71_spill] sm:$0xff] %v6999_v17  ;;  %v7019_v59 = vmul.f32 %v6252_v37, %v8931_v13  ;;  %v8933_v17 = vld [vmem:[#allocation31_spill] sm:$0xff] }
 0x4bd   :  { %8924 = vst [vmem:[#allocation99_spill] sm:$0xff] %v7003_v31  ;;  %v7023_v41 = vmul.f32 %v6252_v37, %v8933_v17  ;;  %v8935_v31 = vld [vmem:[#allocation33_spill] sm:$0xff] }
 0x4be   :  { %8926 = vst [vmem:[#allocation100_spill] sm:$0xff] %v7007_v28  ;;  %v7027_v61 = vmul.f32 %v6252_v37, %v8935_v31  ;;  %v8937_v28 = vld [vmem:[#allocation35_spill] sm:$0xff] }
 0x4bf   :  { %8928 = vst [vmem:[#allocation77_spill] sm:$0xff] %v7011_v22  ;;  %v7031_v52 = vmul.f32 %v6252_v37, %v8937_v28  ;;  %v8939_v22 = vld [vmem:[#allocation37_spill] sm:$0xff] }
 0x4c0   :  { %8930 = vst [vmem:[#allocation78_spill] sm:$0xff] %v7015_v40  ;;  %v7035_v33 = vmul.f32 %v6252_v37, %v8939_v22  ;;  %v8941_v40 = vld [vmem:[#allocation40_spill] sm:$0xff] }
 0x4c1   :  { %8932 = vst [vmem:[#allocation79_spill] sm:$0xff] %v7019_v59  ;;  %v7039_v13 = vmul.f32 %v6252_v37, %v8941_v40  ;;  %v8943_v59 = vld [vmem:[#allocation42_spill] sm:$0xff] }
 0x4c2   :  { %8934 = vst [vmem:[#allocation80_spill] sm:$0xff] %v7023_v41  ;;  %v7043_v17 = vmul.f32 %v6252_v37, %v8943_v59  ;;  %v8945_v41 = vld [vmem:[#allocation44_spill] sm:$0xff] }
 0x4c3   :  { %8936 = vst [vmem:[#allocation81_spill] sm:$0xff] %v7027_v61  ;;  %v7047_v31 = vmul.f32 %v6252_v37, %v8945_v41  ;;  %v8947_v61 = vld [vmem:[#allocation46_spill] sm:$0xff] }
 0x4c4   :  { %8938 = vst [vmem:[#allocation82_spill] sm:$0xff] %v7031_v52  ;;  %v7051_v28 = vmul.f32 %v6252_v37, %v8947_v61  ;;  %v8949_v52 = vld [vmem:[#allocation48_spill] sm:$0xff] }
 0x4c5   :  { %8940 = vst [vmem:[#allocation83_spill] sm:$0xff] %v7035_v33  ;;  %v7055_v22 = vmul.f32 %v6252_v37, %v8949_v52  ;;  %v8951_v33 = vld [vmem:[#allocation50_spill] sm:$0xff] }
 0x4c6   :  { %8942 = vst [vmem:[#allocation84_spill] sm:$0xff] %v7039_v13  ;;  %v7059_v40 = vmul.f32 %v6252_v37, %v8951_v33  ;;  %v8953_v13 = vld [vmem:[#allocation52_spill] sm:$0xff] }
 0x4c7   :  { %8944 = vst [vmem:[#allocation93_spill] sm:$0xff] %v7043_v17  ;;  %v7063_v59 = vmul.f32 %v6252_v37, %v8953_v13  ;;  %v8955_v17 = vld [vmem:[#allocation55_spill] sm:$0xff] }
 0x4c8   :  { %8946 = vst [vmem:[#allocation94_spill] sm:$0xff] %v7047_v31  ;;  %v7067_v41 = vmul.f32 %v6252_v37, %v8955_v17  ;;  %v8957_v31 = vld [vmem:[#allocation57_spill] sm:$0xff] }
 0x4c9   :  { %8948 = vst [vmem:[#allocation98_spill] sm:$0xff] %v7051_v28  ;;  %v7071_v61 = vmul.f32 %v6252_v37, %v8957_v31  ;;  %v8959_v28 = vld [vmem:[#allocation60_spill] sm:$0xff] }
 0x4ca   :  { %8950 = vst [vmem:[#allocation5_spill] sm:$0xff] %v7055_v22  ;;  %v7075_v52 = vmul.f32 %v6252_v37, %v8959_v28  ;;  %v8961_v22 = vld [vmem:[#allocation62_spill] sm:$0xff] }
 0x4cb   :  { %8952 = vst [vmem:[#allocation6_spill] sm:$0xff] %v7059_v40  ;;  %v7079_v33 = vmul.f32 %v6252_v37, %v8961_v22  ;;  %v8962_v40 = vld [vmem:[#allocation65_spill] sm:$0xff] }
 0x4cc   :  { %8954 = vst [vmem:[#allocation7_spill] sm:$0xff] %v7063_v59  ;;  %v7083_v13 = vmul.f32 %v6252_v37, %v8962_v40  ;;  %v8963_v59 = vld [vmem:[#allocation67_spill] sm:$0xff]  ;;  %v7103_v40 = vmul.f32 %v6252_v37, %v6599_v16  ;;  %v7123_v16 = vmul.f32 %v6252_v37, %v6619_v20  ;;  %v7143_v20 = vmul.f32 %v6252_v37, %v6639_v38 }
 0x4cd   :  { %8956 = vst [vmem:[#allocation8_spill] sm:$0xff] %v7067_v41  ;;  %v7087_v17 = vmul.f32 %v6252_v37, %v8963_v59  ;;  %v8964_v41 = vld [vmem:[#allocation69_spill] sm:$0xff]  ;;  %v7107_v59 = vmul.f32 %v6252_v37, %v6603_v25  ;;  %v7127_v25 = vmul.f32 %v6252_v37, %v6623_v24 }
 0x4ce   :  { %8958 = vst [vmem:[#allocation9_spill] sm:$0xff] %v7071_v61  ;;  %v7091_v31 = vmul.f32 %v6252_v37, %v8964_v41  ;;  %v8966_v61 = vld [vmem:[#allocation75_spill] sm:$0xff]  ;;  %v7111_v41 = vmul.f32 %v6252_v37, %v6607_v6  ;;  %v7131_v6 = vmul.f32 %v6252_v37, %v6627_v7 }
 0x4cf   :  { %8960 = vst [vmem:[#allocation10_spill] sm:$0xff] %v7075_v52  ;;  %v7095_v28 = vmul.f32 %v6252_v37, %v8966_v61  ;;  %v8968_v52 = vld [vmem:[#allocation85_spill] sm:$0xff] }
 0x4d0   :  { %8965 = vst [vmem:[#allocation11_spill] sm:$0xff] %v7091_v31  ;;  %v7099_v22 = vmul.f32 %v6252_v37, %v8968_v52  ;;  %v8970_v31 = vld [vmem:[#allocation86_spill] sm:$0xff] }
 0x4d1   :  { %8967 = vst [vmem:[#allocation13_spill] sm:$0xff] %v7095_v28  ;;  %v7115_v61 = vmul.f32 %v6252_v37, %v8970_v31  ;;  %v8972_v28 = vld [vmem:[#allocation87_spill] sm:$0xff] }
 0x4d2   :  { %8969 = vst [vmem:[#allocation19_spill] sm:$0xff] %v7111_v41  ;;  %v7119_v52 = vmul.f32 %v6252_v37, %v8972_v28  ;;  %v8976_v41 = vld [vmem:[#allocation88_spill] sm:$0xff] }
 0x4d3   :  { %8971 = vst [vmem:[#allocation21_spill] sm:$0xff] %v7115_v61  ;;  %v7135_v31 = vmul.f32 %v6252_v37, %v8976_v41  ;;  %v8978_v61 = vld [vmem:[#allocation89_spill] sm:$0xff] }
 0x4d4   :  { %8973 = vst [vmem:[#allocation23_spill] sm:$0xff] %v7123_v16  ;;  %v7139_v28 = vmul.f32 %v6252_v37, %v8978_v61  ;;  %v8981_v16 = vld [vmem:[#allocation90_spill] sm:$0xff] }
 0x4d5   :  { %8974 = vst [vmem:[#allocation26_spill] sm:$0xff] %v7127_v25  ;;  %v7147_v24 = vmul.f32 %v6252_v37, %v8981_v16  ;;  %v8983_v25 = vld [vmem:[#allocation91_spill] sm:$0xff] }
 0x4d6   :  { %8975 = vst [vmem:[#allocation29_spill] sm:$0xff] %v7131_v6  ;;  %v7151_v7 = vmul.f32 %v6252_v37, %v8983_v25  ;;  %v8985_v6 = vld [vmem:[#allocation92_spill] sm:$0xff] }
 0x4d7   :  { %8977 = vst [vmem:[#allocation31_spill] sm:$0xff] %v7135_v31  ;;  %v7155_v41 = vmul.f32 %v6252_v37, %v8985_v6  ;;  %v8987_v31 = vld [vmem:[#allocation95_spill] sm:$0xff] }
 0x4d8   :  { %8979 = vst [vmem:[#allocation33_spill] sm:$0xff] %v7139_v28  ;;  %v7159_v61 = vmul.f32 %v6252_v37, %v8987_v31  ;;  %v8989_v28 = vld [vmem:[#allocation96_spill] sm:$0xff] }
 0x4d9   :  { %8980 = vst [vmem:[#allocation35_spill] sm:$0xff] %v7143_v20  ;;  %v7163_v38 = vmul.f32 %v6252_v37, %v8989_v28  ;;  %v8991_v20 = vld [vmem:[#allocation97_spill] sm:$0xff] }
 0x4da   :  { %8982 = vst [vmem:[#allocation37_spill] sm:$0xff] %v7147_v24  ;;  %v7167_v16 = vmul.f32 %v6252_v37, %v8991_v20  ;;  %v8993_v24 = vld [vmem:[#allocation12_spill] sm:$0xff] }
 0x4db   :  { %8984 = vst [vmem:[#allocation40_spill] sm:$0xff] %v7151_v7  ;;  %v7171_v25 = vmul.f32 %v6252_v37, %v8993_v24  ;;  %v8995_v7 = vld [vmem:[#allocation14_spill] sm:$0xff] }
 0x4dc   :  { %8986 = vst [vmem:[#allocation42_spill] sm:$0xff] %v7155_v41  ;;  %v7175_v6 = vmul.f32 %v6252_v37, %v8995_v7  ;;  %v8996_v41 = vld [vmem:[#allocation15_spill] sm:$0xff] }
 0x4dd   :  { %8988 = vst [vmem:[#allocation44_spill] sm:$0xff] %v7159_v61  ;;  %v7179_v31 = vmul.f32 %v6252_v37, %v8996_v41  ;;  %v8997_v61 = vld [vmem:[#allocation16_spill] sm:$0xff]  ;;  %v7199_v41 = vmul.f32 %v6252_v37, %v6695_v55  ;;  %v7219_v55 = vmul.f32 %v6252_v37, %v6715_v49 }
 0x4de   :  { %8990 = vst [vmem:[#allocation46_spill] sm:$0xff] %v7163_v38  ;;  %v7183_v28 = vmul.f32 %v6252_v37, %v8997_v61  ;;  %v8999_v38 = vld [vmem:[#allocation17_spill] sm:$0xff]  ;;  %v7203_v61 = vmul.f32 %v6252_v37, %v6699_v11  ;;  %v7223_v11 = vmul.f32 %v6252_v37, %v6719_v32 }
 0x4df   :  { %8992 = vst [vmem:[#allocation48_spill] sm:$0xff] %v7167_v16  ;;  %v7187_v20 = vmul.f32 %v6252_v37, %v8999_v38  ;;  %v9000_v16 = vld [vmem:[#allocation18_spill] sm:$0xff] }
 0x4e0   :  { %8994 = vst [vmem:[#allocation50_spill] sm:$0xff] %v7171_v25  ;;  %v7191_v24 = vmul.f32 %v6252_v37, %v9000_v16  ;;  %v9001_v25 = vld [vmem:[#allocation20_spill] sm:$0xff]  ;;  %v7211_v16 = vmul.f32 %v6252_v37, %v6707_v43 }
 0x4e1   :  { %8998 = vst [vmem:[#allocation52_spill] sm:$0xff] %v7183_v28  ;;  %v7195_v7 = vmul.f32 %v6252_v37, %v9001_v25  ;;  %v9003_v28 = vld [vmem:[#allocation22_spill] sm:$0xff]  ;;  %v7215_v25 = vmul.f32 %v6252_v37, %v6711_v63 }
 0x4e2   :  { %9002 = vst [vmem:[#allocation55_spill] sm:$0xff] %v7203_v61  ;;  %v7207_v38 = vmul.f32 %v6252_v37, %v9003_v28  ;;  %v9009_v61 = vld [vmem:[#allocation24_spill] sm:$0xff] }
 0x4e3   :  { %9005 = vst [vmem:[#allocation60_spill] sm:$0xff] %v7211_v16  ;;  %v7227_v28 = vmul.f32 %v6252_v37, %v9009_v61  ;;  %v9012_v16 = vld [vmem:[#allocation27_spill] sm:$0xff] }
 0x4e4   :  { %9004 = vst [vmem:[#allocation57_spill] sm:$0xff] %v7207_v38  ;;  %v9011_v38 = vld [vmem:[#allocation25_spill] sm:$0xff]  ;;  %v7235_v63 = vmul.f32 %v6252_v37, %v9012_v16  ;;  %v7255_v16 = vmul.f32 %v6252_v37, %v6751_v18  ;;  %v7275_v18 = vmul.f32 %v6252_v37, %v6771_v27 }
 0x4e5   :  { %9006 = vst [vmem:[#allocation62_spill] sm:$0xff] %v7215_v25  ;;  %v7231_v43 = vmul.f32 %v6252_v37, %v9011_v38  ;;  %v9013_v25 = vld [vmem:[#allocation28_spill] sm:$0xff] }
 0x4e6   :  { %9007 = vst [vmem:[#allocation65_spill] sm:$0xff] %v7219_v55  ;;  %v7239_v49 = vmul.f32 %v6252_v37, %v9013_v25  ;;  %v9015_v55 = vld [vmem:[#allocation30_spill] sm:$0xff]  ;;  %v7259_v25 = vmul.f32 %v6252_v37, %v6755_v48 }
 0x4e7   :  { %9008 = vst [vmem:[#allocation67_spill] sm:$0xff] %v7223_v11  ;;  %v7243_v32 = vmul.f32 %v6252_v37, %v9015_v55  ;;  %v9017_v11 = vld [vmem:[#allocation32_spill] sm:$0xff]  ;;  %v7263_v55 = vmul.f32 %v6252_v37, %v6759_v44 }
 0x4e8   :  { %9010 = vst [vmem:[#allocation69_spill] sm:$0xff] %v7227_v28  ;;  %v7247_v61 = vmul.f32 %v6252_v37, %v9017_v11  ;;  %v9019_v28 = vld [vmem:[#allocation34_spill] sm:$0xff]  ;;  %v7267_v11 = vmul.f32 %v6252_v37, %v6763_v12 }
 0x4e9   :  { %9014 = vst [vmem:[#allocation75_spill] sm:$0xff] %v7239_v49  ;;  %v7251_v38 = vmul.f32 %v6252_v37, %v9019_v28  ;;  %v7271_v28 = vmul.f32 %v6252_v37, %v6767_v5  ;;  %v9045_v49 = vld [vmem:[#allocation53_spill] sm:$0xff] }
 0x4ea   :  { %9016 = vst [vmem:[#allocation85_spill] sm:$0xff] %v7243_v32  ;;  %v9043_v32 = vld [vmem:[#allocation51_spill] sm:$0xff] }
 0x4eb   :  { %9018 = vst [vmem:[#allocation86_spill] sm:$0xff] %v7247_v61  ;;  %v9041_v61 = vld [vmem:[#allocation49_spill] sm:$0xff] }
 0x4ec   :  { %9020 = vst [vmem:[#allocation87_spill] sm:$0xff] %v7251_v38  ;;  %v9039_v38 = vld [vmem:[#allocation47_spill] sm:$0xff] }
 0x4ed   :  { %9021 = vst [vmem:[#allocation88_spill] sm:$0xff] %v7255_v16  ;;  %v9027_v16 = vld [vmem:[#allocation76_spill] sm:$0xff] }
 0x4ee   :  { %9022 = vst [vmem:[#allocation89_spill] sm:$0xff] %v7259_v25  ;;  %v7279_v48 = vadd.f32 %v9027_v16, %v6775_v4  ;;  %v7283_v44 = vadd.f32 %v9027_v16, %v6779_v58  ;;  %v7287_v12 = vadd.f32 %v9027_v16, %v6783_v35  ;;  %v7291_v5 = vadd.f32 %v9027_v16, %v6787_v21  ;;  %v9037_v25 = vld [vmem:[#allocation45_spill] sm:$0xff] }
 0x4ef   :  { %9023 = vst [vmem:[#allocation90_spill] sm:$0xff] %v7263_v55  ;;  %v7295_v37 = vadd.f32 %v9027_v16, %v6791_v26  ;;  %v7299_v27 = vadd.f32 %v9027_v16, %v6795_v51  ;;  %v7303_v4 = vadd.f32 %v9027_v16, %v6799_v57  ;;  %v7307_v58 = vadd.f32 %v9027_v16, %v6803_v36  ;;  %v9035_v55 = vld [vmem:[#allocation43_spill] sm:$0xff] }
 0x4f0   :  { %9024 = vst [vmem:[#allocation91_spill] sm:$0xff] %v7267_v11  ;;  %v7311_v35 = vadd.f32 %v9027_v16, %v6807_v10  ;;  %v7315_v21 = vadd.f32 %v9027_v16, %v6811_v3  ;;  %v7319_v26 = vadd.f32 %v9027_v16, %v6815_v9  ;;  %v7323_v51 = vadd.f32 %v9027_v16, %v6819_v42  ;;  %v9033_v11 = vld [vmem:[#allocation41_spill] sm:$0xff] }
 0x4f1   :  { %9025 = vst [vmem:[#allocation92_spill] sm:$0xff] %v7271_v28  ;;  %v7327_v57 = vadd.f32 %v9027_v16, %v6823_v15  ;;  %v7331_v36 = vadd.f32 %v9027_v16, %v6827_v8  ;;  %v7335_v10 = vadd.f32 %v9027_v16, %v6831_v34  ;;  %v7339_v3 = vadd.f32 %v9027_v16, %v6835_v23  ;;  %v9031_v28 = vld [vmem:[#allocation39_spill] sm:$0xff] }
 0x4f2   :  { %9026 = vst [vmem:[#allocation95_spill] sm:$0xff] %v7275_v18  ;;  %v7343_v9 = vadd.f32 %v9027_v16, %v6839_v29  ;;  %v7347_v42 = vadd.f32 %v9027_v16, %v6843_v53  ;;  %v7351_v15 = vadd.f32 %v9027_v16, %v6847_v2  ;;  %v7355_v8 = vadd.f32 %v9027_v16, %v6851_v45  ;;  %v9029_v18 = vld [vmem:[#allocation38_spill] sm:$0xff] }
 0x4f3   :  { %v7359_v34 = vadd.f32 %v9027_v16, %v6855_v19  ;;  %v7363_v23 = vadd.f32 %v9027_v16, %v6859_v14  ;;  %v7367_v29 = vadd.f32 %v9027_v16, %v6863_v30  ;;  %v7371_v53 = vadd.f32 %v9027_v16, %v6867_v60  ;;  %v9028_v14 = vld [vmem:[#allocation36_spill] sm:$0xff] }
 0x4f4   :  { %v7375_v2 = vadd.f32 %v9027_v16, %v6871_v46  ;;  %v7379_v45 = vadd.f32 %v9027_v16, %v6875_v0  ;;  %v7383_v19 = vadd.f32 %v9027_v16, %v6879_v39  ;;  %v7387_v30 = vadd.f32 %v9027_v16, %v9028_v14 }
 0x4f5   :  { %v7391_v60 = vadd.f32 %v9027_v16, %v9029_v18  ;;  %v7395_v46 = vadd.f32 %v9027_v16, %v6891_v56  ;;  %v7399_v0 = vadd.f32 %v9027_v16, %v6895_v50  ;;  %v7403_v39 = vadd.f32 %v9027_v16, %v6899_v47 }
 0x4f6   :  { %v7407_v14 = vadd.f32 %v9027_v16, %v6903_v62  ;;  %v7411_v18 = vadd.f32 %v9027_v16, %v6907_v1  ;;  %v7415_v56 = vadd.f32 %v9027_v16, %v6911_v54  ;;  %v7419_v50 = vadd.f32 %v9027_v16, %v9031_v28 }
 0x4f7   :  { %v7423_v47 = vadd.f32 %v9027_v16, %v9033_v11  ;;  %v7427_v62 = vadd.f32 %v9027_v16, %v9035_v55  ;;  %v7431_v1 = vadd.f32 %v9027_v16, %v9037_v25  ;;  %v7435_v54 = vadd.f32 %v9027_v16, %v9039_v38 }
 0x4f8   :  { %9030 = vst [vmem:[#allocation96_spill] sm:$0xff] %v7415_v56  ;;  %v7439_v28 = vadd.f32 %v9027_v16, %v9041_v61  ;;  %v7443_v11 = vadd.f32 %v9027_v16, %v9043_v32  ;;  %v7447_v55 = vadd.f32 %v9027_v16, %v9045_v49 }
 0x4f9   :  { %9032 = vst [vmem:[#allocation97_spill] sm:$0xff] %v7419_v50 }
 0x4fa   :  { %9034 = vst [vmem:[#allocation12_spill] sm:$0xff] %v7423_v47 }
 0x4fb   :  { %9036 = vst [vmem:[#allocation14_spill] sm:$0xff] %v7427_v62  ;;  %v9047_v62 = vld [vmem:[#allocation54_spill] sm:$0xff] }
 0x4fc   :  { %9038 = vst [vmem:[#allocation15_spill] sm:$0xff] %v7431_v1  ;;  %v7451_v25 = vadd.f32 %v9027_v16, %v9047_v62  ;;  %v9049_v1 = vld [vmem:[#allocation56_spill] sm:$0xff] }
 0x4fd   :  { %9040 = vst [vmem:[#allocation16_spill] sm:$0xff] %v7435_v54  ;;  %v7455_v38 = vadd.f32 %v9027_v16, %v9049_v1  ;;  %v9051_v54 = vld [vmem:[#allocation58_spill] sm:$0xff] }
 0x4fe   :  { %9042 = vst [vmem:[#allocation17_spill] sm:$0xff] %v7439_v28  ;;  %v7459_v61 = vadd.f32 %v9027_v16, %v9051_v54  ;;  %v9053_v28 = vld [vmem:[#allocation59_spill] sm:$0xff] }
 0x4ff   :  { %9044 = vst [vmem:[#allocation18_spill] sm:$0xff] %v7443_v11  ;;  %v7463_v32 = vadd.f32 %v9027_v16, %v9053_v28  ;;  %v9055_v11 = vld [vmem:[#allocation66_spill] sm:$0xff] }
 0x500   :  { %9046 = vst [vmem:[#allocation20_spill] sm:$0xff] %v7447_v55  ;;  %v7467_v49 = vadd.f32 %v9027_v16, %v9055_v11  ;;  %v9057_v55 = vld [vmem:[#allocation68_spill] sm:$0xff] }
 0x501   :  { %9048 = vst [vmem:[#allocation22_spill] sm:$0xff] %v7451_v25  ;;  %v7471_v62 = vadd.f32 %v9027_v16, %v9057_v55  ;;  %v9059_v25 = vld [vmem:[#allocation72_spill] sm:$0xff] }
 0x502   :  { %9050 = vst [vmem:[#allocation24_spill] sm:$0xff] %v7455_v38  ;;  %v7475_v1 = vadd.f32 %v9027_v16, %v9059_v25  ;;  %v9061_v38 = vld [vmem:[#allocation73_spill] sm:$0xff] }
 0x503   :  { %9052 = vst [vmem:[#allocation25_spill] sm:$0xff] %v7459_v61  ;;  %v7479_v54 = vadd.f32 %v9027_v16, %v9061_v38  ;;  %v9063_v61 = vld [vmem:[#allocation74_spill] sm:$0xff] }
 0x504   :  { %9054 = vst [vmem:[#allocation27_spill] sm:$0xff] %v7463_v32  ;;  %v7483_v28 = vadd.f32 %v9027_v16, %v9063_v61  ;;  %v9065_v32 = vld [vmem:[#allocation61_spill] sm:$0xff] }
 0x505   :  { %9056 = vst [vmem:[#allocation28_spill] sm:$0xff] %v7467_v49  ;;  %v7487_v11 = vadd.f32 %v9027_v16, %v9065_v32  ;;  %v9067_v49 = vld [vmem:[#allocation63_spill] sm:$0xff] }
 0x506   :  { %9058 = vst [vmem:[#allocation30_spill] sm:$0xff] %v7471_v62  ;;  %v7491_v55 = vadd.f32 %v9027_v16, %v9067_v49  ;;  %v9069_v62 = vld [vmem:[#allocation64_spill] sm:$0xff] }
 0x507   :  { %9060 = vst [vmem:[#allocation32_spill] sm:$0xff] %v7475_v1  ;;  %v7495_v25 = vadd.f32 %v9027_v16, %v9069_v62  ;;  %v9071_v1 = vld [vmem:[#allocation70_spill] sm:$0xff] }
 0x508   :  { %9062 = vst [vmem:[#allocation34_spill] sm:$0xff] %v7479_v54  ;;  %v7499_v38 = vadd.f32 %v9027_v16, %v9071_v1  ;;  %v9073_v54 = vld [vmem:[#allocation71_spill] sm:$0xff] }
 0x509   :  { %9064 = vst [vmem:[#allocation76_spill] sm:$0xff] %v7483_v28  ;;  %v7503_v61 = vadd.f32 %v9027_v16, %v9073_v54  ;;  %v9075_v28 = vld [vmem:[#allocation99_spill] sm:$0xff] }
 0x50a   :  { %9066 = vst [vmem:[#allocation36_spill] sm:$0xff] %v7487_v11  ;;  %v7507_v32 = vadd.f32 %v9027_v16, %v9075_v28  ;;  %v9077_v11 = vld [vmem:[#allocation100_spill] sm:$0xff] }
 0x50b   :  { %9068 = vst [vmem:[#allocation38_spill] sm:$0xff] %v7491_v55  ;;  %v7511_v49 = vadd.f32 %v9027_v16, %v9077_v11  ;;  %v9079_v55 = vld [vmem:[#allocation77_spill] sm:$0xff] }
 0x50c   :  { %9070 = vst [vmem:[#allocation39_spill] sm:$0xff] %v7495_v25  ;;  %v7515_v62 = vadd.f32 %v9027_v16, %v9079_v55  ;;  %v9081_v25 = vld [vmem:[#allocation78_spill] sm:$0xff] }
 0x50d   :  { %9072 = vst [vmem:[#allocation41_spill] sm:$0xff] %v7499_v38  ;;  %v7519_v1 = vadd.f32 %v9027_v16, %v9081_v25  ;;  %v9083_v38 = vld [vmem:[#allocation79_spill] sm:$0xff] }
 0x50e   :  { %9074 = vst [vmem:[#allocation43_spill] sm:$0xff] %v7503_v61  ;;  %v7523_v54 = vadd.f32 %v9027_v16, %v9083_v38  ;;  %v9085_v61 = vld [vmem:[#allocation80_spill] sm:$0xff] }
 0x50f   :  { %9076 = vst [vmem:[#allocation45_spill] sm:$0xff] %v7507_v32  ;;  %v7527_v28 = vadd.f32 %v9027_v16, %v9085_v61  ;;  %v9087_v32 = vld [vmem:[#allocation81_spill] sm:$0xff] }
 0x510   :  { %9078 = vst [vmem:[#allocation47_spill] sm:$0xff] %v7511_v49  ;;  %v7531_v11 = vadd.f32 %v9027_v16, %v9087_v32  ;;  %v9089_v49 = vld [vmem:[#allocation82_spill] sm:$0xff] }
 0x511   :  { %9080 = vst [vmem:[#allocation49_spill] sm:$0xff] %v7515_v62  ;;  %v7535_v55 = vadd.f32 %v9027_v16, %v9089_v49  ;;  %v9091_v62 = vld [vmem:[#allocation83_spill] sm:$0xff] }
 0x512   :  { %9082 = vst [vmem:[#allocation51_spill] sm:$0xff] %v7519_v1  ;;  %v7539_v25 = vadd.f32 %v9027_v16, %v9091_v62  ;;  %v9093_v1 = vld [vmem:[#allocation84_spill] sm:$0xff] }
 0x513   :  { %9084 = vst [vmem:[#allocation53_spill] sm:$0xff] %v7523_v54  ;;  %v7543_v38 = vadd.f32 %v9027_v16, %v9093_v1  ;;  %v9095_v54 = vld [vmem:[#allocation93_spill] sm:$0xff] }
 0x514   :  { %9086 = vst [vmem:[#allocation54_spill] sm:$0xff] %v7527_v28  ;;  %v7547_v61 = vadd.f32 %v9027_v16, %v9095_v54  ;;  %v9097_v28 = vld [vmem:[#allocation94_spill] sm:$0xff] }
 0x515   :  { %9088 = vst [vmem:[#allocation56_spill] sm:$0xff] %v7531_v11  ;;  %v7551_v32 = vadd.f32 %v9027_v16, %v9097_v28  ;;  %v9099_v11 = vld [vmem:[#allocation98_spill] sm:$0xff] }
 0x516   :  { %9090 = vst [vmem:[#allocation58_spill] sm:$0xff] %v7535_v55  ;;  %v7555_v49 = vadd.f32 %v9027_v16, %v9099_v11  ;;  %v9101_v55 = vld [vmem:[#allocation5_spill] sm:$0xff] }
 0x517   :  { %9092 = vst [vmem:[#allocation59_spill] sm:$0xff] %v7539_v25  ;;  %v7559_v62 = vadd.f32 %v9027_v16, %v9101_v55  ;;  %v9103_v25 = vld [vmem:[#allocation6_spill] sm:$0xff] }
 0x518   :  { %9094 = vst [vmem:[#allocation66_spill] sm:$0xff] %v7543_v38  ;;  %v7563_v1 = vadd.f32 %v9027_v16, %v9103_v25  ;;  %v9105_v38 = vld [vmem:[#allocation7_spill] sm:$0xff]  ;;  %v7583_v25 = vadd.f32 %v9027_v16, %v7079_v33  ;;  %v7603_v33 = vadd.f32 %v9027_v16, %v7099_v22  ;;  %v7623_v22 = vadd.f32 %v9027_v16, %v7119_v52 }
 0x519   :  { %9096 = vst [vmem:[#allocation68_spill] sm:$0xff] %v7547_v61  ;;  %v7567_v54 = vadd.f32 %v9027_v16, %v9105_v38  ;;  %v9107_v61 = vld [vmem:[#allocation8_spill] sm:$0xff]  ;;  %v7587_v38 = vadd.f32 %v9027_v16, %v7083_v13  ;;  %v7607_v13 = vadd.f32 %v9027_v16, %v7103_v40 }
 0x51a   :  { %9098 = vst [vmem:[#allocation72_spill] sm:$0xff] %v7551_v32  ;;  %v7571_v28 = vadd.f32 %v9027_v16, %v9107_v61  ;;  %v9109_v32 = vld [vmem:[#allocation9_spill] sm:$0xff]  ;;  %v7591_v61 = vadd.f32 %v9027_v16, %v7087_v17  ;;  %v7611_v17 = vadd.f32 %v9027_v16, %v7107_v59 }
 0x51b   :  { %9100 = vst [vmem:[#allocation73_spill] sm:$0xff] %v7555_v49  ;;  %v7575_v11 = vadd.f32 %v9027_v16, %v9109_v32  ;;  %v9111_v49 = vld [vmem:[#allocation10_spill] sm:$0xff] }
 0x51c   :  { %9102 = vst [vmem:[#allocation74_spill] sm:$0xff] %v7559_v62  ;;  %v7579_v55 = vadd.f32 %v9027_v16, %v9111_v49 }
 0x51d   :  { %9104 = vst [vmem:[#allocation61_spill] sm:$0xff] %v7563_v1 }
 0x51e   :  { %9106 = vst [vmem:[#allocation63_spill] sm:$0xff] %v7567_v54 }
 0x51f   :  { %9108 = vst [vmem:[#allocation64_spill] sm:$0xff] %v7571_v28  ;;  %v9116_v28 = vld [vmem:[#allocation11_spill] sm:$0xff] }
 0x520   :  { %9110 = vst [vmem:[#allocation70_spill] sm:$0xff] %v7575_v11  ;;  %v7595_v32 = vadd.f32 %v9027_v16, %v9116_v28  ;;  %v9118_v11 = vld [vmem:[#allocation13_spill] sm:$0xff] }
 0x521   :  { %9112 = vst [vmem:[#allocation71_spill] sm:$0xff] %v7579_v55  ;;  %v7599_v49 = vadd.f32 %v9027_v16, %v9118_v11 }
 0x522   :  { %9113 = vst [vmem:[#allocation99_spill] sm:$0xff] %v7583_v25  ;;  %v9208_v47 = vld [vmem:[#allocation73_spill] sm:$0xff] }
 0x523   :  { %9114 = vst [vmem:[#allocation100_spill] sm:$0xff] %v7587_v38 }
 0x524   :  { %9115 = vst [vmem:[#allocation77_spill] sm:$0xff] %v7591_v61  ;;  %v9123_v61 = vld [vmem:[#allocation19_spill] sm:$0xff] }
 0x525   :  { %9117 = vst [vmem:[#allocation78_spill] sm:$0xff] %v7595_v32  ;;  %v7615_v28 = vadd.f32 %v9027_v16, %v9123_v61  ;;  %v9125_v32 = vld [vmem:[#allocation21_spill] sm:$0xff] }
 0x526   :  { %9119 = vst [vmem:[#allocation79_spill] sm:$0xff] %v7599_v49  ;;  %v7619_v11 = vadd.f32 %v9027_v16, %v9125_v32 }
 0x527   :  { %9120 = vst [vmem:[#allocation80_spill] sm:$0xff] %v7603_v33  ;;  %v9128_v33 = vld [vmem:[#allocation23_spill] sm:$0xff] }
 0x528   :  { %9121 = vst [vmem:[#allocation81_spill] sm:$0xff] %v7607_v13  ;;  %v7627_v40 = vadd.f32 %v9027_v16, %v9128_v33  ;;  %v9130_v13 = vld [vmem:[#allocation26_spill] sm:$0xff] }
 0x529   :  { %9122 = vst [vmem:[#allocation82_spill] sm:$0xff] %v7611_v17  ;;  %v7631_v59 = vadd.f32 %v9027_v16, %v9130_v13  ;;  %v9132_v17 = vld [vmem:[#allocation29_spill] sm:$0xff] }
 0x52a   :  { %9124 = vst [vmem:[#allocation83_spill] sm:$0xff] %v7615_v28  ;;  %v7635_v61 = vadd.f32 %v9027_v16, %v9132_v17  ;;  %v9134_v28 = vld [vmem:[#allocation31_spill] sm:$0xff] }
 0x52b   :  { %9126 = vst [vmem:[#allocation84_spill] sm:$0xff] %v7619_v11  ;;  %v7639_v32 = vadd.f32 %v9027_v16, %v9134_v28  ;;  %v9136_v11 = vld [vmem:[#allocation33_spill] sm:$0xff] }
 0x52c   :  { %9127 = vst [vmem:[#allocation93_spill] sm:$0xff] %v7623_v22  ;;  %v7643_v52 = vadd.f32 %v9027_v16, %v9136_v11  ;;  %v9138_v22 = vld [vmem:[#allocation35_spill] sm:$0xff] }
 0x52d   :  { %9129 = vst [vmem:[#allocation94_spill] sm:$0xff] %v7627_v40  ;;  %v7647_v33 = vadd.f32 %v9027_v16, %v9138_v22  ;;  %v9140_v40 = vld [vmem:[#allocation37_spill] sm:$0xff] }
 0x52e   :  { %9131 = vst [vmem:[#allocation98_spill] sm:$0xff] %v7631_v59  ;;  %v7651_v13 = vadd.f32 %v9027_v16, %v9140_v40  ;;  %v9142_v59 = vld [vmem:[#allocation40_spill] sm:$0xff] }
 0x52f   :  { %9133 = vst [vmem:[#allocation5_spill] sm:$0xff] %v7635_v61  ;;  %v7655_v17 = vadd.f32 %v9027_v16, %v9142_v59  ;;  %v9143_v61 = vld [vmem:[#allocation42_spill] sm:$0xff] }
 0x530   :  { %9135 = vst [vmem:[#allocation6_spill] sm:$0xff] %v7639_v32  ;;  %v7659_v28 = vadd.f32 %v9027_v16, %v9143_v61  ;;  %v9144_v32 = vld [vmem:[#allocation44_spill] sm:$0xff]  ;;  %v7679_v61 = vadd.f32 %v9027_v16, %v7175_v6  ;;  %v7699_v6 = vadd.f32 %v9027_v16, %v7195_v7  ;;  %v9215_v54 = vld [vmem:[#allocation82_spill] sm:$0xff] }
 0x531   :  { %9137 = vst [vmem:[#allocation7_spill] sm:$0xff] %v7643_v52  ;;  %v7663_v11 = vadd.f32 %v9027_v16, %v9144_v32  ;;  %v9146_v52 = vld [vmem:[#allocation46_spill] sm:$0xff]  ;;  %v7683_v32 = vadd.f32 %v9027_v16, %v7179_v31  ;;  %v7703_v31 = vadd.f32 %v9027_v16, %v7199_v41 }
 0x532   :  { %9139 = vst [vmem:[#allocation8_spill] sm:$0xff] %v7647_v33  ;;  %v7667_v22 = vadd.f32 %v9027_v16, %v9146_v52  ;;  %v9148_v33 = vld [vmem:[#allocation48_spill] sm:$0xff] }
 0x533   :  { %9141 = vst [vmem:[#allocation9_spill] sm:$0xff] %v7651_v13  ;;  %v7671_v40 = vadd.f32 %v9027_v16, %v9148_v33  ;;  %v9150_v13 = vld [vmem:[#allocation50_spill] sm:$0xff]  ;;  %v7691_v33 = vadd.f32 %v9027_v16, %v7187_v20  ;;  %v9218_v55 = vld [vmem:[#allocation93_spill] sm:$0xff] }
 0x534   :  { %9145 = vst [vmem:[#allocation10_spill] sm:$0xff] %v7663_v11  ;;  %v7675_v59 = vadd.f32 %v9027_v16, %v9150_v13  ;;  %v9154_v11 = vld [vmem:[#allocation52_spill] sm:$0xff]  ;;  %v7695_v13 = vadd.f32 %v9027_v16, %v7191_v24 }
 0x535   :  { %9147 = vst [vmem:[#allocation11_spill] sm:$0xff] %v7667_v22  ;;  %v7687_v52 = vadd.f32 %v9027_v16, %v9154_v11  ;;  %v9205_v22 = vld [vmem:[#allocation66_spill] sm:$0xff] }
 0x536   :  { %9149 = vst [vmem:[#allocation13_spill] sm:$0xff] %v7671_v40  ;;  %v9204_v40 = vld [vmem:[#allocation59_spill] sm:$0xff]  ;;  %v9220_v38 = vld [vmem:[#allocation98_spill] sm:$0xff]  ;;  %v9221_v56 = vld [vmem:[#allocation5_spill] sm:$0xff] }
 0x537   :  { %9151 = vst [vmem:[#allocation19_spill] sm:$0xff] %v7675_v59  ;;  %v9203_v59 = vld [vmem:[#allocation58_spill] sm:$0xff] }
 0x538   :  { %9152 = vst [vmem:[#allocation21_spill] sm:$0xff] %v7679_v61  ;;  %v9217_v61 = vld [vmem:[#allocation84_spill] sm:$0xff]  ;;  %v9222_v50 = vld [vmem:[#allocation6_spill] sm:$0xff]  ;;  %v9223_v49 = vld [vmem:[#allocation7_spill] sm:$0xff] }
 0x539   :  { %9153 = vst [vmem:[#allocation23_spill] sm:$0xff] %v7683_v32  ;;  %v9160_v32 = vld [vmem:[#allocation55_spill] sm:$0xff] }
 0x53a   :  { %9155 = vst [vmem:[#allocation26_spill] sm:$0xff] %v7687_v52  ;;  %v7707_v11 = vadd.f32 %v9027_v16, %v9160_v32  ;;  %v9162_v52 = vld [vmem:[#allocation57_spill] sm:$0xff] }
 0x53b   :  { %9156 = vst [vmem:[#allocation29_spill] sm:$0xff] %v7691_v33  ;;  %v7711_v20 = vadd.f32 %v9027_v16, %v9162_v52  ;;  %v9164_v33 = vld [vmem:[#allocation60_spill] sm:$0xff]  ;;  %v9225_v1 = vld [vmem:[#allocation9_spill] sm:$0xff] }
 0x53c   :  { %9157 = vst [vmem:[#allocation31_spill] sm:$0xff] %v7695_v13  ;;  %v7715_v24 = vadd.f32 %v9027_v16, %v9164_v33  ;;  %v9166_v13 = vld [vmem:[#allocation62_spill] sm:$0xff]  ;;  %v7735_v33 = vadd.f32 %v9027_v16, %v7231_v43  ;;  %v9227_v43 = vmax.f32 %v7283_v44, 0.0  ;;  %v9235_v44 = vmax.f32 %v7315_v21, 0.0 }
 0x53d   :  { %9158 = vst [vmem:[#allocation33_spill] sm:$0xff] %v7699_v6  ;;  %v7719_v7 = vadd.f32 %v9027_v16, %v9166_v13  ;;  %v9168_v6 = vld [vmem:[#allocation65_spill] sm:$0xff]  ;;  %v7739_v13 = vadd.f32 %v9027_v16, %v7235_v63  ;;  %v9229_v63 = vmax.f32 %v7291_v5, 0.0  ;;  %v9237_v5 = vmax.f32 %v7323_v51, 0.0 }
 0x53e   :  { %9159 = vst [vmem:[#allocation35_spill] sm:$0xff] %v7703_v31  ;;  %v7723_v41 = vadd.f32 %v9027_v16, %v9168_v6  ;;  %v9170_v31 = vld [vmem:[#allocation67_spill] sm:$0xff]  ;;  %v9230_v6 = vmax.f32 %v7295_v37, 0.0  ;;  %v9238_v37 = vmax.f32 %v7327_v57, 0.0  ;;  %v9243_v21 = vmax.f32 %v7347_v42, 0.0 }
 0x53f   :  { %9161 = vst [vmem:[#allocation37_spill] sm:$0xff] %v7707_v11  ;;  %v7727_v32 = vadd.f32 %v9027_v16, %v9170_v31  ;;  %v9172_v11 = vld [vmem:[#allocation69_spill] sm:$0xff]  ;;  %v9232_v31 = vmax.f32 %v7303_v4, 0.0  ;;  %v9240_v4 = vmax.f32 %v7335_v10, 0.0  ;;  %v9245_v51 = vmax.f32 %v7355_v8, 0.0 }
 0x540   :  { %9163 = vst [vmem:[#allocation40_spill] sm:$0xff] %v7711_v20  ;;  %v7731_v52 = vadd.f32 %v9027_v16, %v9172_v11  ;;  %v9216_v20 = vld [vmem:[#allocation83_spill] sm:$0xff]  ;;  %v2690_v11 = vmax.f32 %v9217_v61, 0.0  ;;  %v9246_v57 = vmax.f32 %v7359_v34, 0.0  ;;  %v9248_v10 = vmax.f32 %v7367_v29, 0.0 }
 0x541   :  { %9165 = vst [vmem:[#allocation42_spill] sm:$0xff] %v7715_v24  ;;  %v9200_v24 = vld [vmem:[#allocation53_spill] sm:$0xff]  ;;  %v9251_v42 = vmax.f32 %v7379_v45, 0.0  ;;  %v9253_v8 = vmax.f32 %v7387_v30, 0.0  ;;  %v9254_v34 = vmax.f32 %v7391_v60, 0.0  ;;  %v9256_v29 = vmax.f32 %v7399_v0, 0.0 }
 0x542   :  { %9167 = vst [vmem:[#allocation44_spill] sm:$0xff] %v7719_v7  ;;  %v9198_v7 = vld [vmem:[#allocation49_spill] sm:$0xff]  ;;  %v9258_v45 = vmax.f32 %v7407_v14, 0.0  ;;  %v9260_v30 = vld [vmem:[#allocation96_spill] sm:$0xff] }
 0x543   :  { %9169 = vst [vmem:[#allocation46_spill] sm:$0xff] %v7723_v41  ;;  %v9231_v41 = vmax.f32 %v7299_v27, 0.0  ;;  %v9239_v27 = vmax.f32 %v7331_v36, 0.0  ;;  %v9247_v36 = vmax.f32 %v7363_v23, 0.0  ;;  %v9255_v23 = vmax.f32 %v7395_v46, 0.0  ;;  %v9262_v60 = vld [vmem:[#allocation97_spill] sm:$0xff] }
 0x544   :  { %9171 = vst [vmem:[#allocation48_spill] sm:$0xff] %v7727_v32  ;;  %v9233_v32 = vmax.f32 %v7307_v58, 0.0  ;;  %v9241_v58 = vmax.f32 %v7339_v3, 0.0  ;;  %v9249_v3 = vmax.f32 %v7371_v53, 0.0  ;;  %v9257_v53 = vmax.f32 %v7403_v39, 0.0  ;;  %v9268_v39 = vld [vmem:[#allocation15_spill] sm:$0xff] }
 0x545   :  { %9173 = vst [vmem:[#allocation50_spill] sm:$0xff] %v7731_v52  ;;  %v9226_v52 = vmax.f32 %v7279_v48, 0.0  ;;  %v3789_v62 = vpack.c.bf16 %v9231_v41, %v9230_v6  ;;  %v9234_v48 = vmax.f32 %v7311_v35, 0.0  ;;  %v3809_v41 = vpack.c.bf16 %v9239_v27, %v9238_v37  ;;  %v9264_v37 = vld [vmem:[#allocation12_spill] sm:$0xff]  ;;  %v9266_v27 = vld [vmem:[#allocation14_spill] sm:$0xff] }
 0x546   :  { %9174 = vst [vmem:[#allocation52_spill] sm:$0xff] %v7735_v33  ;;  %v9228_v33 = vmax.f32 %v7287_v12, 0.0  ;;  %v3794_v61 = vpack.c.bf16 %v9233_v32, %v9232_v31  ;;  %v9236_v12 = vmax.f32 %v7319_v26, 0.0  ;;  %v3814_v32 = vpack.c.bf16 %v9241_v58, %v9240_v4  ;;  %v9270_v14 = vld [vmem:[#allocation16_spill] sm:$0xff] }
 0x547   :  { %9175 = vst [vmem:[#allocation55_spill] sm:$0xff] %v7739_v13  ;;  %v9199_v13 = vld [vmem:[#allocation51_spill] sm:$0xff]  ;;  %v3779_v25 = vpack.c.bf16 %v9227_v43, %v9226_v52  ;;  %v3799_v52 = vpack.c.bf16 %v9235_v44, %v9234_v48  ;;  %v9242_v35 = vmax.f32 %v7343_v9, 0.0  ;;  %v9244_v26 = vmax.f32 %v7351_v15, 0.0 }
 0x548   :  { %v3784_v16 = vpack.c.bf16 %v9229_v63, %v9228_v33  ;;  %v3804_v33 = vpack.c.bf16 %v9237_v5, %v9236_v12  ;;  %v3834_v43 = vpack.c.bf16 %v9249_v3, %v9248_v10  ;;  %v9250_v9 = vmax.f32 %v7375_v2, 0.0  ;;  %4097 = vst [vmem:[#allocation2 + $0x10] sm:$0xff] %v3789_v62   ;;  %v9276_v10 = vld [vmem:[#allocation20_spill] sm:$0xff] }
 0x549   :  { %3780 = vst [vmem:[#allocation2] sm:$0xff] %v3779_v25   ;;  %v3819_v6 = vpack.c.bf16 %v9243_v21, %v9242_v35  ;;  %v3824_v31 = vpack.c.bf16 %v9245_v51, %v9244_v26  ;;  %v3829_v25 = vpack.c.bf16 %v9247_v36, %v9246_v57  ;;  %v9252_v15 = vmax.f32 %v7383_v19, 0.0  ;;  %v9272_v21 = vld [vmem:[#allocation17_spill] sm:$0xff]  ;;  %v9274_v51 = vld [vmem:[#allocation18_spill] sm:$0xff] }
 0x54a   :  { %4096 = vst [vmem:[#allocation2 + $0x8] sm:$0xff] %v3784_v16   ;;  %v3839_v63 = vpack.c.bf16 %v9251_v42, %v9250_v9  ;;  %v7897_v16 = vpack.c.bf16 %v9255_v23, %v9254_v34  ;;  %v7903_v2 = vpack.c.bf16 %v9257_v53, %v9256_v29  ;;  %v9259_v19 = vmax.f32 %v7411_v18, 0.0  ;;  %v9278_v9 = vld [vmem:[#allocation22_spill] sm:$0xff]  ;;  %v9282_v34 = vld [vmem:[#allocation25_spill] sm:$0xff]  ;;  %v9284_v53 = vld [vmem:[#allocation27_spill] sm:$0xff] }
 0x54b   :  { %v3844_v48 = vpack.c.bf16 %v9253_v8, %v9252_v15  ;;  %v9261_v12 = vmax.f32 %v9260_v30, 0.0  ;;  %v9263_v5 = vmax.f32 %v9262_v60, 0.0  ;;  %v9265_v62 = vmax.f32 %v9264_v37, 0.0  ;;  %4098 = vst [vmem:[#allocation2 + $0x18] sm:$0xff] %v3794_v61   ;;  %v9280_v8 = vld [vmem:[#allocation24_spill] sm:$0xff]  ;;  %v9288_v60 = vld [vmem:[#allocation30_spill] sm:$0xff] }
 0x54c   :  { %v7909_v44 = vpack.c.bf16 %v9259_v19, %v9258_v45  ;;  %v9267_v0 = vmax.f32 %v9266_v27, 0.0  ;;  %v9269_v58 = vmax.f32 %v9268_v39, 0.0  ;;  %v9271_v35 = vmax.f32 %v9270_v14, 0.0  ;;  %4099 = vst [vmem:[#allocation2 + $0x20] sm:$0xff] %v3799_v52   ;;  %v9286_v19 = vld [vmem:[#allocation28_spill] sm:$0xff] }
 0x54d   :  { %v7915_v46 = vpack.c.bf16 %v9263_v5, %v9261_v12  ;;  %v9273_v26 = vmax.f32 %v9272_v21, 0.0  ;;  %v9275_v57 = vmax.f32 %v9274_v51, 0.0  ;;  %v9277_v3 = vmax.f32 %v9276_v10, 0.0  ;;  %v9290_v37 = vld [vmem:[#allocation32_spill] sm:$0xff]  ;;  %4100 = vst [vmem:[#allocation2 + $0x28] sm:$0xff] %v3804_v33   ;;  %v9300_v10 = vld [vmem:[#allocation39_spill] sm:$0xff] }
 0x54e   :  { %v7921_v4 = vpack.c.bf16 %v9267_v0, %v9265_v62  ;;  %v7927_v18 = vpack.c.bf16 %v9271_v35, %v9269_v58  ;;  %v9279_v42 = vmax.f32 %v9278_v9, 0.0  ;;  %v9281_v61 = vmax.f32 %v9280_v8, 0.0  ;;  %v9292_v0 = vld [vmem:[#allocation34_spill] sm:$0xff]  ;;  %v9294_v58 = vld [vmem:[#allocation76_spill] sm:$0xff]  ;;  %v9302_v9 = vld [vmem:[#allocation41_spill] sm:$0xff]  ;;  %4101 = vst [vmem:[#allocation2 + $0x30] sm:$0xff] %v3809_v41  }
 0x54f   :  { %v7933_v36 = vpack.c.bf16 %v9275_v57, %v9273_v26  ;;  %v9283_v23 = vmax.f32 %v9282_v34, 0.0  ;;  %v9285_v45 = vmax.f32 %v9284_v53, 0.0  ;;  %v9287_v30 = vmax.f32 %v9286_v19, 0.0  ;;  %v9296_v21 = vld [vmem:[#allocation36_spill] sm:$0xff]  ;;  %v9298_v26 = vld [vmem:[#allocation38_spill] sm:$0xff]  ;;  %v9308_v19 = vld [vmem:[#allocation47_spill] sm:$0xff] }
 0x550   :  { %v7939_v15 = vpack.c.bf16 %v9279_v42, %v9277_v3  ;;  %v9289_v5 = vmax.f32 %v9288_v60, 0.0  ;;  %v9291_v62 = vmax.f32 %v9290_v37, 0.0  ;;  %v9293_v39 = vmax.f32 %v9292_v0, 0.0  ;;  %v9313_v0 = vld [vmem:[#allocation54_spill] sm:$0xff]  ;;  %4102 = vst [vmem:[#allocation2 + $0x38] sm:$0xff] %v3814_v32  }
 0x551   :  { %v7945_v29 = vpack.c.bf16 %v9283_v23, %v9281_v61  ;;  %v7951_v12 = vpack.c.bf16 %v9287_v30, %v9285_v45  ;;  %v9295_v14 = vmax.f32 %v9294_v58, 0.0  ;;  %v9297_v52 = vmax.f32 %v9296_v21, 0.0  ;;  %v9304_v61 = vld [vmem:[#allocation43_spill] sm:$0xff]  ;;  %v9306_v23 = vld [vmem:[#allocation45_spill] sm:$0xff]  ;;  %v9315_v58 = vld [vmem:[#allocation56_spill] sm:$0xff]  ;;  %4103 = vst [vmem:[#allocation2 + $0x40] sm:$0xff] %v3819_v6  }
 0x552   :  { %v7957_v27 = vpack.c.bf16 %v9291_v62, %v9289_v5  ;;  %v9299_v51 = vmax.f32 %v9298_v26, 0.0  ;;  %v9301_v3 = vmax.f32 %v9300_v10, 0.0  ;;  %v9303_v42 = vmax.f32 %v9302_v9, 0.0  ;;  %4104 = vst [vmem:[#allocation2 + $0x48] sm:$0xff] %v3824_v31   ;;  %v9361_v31 = vld [vmem:[#allocation13_spill] sm:$0xff] }
 0x553   :  { %v7963_v35 = vpack.c.bf16 %v9295_v14, %v9293_v39  ;;  %v9305_v34 = vmax.f32 %v9304_v61, 0.0  ;;  %v9307_v53 = vmax.f32 %v9306_v23, 0.0  ;;  %v9309_v30 = vmax.f32 %v9308_v19, 0.0  ;;  %v9325_v61 = vld [vmem:[#allocation74_spill] sm:$0xff]  ;;  %4105 = vst [vmem:[#allocation2 + $0x50] sm:$0xff] %v3829_v25  }
 0x554   :  { %v7969_v57 = vpack.c.bf16 %v9299_v51, %v9297_v52  ;;  %v7975_v8 = vpack.c.bf16 %v9303_v42, %v9301_v3  ;;  %v9310_v60 = vmax.f32 %v9198_v7, 0.0  ;;  %v9311_v33 = vmax.f32 %v9199_v13, 0.0  ;;  %v9320_v13 = vld [vmem:[#allocation68_spill] sm:$0xff]  ;;  %4106 = vst [vmem:[#allocation2 + $0x58] sm:$0xff] %v3834_v43   ;;  %v9371_v25 = vld [vmem:[#allocation86_spill] sm:$0xff]  ;;  %v9377_v43 = vld [vmem:[#allocation87_spill] sm:$0xff] }
 0x555   :  { %v7981_v45 = vpack.c.bf16 %v9307_v53, %v9305_v34  ;;  %v9312_v37 = vmax.f32 %v9200_v24, 0.0  ;;  %v9314_v39 = vmax.f32 %v9313_v0, 0.0  ;;  %v9316_v14 = vmax.f32 %v9315_v58, 0.0  ;;  %v9322_v3 = vld [vmem:[#allocation72_spill] sm:$0xff]  ;;  %v9329_v53 = vld [vmem:[#allocation63_spill] sm:$0xff]  ;;  %4107 = vst [vmem:[#allocation2 + $0x60] sm:$0xff] %v3839_v63  }
 0x556   :  { %v7987_v5 = vpack.c.bf16 %v9310_v60, %v9309_v30  ;;  %v9317_v52 = vmax.f32 %v9203_v59, 0.0  ;;  %v9318_v26 = vmax.f32 %v9204_v40, 0.0  ;;  %v9319_v51 = vmax.f32 %v9205_v22, 0.0  ;;  %v9327_v59 = vld [vmem:[#allocation61_spill] sm:$0xff]  ;;  %v9331_v22 = vld [vmem:[#allocation64_spill] sm:$0xff]  ;;  %v9335_v0 = vld [vmem:[#allocation71_spill] sm:$0xff] }
 0x557   :  { %v7993_v62 = vpack.c.bf16 %v9312_v37, %v9311_v33  ;;  %v7999_v21 = vpack.c.bf16 %v9316_v14, %v9314_v39  ;;  %v9321_v10 = vmax.f32 %v9320_v13, 0.0  ;;  %v9323_v41 = vmax.f32 %v9322_v3, 0.0  ;;  %v9333_v33 = vld [vmem:[#allocation70_spill] sm:$0xff]  ;;  %v9337_v58 = vld [vmem:[#allocation99_spill] sm:$0xff]  ;;  %v9339_v14 = vld [vmem:[#allocation100_spill] sm:$0xff]  ;;  %4108 = vst [vmem:[#allocation2 + $0x68] sm:$0xff] %v3844_v48  }
 0x558   :  { %v8005_v7 = vpack.c.bf16 %v9318_v26, %v9317_v52  ;;  %v9324_v9 = vmax.f32 %v9208_v47, 0.0  ;;  %v9326_v34 = vmax.f32 %v9325_v61, 0.0  ;;  %v9328_v23 = vmax.f32 %v9327_v59, 0.0  ;;  %v9383_v63 = vld [vmem:[#allocation37_spill] sm:$0xff]  ;;  %4109 = vst [vmem:[#allocation2 + $0x70] sm:$0xff] %v7897_v16  }
 0x559   :  { %v8011_v24 = vpack.c.bf16 %v9321_v10, %v9319_v51  ;;  %v9330_v19 = vmax.f32 %v9329_v53, 0.0  ;;  %v9332_v30 = vmax.f32 %v9331_v22, 0.0  ;;  %v9334_v37 = vmax.f32 %v9333_v33, 0.0  ;;  %v9341_v51 = vld [vmem:[#allocation77_spill] sm:$0xff]  ;;  %v9343_v10 = vld [vmem:[#allocation78_spill] sm:$0xff]  ;;  %4110 = vst [vmem:[#allocation2 + $0x78] sm:$0xff] %v7903_v2  }
 0x55a   :  { %v8017_v42 = vpack.c.bf16 %v9324_v9, %v9323_v41  ;;  %v8023_v40 = vpack.c.bf16 %v9328_v23, %v9326_v34  ;;  %v9336_v39 = vmax.f32 %v9335_v0, 0.0  ;;  %v9338_v32 = vmax.f32 %v9337_v58, 0.0  ;;  %v9345_v9 = vld [vmem:[#allocation79_spill] sm:$0xff]  ;;  %v9347_v34 = vld [vmem:[#allocation80_spill] sm:$0xff]  ;;  %v9349_v53 = vld [vmem:[#allocation81_spill] sm:$0xff]  ;;  %4111 = vst [vmem:[#allocation2 + $0x80] sm:$0xff] %v7909_v44  }
 0x55b   :  { %v8029_v60 = vpack.c.bf16 %v9332_v30, %v9330_v19  ;;  %v9340_v52 = vmax.f32 %v9339_v14, 0.0  ;;  %v9342_v13 = vmax.f32 %v9341_v51, 0.0  ;;  %v9344_v3 = vmax.f32 %v9343_v10, 0.0  ;;  %v9356_v14 = vld [vmem:[#allocation94_spill] sm:$0xff]  ;;  %4112 = vst [vmem:[#allocation2 + $0x88] sm:$0xff] %v7915_v46   ;;  %v9398_v44 = vld [vmem:[#allocation95_spill] sm:$0xff] }
 0x55c   :  { %v8035_v47 = vpack.c.bf16 %v9336_v39, %v9334_v37  ;;  %v9346_v61 = vmax.f32 %v9345_v9, 0.0  ;;  %v9348_v59 = vmax.f32 %v9347_v34, 0.0  ;;  %v9350_v19 = vmax.f32 %v9349_v53, 0.0  ;;  %v9353_v37 = vld [vmem:[#allocation10_spill] sm:$0xff]  ;;  %v9354_v39 = vld [vmem:[#allocation11_spill] sm:$0xff]  ;;  %4113 = vst [vmem:[#allocation2 + $0x90] sm:$0xff] %v7921_v4  }
 0x55d   :  { %v8041_v26 = vpack.c.bf16 %v9340_v52, %v9338_v32  ;;  %v8047_v41 = vpack.c.bf16 %v9344_v3, %v9342_v13  ;;  %v9351_v22 = vmax.f32 %v9215_v54, 0.0  ;;  %v9352_v6 = vmax.f32 %v9216_v20, 0.0  ;;  %v4179_v20 = vld [vmem:[%s8180_s3] ss:$0 sm:$0xff]  ;;  %4114 = vst [vmem:[#allocation2 + $0x98] sm:$0xff] %v7927_v18   ;;  %s4206_s3 = smov [#allocation2]  }
 0x55e   :  { %v8053_v23 = vpack.c.bf16 %v9348_v59, %v9346_v61  ;;  %v2701_v0 = vmax.f32 %v9353_v37, 0.0  ;;  %v2702_v58 = vmax.f32 %v9354_v39, 0.0  ;;  %v9355_v32 = vmax.f32 %v9218_v55, 0.0  ;;  %v9362_v55 = vld [vmem:[#allocation19_spill] sm:$0xff]  ;;  %v9368_v39 = vld [vmem:[#allocation8_spill] sm:$0xff]  ;;  %4115 = vst [vmem:[#allocation2 + $0xa0] sm:$0xff] %v7933_v36  }
 0x55f   :  { %v8059_v30 = vpack.c.bf16 %v9351_v22, %v9350_v19  ;;  %v8063_v33 = vpack.c.bf16 %v2690_v11, %v9352_v6  ;;  %v9357_v52 = vmax.f32 %v9356_v14, 0.0  ;;  %v9358_v13 = vmax.f32 %v9220_v38, 0.0  ;;  %v9360_v11 = vld [vmem:[#allocation75_spill] sm:$0xff]  ;;  %v9366_v19 = vld [vmem:[#allocation21_spill] sm:$0xff]  ;;  %4116 = vst [vmem:[#allocation2 + $0xa8] sm:$0xff] %v7939_v15   ;;  %s2993_s18 = sshll.u32 %s4206_s3, 4  ;;  %s2994_s18 = int_to_ptr.vmem [resolvable:$true] %s2993_s18 }
 0x560   :  { %v9359_v54 = vmax.f32 %v9221_v56, 0.0  ;;  %v8083_v3 = vadd.f32 %v4179_v20, %v9360_v11  ;;  %v2703_v9 = vmax.f32 %v9361_v31, 0.0  ;;  %v2704_v61 = vmax.f32 %v9362_v55, 0.0  ;;  %v9365_v56 = vld [vmem:[#allocation85_spill] sm:$0xff]  ;;  %v9367_v6 = vld [vmem:[#allocation23_spill] sm:$0xff]  ;;  %4117 = vst [vmem:[#allocation2 + $0xb0] sm:$0xff] %v7945_v29  }
 0x561   :  { %v8071_v51 = vpack.c.bf16 %v9357_v52, %v9355_v32  ;;  %v9363_v34 = vmax.f32 %v9222_v50, 0.0  ;;  %v9364_v38 = vmax.f32 %v9223_v49, 0.0  ;;  %v2594_v53 = vadd.f32 %v4179_v20, %v9365_v56  ;;  %v9372_v50 = vld [vmem:[#allocation26_spill] sm:$0xff]  ;;  %v9373_v49 = vld [vmem:[#allocation29_spill] sm:$0xff]  ;;  %v9378_v56 = vld [vmem:[#allocation31_spill] sm:$0xff]  ;;  %4118 = vst [vmem:[#allocation2 + $0xb8] sm:$0xff] %v7951_v12  }
 0x562   :  { %v8077_v10 = vpack.c.bf16 %v9359_v54, %v9358_v13  ;;  %v2705_v22 = vmax.f32 %v9366_v19, 0.0  ;;  %v2706_v37 = vmax.f32 %v9367_v6, 0.0  ;;  %v9369_v32 = vmax.f32 %v9368_v39, 0.0  ;;  %4119 = vst [vmem:[#allocation2 + $0xc0] sm:$0xff] %v7957_v27  }
 0x563   :  { %v8091_v59 = vpack.c.bf16 %v9364_v38, %v9363_v34  ;;  %v9370_v14 = vmax.f32 %v9225_v1, 0.0  ;;  %v2595_v13 = vadd.f32 %v4179_v20, %v9371_v25  ;;  %v2707_v54 = vmax.f32 %v9372_v50, 0.0  ;;  %v9379_v1 = vld [vmem:[#allocation33_spill] sm:$0xff]  ;;  %v9382_v25 = vld [vmem:[#allocation35_spill] sm:$0xff]  ;;  %4120 = vst [vmem:[#allocation2 + $0xc8] sm:$0xff] %v7963_v35  }
 0x564   :  { %v2708_v11 = vmax.f32 %v9373_v49, 0.0  ;;  %v9374_v31 = vmax.f32 %v7655_v17, 0.0  ;;  %v9375_v55 = vmax.f32 %v7659_v28, 0.0  ;;  %v2596_v38 = vadd.f32 %v4179_v20, %v9377_v43  ;;  %v9385_v28 = vld [vmem:[#allocation89_spill] sm:$0xff]  ;;  %4121 = vst [vmem:[#allocation2 + $0xd0] sm:$0xff] %v7969_v57  }
 0x565   :  { %v8100_v52 = vpack.c.bf16 %v9370_v14, %v9369_v32  ;;  %v2709_v19 = vmax.f32 %v9378_v56, 0.0  ;;  %v2710_v6 = vmax.f32 %v9379_v1, 0.0  ;;  %v8114_v39 = vpack.c.bf16 %v2702_v58, %v2701_v0  ;;  %v9381_v32 = vld [vmem:[#allocation88_spill] sm:$0xff]  ;;  %v9387_v56 = vld [vmem:[#allocation42_spill] sm:$0xff]  ;;  %4122 = vst [vmem:[#allocation2 + $0xd8] sm:$0xff] %v7975_v8  }
 0x566   :  { %v8109_v34 = vpack.c.bf16 %v9375_v55, %v9374_v31  ;;  %v2597_v14 = vadd.f32 %v4179_v20, %v9381_v32  ;;  %v2711_v50 = vmax.f32 %v9382_v25, 0.0  ;;  %v2712_v49 = vmax.f32 %v9383_v63, 0.0  ;;  %v9386_v55 = vld [vmem:[#allocation40_spill] sm:$0xff]  ;;  %v9389_v0 = vld [vmem:[#allocation90_spill] sm:$0xff]  ;;  %4123 = vst [vmem:[#allocation2 + $0xe0] sm:$0xff] %v7981_v45  }
 0x567   :  { %9380 = vst [vmem:[#allocation60_spill] sm:$0xff] %v8114_v39  ;;  %v8120_v17 = vpack.c.bf16 %v2704_v61, %v2703_v9  ;;  %v2598_v31 = vadd.f32 %v4179_v20, %v9385_v28  ;;  %v2713_v43 = vmax.f32 %v9386_v55, 0.0  ;;  %v8126_v48 = vpack.c.bf16 %v2706_v37, %v2705_v22  ;;  %v9390_v1 = vld [vmem:[#allocation44_spill] sm:$0xff]  ;;  %v9391_v25 = vld [vmem:[#allocation46_spill] sm:$0xff]  ;;  %v9392_v9 = vld [vmem:[#allocation91_spill] sm:$0xff] }
 0x568   :  { %9376 = vst [vmem:[#allocation57_spill] sm:$0xff] %v8109_v34  ;;  %v2714_v34 = vmax.f32 %v9387_v56, 0.0  ;;  %v2599_v58 = vadd.f32 %v4179_v20, %v9389_v0  ;;  %v2715_v32 = vmax.f32 %v9390_v1, 0.0  ;;  %v2716_v63 = vmax.f32 %v9391_v25, 0.0  ;;  %v9393_v28 = vld [vmem:[#allocation48_spill] sm:$0xff]  ;;  %v9394_v55 = vld [vmem:[#allocation50_spill] sm:$0xff] }
 0x569   :  { %9384 = vst [vmem:[#allocation62_spill] sm:$0xff] %v8120_v17  ;;  %v4034_v16 = vpack.c.bf16 %v2708_v11, %v2707_v54  ;;  %v2600_v61 = vadd.f32 %v4179_v20, %v9392_v9  ;;  %v2717_v17 = vmax.f32 %v9393_v28, 0.0  ;;  %v2718_v39 = vmax.f32 %v9394_v55, 0.0  ;;  %v9395_v22 = vld [vmem:[#allocation92_spill] sm:$0xff] }
 0x56a   :  { %9388 = vst [vmem:[#allocation65_spill] sm:$0xff] %v8126_v48  ;;  %v4039_v2 = vpack.c.bf16 %v2710_v6, %v2709_v19  ;;  %v2601_v37 = vadd.f32 %v4179_v20, %v9395_v22  ;;  %v9396_v56 = vld [vmem:[#allocation52_spill] sm:$0xff]  ;;  %v9397_v48 = vld [vmem:[#allocation55_spill] sm:$0xff]  ;;  %v4044_v25 = vpack.c.bf16 %v2712_v49, %v2711_v50  ;;  %v2602_v54 = vadd.f32 %v4179_v20, %v9398_v44 }
 0x56b   :  { %v2719_v0 = vmax.f32 %v9396_v56, 0.0  ;;  %v2720_v1 = vmax.f32 %v9397_v48, 0.0  ;;  %v2721_v11 = vmax.f32 %v8083_v3, 0.0  ;;  %v2722_v9 = vmax.f32 %v2594_v53, 0.0  ;;  %4124 = vst [vmem:[#allocation2 + $0xe8] sm:$0xff] %v7987_v5  }
 0x56c   :  { %v4049_v28 = vpack.c.bf16 %v2714_v34, %v2713_v43  ;;  %v2723_v55 = vmax.f32 %v2595_v13, 0.0  ;;  %v2724_v46 = vmax.f32 %v2596_v38, 0.0  ;;  %v4054_v19 = vpack.c.bf16 %v2716_v63, %v2715_v32  ;;  %4125 = vst [vmem:[#allocation2 + $0xf0] sm:$0xff] %v7993_v62  }
 0x56d   :  { %v2725_v6 = vmax.f32 %v2597_v14, 0.0  ;;  %v2726_v22 = vmax.f32 %v2598_v31, 0.0  ;;  %v4059_v48 = vpack.c.bf16 %v2718_v39, %v2717_v17  ;;  %v2727_v4 = vmax.f32 %v2599_v58, 0.0  ;;  %4126 = vst [vmem:[#allocation2 + $0xf8] sm:$0xff] %v7999_v21  }
 0x56e   :  { %v2728_v50 = vmax.f32 %v2600_v61, 0.0  ;;  %v4064_v20 = vpack.c.bf16 %v2720_v1, %v2719_v0  ;;  %v2729_v3 = vmax.f32 %v2601_v37, 0.0  ;;  %v2730_v53 = vmax.f32 %v2602_v54, 0.0  ;;  %4127 = vst [vmem:[#allocation2 + $0x100] sm:$0xff] %v8005_v7   ;;  %v9400_v12 = vld [vmem:[#allocation60_spill] sm:$0xff] }
 0x56f   :  { %v4069_v18 = vpack.c.bf16 %v2722_v9, %v2721_v11  ;;  %v4074_v13 = vpack.c.bf16 %v2724_v46, %v2723_v55  ;;  %v4079_v36 = vpack.c.bf16 %v2726_v22, %v2725_v6  ;;  %4128 = vst [vmem:[#allocation2 + $0x108] sm:$0xff] %v8011_v24   ;;  %v9399_v29 = vld [vmem:[#allocation57_spill] sm:$0xff] }
 0x570   :  { %v4084_v15 = vpack.c.bf16 %v2728_v50, %v2727_v4  ;;  %v4089_v34 = vpack.c.bf16 %v2730_v53, %v2729_v3  ;;  %4129 = vst [vmem:[#allocation2 + $0x110] sm:$0xff] %v8017_v42   ;;  %v9401_v27 = vld [vmem:[#allocation62_spill] sm:$0xff] }
 0x571   :  { %4130 = vst [vmem:[#allocation2 + $0x118] sm:$0xff] %v8023_v40   ;;  %v9402_v35 = vld [vmem:[#allocation65_spill] sm:$0xff] }
 0x572   :  { %4131 = vst [vmem:[#allocation2 + $0x120] sm:$0xff] %v8029_v60  }
 0x573   :  { %4132 = vst [vmem:[#allocation2 + $0x128] sm:$0xff] %v8035_v47  }
 0x574   :  { %4133 = vst [vmem:[#allocation2 + $0x130] sm:$0xff] %v8041_v26  }
 0x575   :  { %4134 = vst [vmem:[#allocation2 + $0x138] sm:$0xff] %v8047_v41  }
 0x576   :  { %4135 = vst [vmem:[#allocation2 + $0x140] sm:$0xff] %v8053_v23  }
 0x577   :  { %4136 = vst [vmem:[#allocation2 + $0x148] sm:$0xff] %v8059_v30  }
 0x578   :  { %4137 = vst [vmem:[#allocation2 + $0x150] sm:$0xff] %v8063_v33  }
 0x579   :  { %4138 = vst [vmem:[#allocation2 + $0x158] sm:$0xff] %v8071_v51  }
 0x57a   :  { %4139 = vst [vmem:[#allocation2 + $0x160] sm:$0xff] %v8077_v10  }
 0x57b   :  { %4140 = vst [vmem:[#allocation2 + $0x168] sm:$0xff] %v8091_v59  }
 0x57c   :  { %4141 = vst [vmem:[#allocation2 + $0x170] sm:$0xff] %v8100_v52  }
 0x57d   :  { %4142 = vst [vmem:[#allocation2 + $0x178] sm:$0xff] %v9399_v29  }
 0x57e   :  { %4143 = vst [vmem:[#allocation2 + $0x180] sm:$0xff] %v9400_v12  }
 0x57f   :  { %4144 = vst [vmem:[#allocation2 + $0x188] sm:$0xff] %v9401_v27  }
 0x580   :  { %4145 = vst [vmem:[#allocation2 + $0x190] sm:$0xff] %v9402_v35  }
 0x581   :  { %4146 = vst [vmem:[#allocation2 + $0x198] sm:$0xff] %v4034_v16  }
 0x582   :  { %4147 = vst [vmem:[#allocation2 + $0x1a0] sm:$0xff] %v4039_v2  }
 0x583   :  { %4148 = vst [vmem:[#allocation2 + $0x1a8] sm:$0xff] %v4044_v25  }
 0x584   :  { %4149 = vst [vmem:[#allocation2 + $0x1b0] sm:$0xff] %v4049_v28  }
 0x585   :  { %4150 = vst [vmem:[#allocation2 + $0x1b8] sm:$0xff] %v4054_v19  }
 0x586   :  { %4151 = vst [vmem:[#allocation2 + $0x1c0] sm:$0xff] %v4059_v48  }
 0x587   :  { %4152 = vst [vmem:[#allocation2 + $0x1c8] sm:$0xff] %v4064_v20  }
 0x588   :  { %4153 = vst [vmem:[#allocation2 + $0x1d0] sm:$0xff] %v4069_v18  }
 0x589   :  { %4154 = vst [vmem:[#allocation2 + $0x1d8] sm:$0xff] %v4074_v13  }
 0x58a   :  { %4155 = vst [vmem:[#allocation2 + $0x1e0] sm:$0xff] %v4079_v36  }
 0x58b   :  { %4156 = vst [vmem:[#allocation2 + $0x1e8] sm:$0xff] %v4084_v15  }
 0x58c   :  { %4157 = vst [vmem:[#allocation2 + $0x1f0] sm:$0xff] %v4089_v34  }
 0x58d   :  { %3001 = dma.vmem_to_hbm [thread:$0]  %s2994_s18, 8192, %s2996_s21, [#allocation3], %s4207_s22, %s4207_s22, %s4208_s23  }
 0x58e   :  { %4204 = dma.done.wait [#allocation3], 8192  }
 0x58f   :  { %4205 = vsyncadd [#allocation3], 4294959104 }
 0x590   :  { %3006 = vsyncpa [#allocation3], 1 }

</bundles_post_ra>
